<compile_context>
chip_gen: v7x
topology: tpu7x:2x2x1
jax: 0.10.0
libtpu: 0.0.40
codegen_flags: <defaults>
</compile_context>

<pallas_src>
import functools
import math

import jax
import jax.numpy as jnp
import numpy as np
from jax import lax
from jax.experimental import pallas as pl
from jax.experimental.pallas import tpu as pltpu

_LANE = 128


# ------------------------------ small helpers -------------------------------

def _round_up(x, m):
    return (x + m - 1) // m * m


def _pick_tile(total, cap, quantum):
    """Largest tile <= cap that divides `total` (total is a multiple of quantum)."""
    t = max(quantum, min(cap, total) // quantum * quantum)
    while total % t:
        t -= quantum
    return t


def _derive_vmem_limit(bytes_needed):
    """Per-generation scoped-VMEM limit: working set + margin, capped at half
    of the local chip's physical VMEM (64 MiB/core on v7x, 128 MiB v5e/v6e)."""
    try:
        cap = int(pltpu.get_tpu_info().vmem_capacity_bytes) // 2
    except Exception:
        cap = 32 * 1024 * 1024
    cap = max(cap, 16 * 1024 * 1024)
    want = 2 * int(bytes_needed) + (4 << 20)
    return int(min(max(want, 16 << 20), cap))


# ----------------------------- Pallas kernels ------------------------------

def _conv_mm_kernel(*refs, apply_lrelu, slope, has_bias):
    """Tiled matmul: (tm,tk)x(tk,tn) bf16 -> f32 acc; fused (bias) + LeakyReLU."""
    if has_bias:
        a_ref, w_ref, b_ref, o_ref, acc_ref = refs
    else:
        a_ref, w_ref, o_ref, acc_ref = refs

    k = pl.program_id(2)

    @pl.when(k == 0)
    def _():
        acc_ref[...] = jnp.zeros_like(acc_ref)

    acc_ref[...] += jnp.dot(a_ref[...], w_ref[...],
                            preferred_element_type=jnp.float32)

    @pl.when(k == pl.num_programs(2) - 1)
    def _():
        y = acc_ref[...]
        if has_bias:
            y = y + b_ref[...]
        if apply_lrelu:
            y = jnp.where(y >= 0, y, slope * y)
        o_ref[...] = y.astype(o_ref.dtype)


def _conv_bn_lrelu_kernel(a_ref, w_ref, g_ref, b_ref, o_ref, acc_ref, *,
                          m_valid, eps, slope):
    """Conv matmul with the full M extent resident per channel tile; epilogue
    does training-mode BatchNorm (exact batch stats, biased var) + LeakyReLU."""
    k = pl.program_id(1)

    @pl.when(k == 0)
    def _():
        acc_ref[...] = jnp.zeros_like(acc_ref)

    acc_ref[...] += jnp.dot(a_ref[...], w_ref[...],
                            preferred_element_type=jnp.float32)

    @pl.when(k == pl.num_programs(1) - 1)
    def _():
        x = acc_ref[...]                                   # (m_pad, tn) f32
        if m_valid == x.shape[0]:
            mean = jnp.mean(x, axis=0, keepdims=True)
            var = jnp.mean(jnp.square(x - mean), axis=0, keepdims=True)
        else:
            row = lax.broadcasted_iota(jnp.int32, x.shape, 0)
            valid = (row < m_valid).astype(jnp.float32)
            inv_m = 1.0 / m_valid
            mean = jnp.sum(x * valid, axis=0, keepdims=True) * inv_m
            var = jnp.sum(jnp.square(x - mean) * valid, axis=0,
                          keepdims=True) * inv_m
        y = (x - mean) * lax.rsqrt(var + eps) * g_ref[...] + b_ref[...]
        o_ref[...] = jnp.where(y >= 0, y, slope * y).astype(o_ref.dtype)


def _fused_kernel(*refs, meta, slope, eps):
    """Whole-network fused forward.  Everything is resident in VMEM; patch
    extraction of inner layers is a 0/1 selection matmul per kernel tap."""
    out_ref = refs[-1]
    a1_ref = refs[0]
    const_refs = refs[1:-1]

    x = a1_ref[...]                     # bf16 (m1_pad, k1_pad) im2col'ed input
    idx = 0
    for lm in meta:
        if lm["kind"] == "first":
            w = const_refs[idx][...]
            idx += 1
            y = jnp.dot(x, w, preferred_element_type=jnp.float32)
            y = jnp.where(y >= 0, y, slope * y)
            x = y.astype(jnp.bfloat16)
            continue

        sel_ref = const_refs[idx]
        w_ref = const_refs[idx + 1]
        idx += 2
        acc = None
        for p in range(lm["kk"]):       # static unroll over the k*k taps
            a_p = jnp.dot(sel_ref[p], x,
                          preferred_element_type=jnp.float32).astype(jnp.bfloat16)
            t = jnp.dot(a_p, w_ref[p], preferred_element_type=jnp.float32)
            acc = t if acc is None else acc + t

        if lm["kind"] == "conv_bn_lrelu":
            g = const_refs[idx][...]
            b = const_refs[idx + 1][...]
            idx += 2
            mv = lm["m_valid"]
            if mv == lm["m_out_pad"]:
                mean = jnp.mean(acc, axis=0, keepdims=True)
                var = jnp.mean(jnp.square(acc - mean), axis=0, keepdims=True)
            else:
                row = lax.broadcasted_iota(jnp.int32, acc.shape, 0)
                msk = (row < mv).astype(jnp.float32)
                inv = 1.0 / mv
                mean = jnp.sum(acc * msk, axis=0, keepdims=True) * inv
                var = jnp.sum(jnp.square(acc - mean) * msk, axis=0,
                              keepdims=True) * inv
            y = (acc - mean) * lax.rsqrt(var + eps) * g + b
            y = jnp.where(y >= 0, y, slope * y)
            x = y.astype(jnp.bfloat16)
        else:                           # conv_final (bias, no activation)
            bias = const_refs[idx][...]
            idx += 1
            out_ref[...] = (acc + bias).astype(out_ref.dtype)


# ------------------------------ glue helpers -------------------------------

def _im2col_nhwc(x, k, stride, pad):
    """NHWC -> (N*Ho*Wo, kh*kw*C) patches, ordering (kh, kw, C)."""
    n, h, w, c = x.shape
    xp = jnp.pad(x, ((0, 0), (pad, pad), (pad, pad), (0, 0)))
    ho = (h + 2 * pad - k) // stride + 1
    wo = (w + 2 * pad - k) // stride + 1
    cols = []
    for kh in range(k):
        for kw in range(k):
            cols.append(xp[:, kh:kh + stride * ho:stride,
                           kw:kw + stride * wo:stride, :])
    p = jnp.stack(cols, axis=3)                 # (N, Ho, Wo, k*k, C)
    return p.reshape(n * ho * wo, k * k * c), (n, ho, wo)


def _pack_weight(w, cout_pad):
    """OIHW -> ((kh*kw*cin rounded to 128) x cout_pad) bf16, Cout on lanes.
    NOTE: no Cin padding -> K is k*k*real_cin (only rounded up to 128)."""
    cout, cin, kh, kw = w.shape
    w = jnp.pad(w, ((0, cout_pad - cout), (0, 0), (0, 0), (0, 0)))
    w = jnp.transpose(w, (2, 3, 1, 0)).reshape(kh * kw * cin, cout_pad)
    k_pad = _round_up(w.shape[0], _LANE)
    w = jnp.pad(w, ((0, k_pad - w.shape[0]), (0, 0)))
    return w.astype(jnp.bfloat16)


def _pack_weight_per_tap(w, cin_pad, cout_pad):
    """OIHW -> (k*k, cin_pad, cout_pad) bf16, one (Cin x Cout) slab per tap."""
    cout, cin, kh_sz, kw_sz = w.shape
    wnp = np.asarray(w, np.float32)
    wp = np.zeros((kh_sz * kw_sz, cin_pad, cout_pad), np.float32)
    for a in range(kh_sz):
        for b in range(kw_sz):
            wp[a * kw_sz + b, :cin, :cout] = wnp[:, :, a, b].T
    return jnp.asarray(wp, jnp.bfloat16)


def _selection_matrix(n, h, w, k, stride, pad, m_out_pad, m_in_pad):
    """0/1 matrices S[p] with S[p] @ X == im2col block of kernel tap p, where
    X is the (N*H*W, C) row-major NHWC activation.  Out-of-bounds taps select
    nothing (exact zero padding)."""
    ho = (h + 2 * pad - k) // stride + 1
    wo = (w + 2 * pad - k) // stride + 1
    s = np.zeros((k * k, m_out_pad, m_in_pad), np.float32)
    for kh in range(k):
        for kw in range(k):
            p = kh * k + kw
            for ni in range(n):
                for oh in range(ho):
                    for ow in range(wo):
                        hi = oh * stride - pad + kh
                        wi = ow * stride - pad + kw
                        if 0 <= hi < h and 0 <= wi < w:
                            mo = ni * ho * wo + oh * wo + ow
                            mi = ni * h * w + hi * w + wi
                            s[p, mo, mi] = 1.0
    return jnp.asarray(s, jnp.bfloat16), (ho, wo)


# ---------------------- layer-by-layer (general) path -----------------------

def conv_pallas(x_nhwc, w2d, bias, *, ksize, stride, padding, lrelu,
                slope=0.2, out_dtype=jnp.bfloat16):
    """Conv2d as a tiled Pallas matmul with fused (bias) + optional LeakyReLU.
    Returns an NHWC activation with lane-padded channel count."""
    patches, (n, ho, wo) = _im2col_nhwc(x_nhwc, ksize, stride, padding)
    m, k_eff = patches.shape
    k_pad, cout_pad = w2d.shape
    has_bias = bias is not None

    m_pad = _round_up(m, 16)
    cap_m = 256
    if m_pad >= 64:                       # >=2 M blocks so v7x's 2nd TC is used
        cap_m = min(cap_m, m_pad // 2)
    tm = _pick_tile(m_pad, cap_m, 16)
    tn = _pick_tile(cout_pad, 256, _LANE)
    tk = _pick_tile(k_pad, 512, _LANE)

    a = jnp.pad(patches, ((0, m_pad - m), (0, k_pad - k_eff))).astype(jnp.bfloat16)
    grid = (m_pad // tm, cout_pad // tn, k_pad // tk)

    in_specs = [pl.BlockSpec((tm, tk), lambda i, j, k: (i, k)),
                pl.BlockSpec((tk, tn), lambda i, j, k: (k, j))]
    args = [a, w2d]
    if has_bias:
        in_specs.append(pl.BlockSpec((1, tn), lambda i, j, k: (0, j)))
        args.append(bias)

    out_bytes = np.dtype(out_dtype).itemsize
    vmem_bytes = (tm * tk * 2 + tk * tn * 2) * 2 + tm * tn * 4 \
        + tm * tn * out_bytes * 2

    out = pl.pallas_call(
        functools.partial(_conv_mm_kernel, apply_lrelu=lrelu, slope=slope,
                          has_bias=has_bias),
        out_shape=jax.ShapeDtypeStruct((m_pad, cout_pad), out_dtype),
        grid_spec=pltpu.PrefetchScalarGridSpec(
            num_scalar_prefetch=0,
            grid=grid,
            in_specs=in_specs,
            out_specs=pl.BlockSpec((tm, tn), lambda i, j, k: (i, j)),
            scratch_shapes=[pltpu.VMEM((tm, tn), jnp.float32)],
        ),
        compiler_params=pltpu.CompilerParams(
            dimension_semantics=("parallel", "parallel", "arbitrary"),
            vmem_limit_bytes=_derive_vmem_limit(vmem_bytes)),
        cost_estimate=pl.CostEstimate(
            flops=2 * m_pad * k_pad * cout_pad, transcendentals=0,
            bytes_accessed=int(a.size * 2 + w2d.size * 2
                               + m_pad * cout_pad * out_bytes)),
    )(*args)
    return out[:m].reshape(n, ho, wo, cout_pad)


def conv_bn_lrelu_pallas(x_nhwc, w2d, gamma, beta, *, ksize, stride, padding,
                         eps=1e-5, slope=0.2, out_dtype=jnp.bfloat16):
    """Conv2d + BatchNorm2d(batch stats) + LeakyReLU fused in one kernel.
    The full M extent stays resident per channel tile so statistics are exact
    and the patch matrix is DMA'd from HBM only once (constant A block index)."""
    patches, (n, ho, wo) = _im2col_nhwc(x_nhwc, ksize, stride, padding)
    m, k_eff = patches.shape
    k_pad, cout_pad = w2d.shape

    m_pad = _round_up(m, 16)
    tn = _pick_tile(cout_pad, 256 if cout_pad >= 256 else 128, _LANE)
    a_budget = 8 * 1024 * 1024
    cap_k = max(_LANE, (a_budget // (m_pad * 2)) // _LANE * _LANE)
    tk = _pick_tile(k_pad, cap_k, _LANE)
    # TODO(synk): switch to a two-pass (sum / sum-of-squares over M tiles)
    # statistics scheme once m_pad no longer fits VMEM (large batch/resolution;
    # tightest on v7x's 64 MiB VMEM).

    a = jnp.pad(patches, ((0, m_pad - m), (0, k_pad - k_eff))).astype(jnp.bfloat16)
    grid = (cout_pad // tn, k_pad // tk)

    out_bytes = np.dtype(out_dtype).itemsize
    vmem_bytes = (m_pad * tk * 2 + tk * tn * 2) * 2 + m_pad * tn * 4 \
        + m_pad * tn * out_bytes * 2

    out = pl.pallas_call(
        functools.partial(_conv_bn_lrelu_kernel, m_valid=m, eps=eps, slope=slope),
        out_shape=jax.ShapeDtypeStruct((m_pad, cout_pad), out_dtype),
        grid_spec=pltpu.PrefetchScalarGridSpec(
            num_scalar_prefetch=0,
            grid=grid,
            in_specs=[
                pl.BlockSpec((m_pad, tk), lambda j, k: (0, k)),
                pl.BlockSpec((tk, tn), lambda j, k: (k, j)),
                pl.BlockSpec((1, tn), lambda j, k: (0, j)),
                pl.BlockSpec((1, tn), lambda j, k: (0, j)),
            ],
            out_specs=pl.BlockSpec((m_pad, tn), lambda j, k: (0, j)),
            scratch_shapes=[pltpu.VMEM((m_pad, tn), jnp.float32)],
        ),
        compiler_params=pltpu.CompilerParams(
            dimension_semantics=("parallel", "arbitrary"),
            vmem_limit_bytes=_derive_vmem_limit(vmem_bytes)),
        cost_estimate=pl.CostEstimate(
            flops=2 * m_pad * k_pad * cout_pad, transcendentals=0,
            bytes_accessed=int(a.size * 2 + w2d.size * 2
                               + m_pad * cout_pad * out_bytes)),
    )(a, w2d, gamma, beta)
    return out[:m].reshape(n, ho, wo, cout_pad)


def prepare_layered_params(params, input_channels):
    """Pack weights once (no Cin padding in K; Cout padded to 128 lanes)."""
    prepared = []
    for layer in params:
        w = layer["w"]
        cout = w.shape[0]
        cout_pad = _round_up(cout, _LANE)
        entry = {"kind": layer["kind"], "k": w.shape[2], "cout": cout,
                 "cout_pad": cout_pad, "w2d": _pack_weight(w, cout_pad)}
        if layer["kind"] == "conv_final":
            entry["bias"] = jnp.pad(layer["b"], (0, cout_pad - cout)) \
                .reshape(1, cout_pad).astype(jnp.float32)
        if layer["kind"] == "conv_bn_lrelu":
            entry["gamma"] = jnp.pad(layer["gamma"], (0, cout_pad - cout),
                                     constant_values=1.0).reshape(1, cout_pad) \
                .astype(jnp.float32)
            entry["beta"] = jnp.pad(layer["beta"], (0, cout_pad - cout)) \
                .reshape(1, cout_pad).astype(jnp.float32)
        prepared.append(entry)
    return prepared


def discriminator_forward_layered(prepared, x_nchw):
    x = jnp.transpose(x_nchw, (0, 2, 3, 1)).astype(jnp.float32)
    for layer in prepared:
        if layer["kind"] == "conv_lrelu":
            y = conv_pallas(x, layer["w2d"], None, ksize=layer["k"], stride=2,
                            padding=1, lrelu=True, out_dtype=jnp.bfloat16)
        elif layer["kind"] == "conv_bn_lrelu":
            y = conv_bn_lrelu_pallas(x, layer["w2d"], layer["gamma"],
                                     layer["beta"], ksize=layer["k"], stride=2,
                                     padding=1, out_dtype=jnp.bfloat16)
        else:  # conv_final
            y = conv_pallas(x, layer["w2d"], layer["bias"], ksize=layer["k"],
                            stride=1, padding=0, lrelu=False,
                            out_dtype=jnp.float32)
        # Drop lane padding so it never inflates the next layer's K.
        x = y[..., :layer["cout"]]
    return jnp.transpose(x, (0, 3, 1, 2))


# --------------------------- fully fused path -------------------------------

def prepare_fused_params(params, input_channels, batch, image_size):
    """Build the constant tensors (packed weights, selection matrices, BN/bias
    params) for the single-pallas_call fused forward."""
    n = batch
    cur_h = cur_w = image_size

    consts, meta = [], []

    first = params[0]
    k1 = first["w"].shape[2]
    cout1 = first["w"].shape[0]
    c1_pad = _round_up(cout1, _LANE)
    w1 = _pack_weight(first["w"], c1_pad)
    ho = (cur_h + 2 - k1) // 2 + 1
    wo = (cur_w + 2 - k1) // 2 + 1
    m1 = n * ho * wo
    m1_pad = _round_up(m1, 8)
    consts.append(w1)
    meta.append({"kind": "first"})
    cur_h, cur_w = ho, wo
    cur_m_pad, cur_c_pad, cur_cout = m1_pad, c1_pad, cout1

    for layer in params[1:]:
        k = layer["w"].shape[2]
        cout = layer["w"].shape[0]
        c_pad = _round_up(cout, _LANE)
        if layer["kind"] == "conv_bn_lrelu":
            stride, pad = 2, 1
        else:
            stride, pad = 1, 0
        ho = (cur_h + 2 * pad - k) // stride + 1
        wo = (cur_w + 2 * pad - k) // stride + 1
        m_out = n * ho * wo
        m_out_pad = _round_up(m_out, 8)

        sel, _ = _selection_matrix(n, cur_h, cur_w, k, stride, pad,
                                   m_out_pad, cur_m_pad)
        wpp = _pack_weight_per_tap(layer["w"], cur_c_pad, c_pad)
        consts.extend([sel, wpp])
        entry = {"kind": layer["kind"], "kk": k * k, "m_out_pad": m_out_pad,
                 "m_valid": m_out, "c_out_pad": c_pad}
        if layer["kind"] == "conv_bn_lrelu":
            gamma = jnp.pad(layer["gamma"], (0, c_pad - cout),
                            constant_values=1.0).reshape(1, c_pad).astype(jnp.float32)
            beta = jnp.pad(layer["beta"], (0, c_pad - cout)) \
                .reshape(1, c_pad).astype(jnp.float32)
            consts.extend([gamma, beta])
        else:
            bias = jnp.pad(layer["b"], (0, c_pad - cout)) \
                .reshape(1, c_pad).astype(jnp.float32)
            consts.append(bias)
        meta.append(entry)
        cur_h, cur_w = ho, wo
        cur_m_pad, cur_c_pad, cur_cout = m_out_pad, c_pad, cout

    info = {"k1": k1, "m1": m1, "m1_pad": m1_pad, "k1_pad": int(w1.shape[0]),
            "out_m_pad": cur_m_pad, "out_c_pad": cur_c_pad,
            "out_nhwc": (n, cur_h, cur_w, cur_cout)}
    return consts, meta, info


def discriminator_forward_fused(consts, meta, info, x_nchw, slope=0.2, eps=1e-5):
    """Whole forward in a single pallas_call (small configs only)."""
    x = jnp.transpose(x_nchw, (0, 2, 3, 1)).astype(jnp.float32)
    patches, _ = _im2col_nhwc(x, info["k1"], 2, 1)
    m, k_eff = patches.shape
    a1 = jnp.pad(patches, ((0, info["m1_pad"] - m),
                           (0, info["k1_pad"] - k_eff))).astype(jnp.bfloat16)

    vmem_bytes = a1.size * 2 \
        + sum(int(c.size) * c.dtype.itemsize for c in consts) \
        + info["out_m_pad"] * info["out_c_pad"] * 4
    # The fused path assumes everything fits comfortably in VMEM.
    # TODO(synk): fall back to discriminator_forward_layered for big configs.
    assert vmem_bytes < 8 * 1024 * 1024, "config too large for the fused path"

    out = pl.pallas_call(
        functools.partial(_fused_kernel, meta=meta, slope=slope, eps=eps),
        out_shape=jax.ShapeDtypeStruct((info["out_m_pad"], info["out_c_pad"]),
                                       jnp.float32),
        compiler_params=pltpu.CompilerParams(
            vmem_limit_bytes=_derive_vmem_limit(vmem_bytes)),
    )(a1, *consts)

    n, ho, wo, cout = info["out_nhwc"]
    y = out[:n * ho * wo, :cout].reshape(n, ho, wo, cout)
    return jnp.transpose(y, (0, 3, 1, 2))


# --------------------------- model construction ----------------------------

def init_discriminator_params(key, input_dim=128, input_channels=3,
                              image_size=128, Gscale=16, Dscale=1):
    up_times = int(math.log(image_size, 2) - 3)
    first_hidden = image_size * Gscale // 2 ** up_times // Dscale
    keys = jax.random.split(key, up_times + 3)

    def nrm(k, shape, scale=0.05):
        return jax.random.normal(k, shape, jnp.float32) * scale

    params = []
    params.append({"kind": "conv_lrelu",
                   "w": nrm(keys[0], (first_hidden, input_channels, 4, 4))})
    hidden = first_hidden
    for i in range(up_times):
        params.append({"kind": "conv_bn_lrelu",
                       "w": nrm(keys[1 + i], (hidden * 2, hidden, 4, 4)),
                       "gamma": jnp.ones((hidden * 2,), jnp.float32),
                       "beta": jnp.zeros((hidden * 2,), jnp.float32)})
        hidden *= 2
    params.append({"kind": "conv_final",
                   "w": nrm(keys[-2], (input_dim, hidden, 4, 4)),
                   "b": nrm(keys[-1], (input_dim,))})
    return params


# --------------------------- pure-JAX reference -----------------------------

def _ref_conv(x, w, b, stride, pad):
    y = lax.conv_general_dilated(x, w, (stride, stride),
                                 [(pad, pad), (pad, pad)],
                                 dimension_numbers=("NCHW", "OIHW", "NCHW"))
    if b is not None:
        y = y + b.reshape(1, -1, 1, 1)
    return y


def discriminator_reference(params, x, slope=0.2, eps=1e-5):
    for layer in params:
        if layer["kind"] == "conv_lrelu":
            y = _ref_conv(x, layer["w"], None, 2, 1)
            x = jnp.where(y >= 0, y, slope * y)
        elif layer["kind"] == "conv_bn_lrelu":
            y = _ref_conv(x, layer["w"], None, 2, 1)
            mean = jnp.mean(y, axis=(0, 2, 3), keepdims=True)
            var = jnp.mean(jnp.square(y - mean), axis=(0, 2, 3), keepdims=True)
            y = (y - mean) * lax.rsqrt(var + eps) \
                * layer["gamma"].reshape(1, -1, 1, 1) \
                + layer["beta"].reshape(1, -1, 1, 1)
            x = jnp.where(y >= 0, y, slope * y)
        else:
            x = _ref_conv(x, layer["w"], layer["b"], 1, 0)
    return x


# ---------------------------------- main ------------------------------------

if __name__ == "__main__":
    key = jax.random.PRNGKey(0)
    k_param, k_input = jax.random.split(key)

    # Small, constructor-consistent config.
    input_dim, input_channels, image_size, Gscale, Dscale = 32, 4, 16, 4, 1
    batch = 2

    params = init_discriminator_params(k_param, input_dim=input_dim,
                                       input_channels=input_channels,
                                       image_size=image_size,
                                       Gscale=Gscale, Dscale=Dscale)
    x = jax.random.normal(
        k_input, (batch, input_channels, image_size, image_size), jnp.float32)

    y_ref = jax.block_until_ready(discriminator_reference(params, x))

    # Primary path: whole forward fused into a single pallas_call.
    consts, meta, info = prepare_fused_params(params, input_channels, batch,
                                              image_size)
    fwd_fused = jax.jit(lambda xx: discriminator_forward_fused(consts, meta,
                                                               info, xx))
    y_fused = jax.block_until_ready(fwd_fused(x))
    assert y_fused.shape == (batch, input_dim, 1, 1), y_fused.shape
    err_f = float(jnp.max(jnp.abs(y_fused - y_ref)))
    assert jnp.allclose(y_fused, y_ref, atol=5e-2, rtol=5e-2), err_f

    # General layer-by-layer tiled path (fallback for larger configs).
    prepared = prepare_layered_params(params, input_channels)
    fwd_layered = jax.jit(lambda xx: discriminator_forward_layered(prepared, xx))
    y_lay = jax.block_until_ready(fwd_layered(x))
    assert y_lay.shape == (batch, input_dim, 1, 1), y_lay.shape
    err_l = float(jnp.max(jnp.abs(y_lay - y_ref)))
    assert jnp.allclose(y_lay, y_ref, atol=5e-2, rtol=5e-2), err_l

    print("KERNEL_OK")
</pallas_src>

<mosaic_0001>
module attributes {stable_mosaic.version = 11 : i64} {
  func.func @_fused_kernel(%arg0: memref<128x128xbf16, #tpu.memory_space<vmem>>, %arg1: memref<128x128xbf16, #tpu.memory_space<vmem>>, %arg2: memref<16x32x128xbf16, #tpu.memory_space<vmem>>, %arg3: memref<16x128x128xbf16, #tpu.memory_space<vmem>>, %arg4: memref<1x128xf32, #tpu.memory_space<vmem>>, %arg5: memref<1x128xf32, #tpu.memory_space<vmem>>, %arg6: memref<16x8x32xbf16, #tpu.memory_space<vmem>>, %arg7: memref<16x128x128xbf16, #tpu.memory_space<vmem>>, %arg8: memref<1x128xf32, #tpu.memory_space<vmem>>, %arg9: memref<8x128xf32, #tpu.memory_space<vmem>>) attributes {dimension_semantics = [], scalar_prefetch = 0 : i64, scratch_operands = 0 : i64, tpu.core_type = #tpu.core_type<tc>} {
    %c0 = arith.constant 0 : index
    %c0_0 = arith.constant 0 : index
    %0 = vector.load %arg0[%c0, %c0_0] : memref<128x128xbf16, #tpu.memory_space<vmem>>, vector<128x128xbf16>
    %c0_1 = arith.constant 0 : index
    %c0_2 = arith.constant 0 : index
    %1 = vector.load %arg1[%c0_1, %c0_2] : memref<128x128xbf16, #tpu.memory_space<vmem>>, vector<128x128xbf16>
    %cst = arith.constant dense<0.000000e+00> : vector<128x128xf32>
    %2 = tpu.matmul %0, %1, %cst {dimension_numbers = #tpu.dot_dimension_numbers<[1], [0], [0], [1], [0, 0, 1, 1], [], []>} : vector<128x128xbf16>, vector<128x128xbf16>, vector<128x128xf32> -> vector<128x128xf32>
    %cst_3 = arith.constant 0.000000e+00 : f32
    %3 = vector.broadcast %cst_3 : f32 to vector<128x128xf32>
    %4 = arith.cmpf oge, %2, %3 : vector<128x128xf32>
    %cst_4 = arith.constant 2.000000e-01 : f32
    %5 = vector.broadcast %cst_4 : f32 to vector<128x128xf32>
    %6 = arith.mulf %5, %2 : vector<128x128xf32>
    %7 = arith.select %4, %2, %6 : vector<128x128xi1>, vector<128x128xf32>
    %8 = arith.truncf %7 : vector<128x128xf32> to vector<128x128xbf16>
    %c0_5 = arith.constant 0 : index
    %c0_6 = arith.constant 0 : index
    %c0_7 = arith.constant 0 : index
    %9 = vector.load %arg2[%c0_5, %c0_6, %c0_7] : memref<16x32x128xbf16, #tpu.memory_space<vmem>>, vector<1x32x128xbf16>
    %10 = vector.shape_cast %9 : vector<1x32x128xbf16> to vector<32x128xbf16>
    %cst_8 = arith.constant dense<0.000000e+00> : vector<32x128xf32>
    %11 = tpu.matmul %10, %8, %cst_8 {dimension_numbers = #tpu.dot_dimension_numbers<[1], [0], [0], [1], [0, 0, 1, 1], [], []>} : vector<32x128xbf16>, vector<128x128xbf16>, vector<32x128xf32> -> vector<32x128xf32>
    %12 = arith.truncf %11 : vector<32x128xf32> to vector<32x128xbf16>
    %c0_9 = arith.constant 0 : index
    %c0_10 = arith.constant 0 : index
    %c0_11 = arith.constant 0 : index
    %13 = vector.load %arg3[%c0_9, %c0_10, %c0_11] : memref<16x128x128xbf16, #tpu.memory_space<vmem>>, vector<1x128x128xbf16>
    %14 = vector.shape_cast %13 : vector<1x128x128xbf16> to vector<128x128xbf16>
    %cst_12 = arith.constant dense<0.000000e+00> : vector<32x128xf32>
    %15 = tpu.matmul %12, %14, %cst_12 {dimension_numbers = #tpu.dot_dimension_numbers<[1], [0], [0], [1], [0, 0, 1, 1], [], []>} : vector<32x128xbf16>, vector<128x128xbf16>, vector<32x128xf32> -> vector<32x128xf32>
    %c1 = arith.constant 1 : index
    %c0_13 = arith.constant 0 : index
    %c0_14 = arith.constant 0 : index
    %16 = vector.load %arg2[%c1, %c0_13, %c0_14] : memref<16x32x128xbf16, #tpu.memory_space<vmem>>, vector<1x32x128xbf16>
    %17 = vector.shape_cast %16 : vector<1x32x128xbf16> to vector<32x128xbf16>
    %cst_15 = arith.constant dense<0.000000e+00> : vector<32x128xf32>
    %18 = tpu.matmul %17, %8, %cst_15 {dimension_numbers = #tpu.dot_dimension_numbers<[1], [0], [0], [1], [0, 0, 1, 1], [], []>} : vector<32x128xbf16>, vector<128x128xbf16>, vector<32x128xf32> -> vector<32x128xf32>
    %19 = arith.truncf %18 : vector<32x128xf32> to vector<32x128xbf16>
    %c1_16 = arith.constant 1 : index
    %c0_17 = arith.constant 0 : index
    %c0_18 = arith.constant 0 : index
    %20 = vector.load %arg3[%c1_16, %c0_17, %c0_18] : memref<16x128x128xbf16, #tpu.memory_space<vmem>>, vector<1x128x128xbf16>
    %21 = vector.shape_cast %20 : vector<1x128x128xbf16> to vector<128x128xbf16>
    %cst_19 = arith.constant dense<0.000000e+00> : vector<32x128xf32>
    %22 = tpu.matmul %19, %21, %cst_19 {dimension_numbers = #tpu.dot_dimension_numbers<[1], [0], [0], [1], [0, 0, 1, 1], [], []>} : vector<32x128xbf16>, vector<128x128xbf16>, vector<32x128xf32> -> vector<32x128xf32>
    %23 = arith.addf %15, %22 : vector<32x128xf32>
    %c2 = arith.constant 2 : index
    %c0_20 = arith.constant 0 : index
    %c0_21 = arith.constant 0 : index
    %24 = vector.load %arg2[%c2, %c0_20, %c0_21] : memref<16x32x128xbf16, #tpu.memory_space<vmem>>, vector<1x32x128xbf16>
    %25 = vector.shape_cast %24 : vector<1x32x128xbf16> to vector<32x128xbf16>
    %cst_22 = arith.constant dense<0.000000e+00> : vector<32x128xf32>
    %26 = tpu.matmul %25, %8, %cst_22 {dimension_numbers = #tpu.dot_dimension_numbers<[1], [0], [0], [1], [0, 0, 1, 1], [], []>} : vector<32x128xbf16>, vector<128x128xbf16>, vector<32x128xf32> -> vector<32x128xf32>
    %27 = arith.truncf %26 : vector<32x128xf32> to vector<32x128xbf16>
    %c2_23 = arith.constant 2 : index
    %c0_24 = arith.constant 0 : index
    %c0_25 = arith.constant 0 : index
    %28 = vector.load %arg3[%c2_23, %c0_24, %c0_25] : memref<16x128x128xbf16, #tpu.memory_space<vmem>>, vector<1x128x128xbf16>
    %29 = vector.shape_cast %28 : vector<1x128x128xbf16> to vector<128x128xbf16>
    %cst_26 = arith.constant dense<0.000000e+00> : vector<32x128xf32>
    %30 = tpu.matmul %27, %29, %cst_26 {dimension_numbers = #tpu.dot_dimension_numbers<[1], [0], [0], [1], [0, 0, 1, 1], [], []>} : vector<32x128xbf16>, vector<128x128xbf16>, vector<32x128xf32> -> vector<32x128xf32>
    %31 = arith.addf %23, %30 : vector<32x128xf32>
    %c3 = arith.constant 3 : index
    %c0_27 = arith.constant 0 : index
    %c0_28 = arith.constant 0 : index
    %32 = vector.load %arg2[%c3, %c0_27, %c0_28] : memref<16x32x128xbf16, #tpu.memory_space<vmem>>, vector<1x32x128xbf16>
    %33 = vector.shape_cast %32 : vector<1x32x128xbf16> to vector<32x128xbf16>
    %cst_29 = arith.constant dense<0.000000e+00> : vector<32x128xf32>
    %34 = tpu.matmul %33, %8, %cst_29 {dimension_numbers = #tpu.dot_dimension_numbers<[1], [0], [0], [1], [0, 0, 1, 1], [], []>} : vector<32x128xbf16>, vector<128x128xbf16>, vector<32x128xf32> -> vector<32x128xf32>
    %35 = arith.truncf %34 : vector<32x128xf32> to vector<32x128xbf16>
    %c3_30 = arith.constant 3 : index
    %c0_31 = arith.constant 0 : index
    %c0_32 = arith.constant 0 : index
    %36 = vector.load %arg3[%c3_30, %c0_31, %c0_32] : memref<16x128x128xbf16, #tpu.memory_space<vmem>>, vector<1x128x128xbf16>
    %37 = vector.shape_cast %36 : vector<1x128x128xbf16> to vector<128x128xbf16>
    %cst_33 = arith.constant dense<0.000000e+00> : vector<32x128xf32>
    %38 = tpu.matmul %35, %37, %cst_33 {dimension_numbers = #tpu.dot_dimension_numbers<[1], [0], [0], [1], [0, 0, 1, 1], [], []>} : vector<32x128xbf16>, vector<128x128xbf16>, vector<32x128xf32> -> vector<32x128xf32>
    %39 = arith.addf %31, %38 : vector<32x128xf32>
    %c4 = arith.constant 4 : index
    %c0_34 = arith.constant 0 : index
    %c0_35 = arith.constant 0 : index
    %40 = vector.load %arg2[%c4, %c0_34, %c0_35] : memref<16x32x128xbf16, #tpu.memory_space<vmem>>, vector<1x32x128xbf16>
    %41 = vector.shape_cast %40 : vector<1x32x128xbf16> to vector<32x128xbf16>
    %cst_36 = arith.constant dense<0.000000e+00> : vector<32x128xf32>
    %42 = tpu.matmul %41, %8, %cst_36 {dimension_numbers = #tpu.dot_dimension_numbers<[1], [0], [0], [1], [0, 0, 1, 1], [], []>} : vector<32x128xbf16>, vector<128x128xbf16>, vector<32x128xf32> -> vector<32x128xf32>
    %43 = arith.truncf %42 : vector<32x128xf32> to vector<32x128xbf16>
    %c4_37 = arith.constant 4 : index
    %c0_38 = arith.constant 0 : index
    %c0_39 = arith.constant 0 : index
    %44 = vector.load %arg3[%c4_37, %c0_38, %c0_39] : memref<16x128x128xbf16, #tpu.memory_space<vmem>>, vector<1x128x128xbf16>
    %45 = vector.shape_cast %44 : vector<1x128x128xbf16> to vector<128x128xbf16>
    %cst_40 = arith.constant dense<0.000000e+00> : vector<32x128xf32>
    %46 = tpu.matmul %43, %45, %cst_40 {dimension_numbers = #tpu.dot_dimension_numbers<[1], [0], [0], [1], [0, 0, 1, 1], [], []>} : vector<32x128xbf16>, vector<128x128xbf16>, vector<32x128xf32> -> vector<32x128xf32>
    %47 = arith.addf %39, %46 : vector<32x128xf32>
    %c5 = arith.constant 5 : index
    %c0_41 = arith.constant 0 : index
    %c0_42 = arith.constant 0 : index
    %48 = vector.load %arg2[%c5, %c0_41, %c0_42] : memref<16x32x128xbf16, #tpu.memory_space<vmem>>, vector<1x32x128xbf16>
    %49 = vector.shape_cast %48 : vector<1x32x128xbf16> to vector<32x128xbf16>
    %cst_43 = arith.constant dense<0.000000e+00> : vector<32x128xf32>
    %50 = tpu.matmul %49, %8, %cst_43 {dimension_numbers = #tpu.dot_dimension_numbers<[1], [0], [0], [1], [0, 0, 1, 1], [], []>} : vector<32x128xbf16>, vector<128x128xbf16>, vector<32x128xf32> -> vector<32x128xf32>
    %51 = arith.truncf %50 : vector<32x128xf32> to vector<32x128xbf16>
    %c5_44 = arith.constant 5 : index
    %c0_45 = arith.constant 0 : index
    %c0_46 = arith.constant 0 : index
    %52 = vector.load %arg3[%c5_44, %c0_45, %c0_46] : memref<16x128x128xbf16, #tpu.memory_space<vmem>>, vector<1x128x128xbf16>
    %53 = vector.shape_cast %52 : vector<1x128x128xbf16> to vector<128x128xbf16>
    %cst_47 = arith.constant dense<0.000000e+00> : vector<32x128xf32>
    %54 = tpu.matmul %51, %53, %cst_47 {dimension_numbers = #tpu.dot_dimension_numbers<[1], [0], [0], [1], [0, 0, 1, 1], [], []>} : vector<32x128xbf16>, vector<128x128xbf16>, vector<32x128xf32> -> vector<32x128xf32>
    %55 = arith.addf %47, %54 : vector<32x128xf32>
    %c6 = arith.constant 6 : index
    %c0_48 = arith.constant 0 : index
    %c0_49 = arith.constant 0 : index
    %56 = vector.load %arg2[%c6, %c0_48, %c0_49] : memref<16x32x128xbf16, #tpu.memory_space<vmem>>, vector<1x32x128xbf16>
    %57 = vector.shape_cast %56 : vector<1x32x128xbf16> to vector<32x128xbf16>
    %cst_50 = arith.constant dense<0.000000e+00> : vector<32x128xf32>
    %58 = tpu.matmul %57, %8, %cst_50 {dimension_numbers = #tpu.dot_dimension_numbers<[1], [0], [0], [1], [0, 0, 1, 1], [], []>} : vector<32x128xbf16>, vector<128x128xbf16>, vector<32x128xf32> -> vector<32x128xf32>
    %59 = arith.truncf %58 : vector<32x128xf32> to vector<32x128xbf16>
    %c6_51 = arith.constant 6 : index
    %c0_52 = arith.constant 0 : index
    %c0_53 = arith.constant 0 : index
    %60 = vector.load %arg3[%c6_51, %c0_52, %c0_53] : memref<16x128x128xbf16, #tpu.memory_space<vmem>>, vector<1x128x128xbf16>
    %61 = vector.shape_cast %60 : vector<1x128x128xbf16> to vector<128x128xbf16>
    %cst_54 = arith.constant dense<0.000000e+00> : vector<32x128xf32>
    %62 = tpu.matmul %59, %61, %cst_54 {dimension_numbers = #tpu.dot_dimension_numbers<[1], [0], [0], [1], [0, 0, 1, 1], [], []>} : vector<32x128xbf16>, vector<128x128xbf16>, vector<32x128xf32> -> vector<32x128xf32>
    %63 = arith.addf %55, %62 : vector<32x128xf32>
    %c7 = arith.constant 7 : index
    %c0_55 = arith.constant 0 : index
    %c0_56 = arith.constant 0 : index
    %64 = vector.load %arg2[%c7, %c0_55, %c0_56] : memref<16x32x128xbf16, #tpu.memory_space<vmem>>, vector<1x32x128xbf16>
    %65 = vector.shape_cast %64 : vector<1x32x128xbf16> to vector<32x128xbf16>
    %cst_57 = arith.constant dense<0.000000e+00> : vector<32x128xf32>
    %66 = tpu.matmul %65, %8, %cst_57 {dimension_numbers = #tpu.dot_dimension_numbers<[1], [0], [0], [1], [0, 0, 1, 1], [], []>} : vector<32x128xbf16>, vector<128x128xbf16>, vector<32x128xf32> -> vector<32x128xf32>
    %67 = arith.truncf %66 : vector<32x128xf32> to vector<32x128xbf16>
    %c7_58 = arith.constant 7 : index
    %c0_59 = arith.constant 0 : index
    %c0_60 = arith.constant 0 : index
    %68 = vector.load %arg3[%c7_58, %c0_59, %c0_60] : memref<16x128x128xbf16, #tpu.memory_space<vmem>>, vector<1x128x128xbf16>
    %69 = vector.shape_cast %68 : vector<1x128x128xbf16> to vector<128x128xbf16>
    %cst_61 = arith.constant dense<0.000000e+00> : vector<32x128xf32>
    %70 = tpu.matmul %67, %69, %cst_61 {dimension_numbers = #tpu.dot_dimension_numbers<[1], [0], [0], [1], [0, 0, 1, 1], [], []>} : vector<32x128xbf16>, vector<128x128xbf16>, vector<32x128xf32> -> vector<32x128xf32>
    %71 = arith.addf %63, %70 : vector<32x128xf32>
    %c8 = arith.constant 8 : index
    %c0_62 = arith.constant 0 : index
    %c0_63 = arith.constant 0 : index
    %72 = vector.load %arg2[%c8, %c0_62, %c0_63] : memref<16x32x128xbf16, #tpu.memory_space<vmem>>, vector<1x32x128xbf16>
    %73 = vector.shape_cast %72 : vector<1x32x128xbf16> to vector<32x128xbf16>
    %cst_64 = arith.constant dense<0.000000e+00> : vector<32x128xf32>
    %74 = tpu.matmul %73, %8, %cst_64 {dimension_numbers = #tpu.dot_dimension_numbers<[1], [0], [0], [1], [0, 0, 1, 1], [], []>} : vector<32x128xbf16>, vector<128x128xbf16>, vector<32x128xf32> -> vector<32x128xf32>
    %75 = arith.truncf %74 : vector<32x128xf32> to vector<32x128xbf16>
    %c8_65 = arith.constant 8 : index
    %c0_66 = arith.constant 0 : index
    %c0_67 = arith.constant 0 : index
    %76 = vector.load %arg3[%c8_65, %c0_66, %c0_67] : memref<16x128x128xbf16, #tpu.memory_space<vmem>>, vector<1x128x128xbf16>
    %77 = vector.shape_cast %76 : vector<1x128x128xbf16> to vector<128x128xbf16>
    %cst_68 = arith.constant dense<0.000000e+00> : vector<32x128xf32>
    %78 = tpu.matmul %75, %77, %cst_68 {dimension_numbers = #tpu.dot_dimension_numbers<[1], [0], [0], [1], [0, 0, 1, 1], [], []>} : vector<32x128xbf16>, vector<128x128xbf16>, vector<32x128xf32> -> vector<32x128xf32>
    %79 = arith.addf %71, %78 : vector<32x128xf32>
    %c9 = arith.constant 9 : index
    %c0_69 = arith.constant 0 : index
    %c0_70 = arith.constant 0 : index
    %80 = vector.load %arg2[%c9, %c0_69, %c0_70] : memref<16x32x128xbf16, #tpu.memory_space<vmem>>, vector<1x32x128xbf16>
    %81 = vector.shape_cast %80 : vector<1x32x128xbf16> to vector<32x128xbf16>
    %cst_71 = arith.constant dense<0.000000e+00> : vector<32x128xf32>
    %82 = tpu.matmul %81, %8, %cst_71 {dimension_numbers = #tpu.dot_dimension_numbers<[1], [0], [0], [1], [0, 0, 1, 1], [], []>} : vector<32x128xbf16>, vector<128x128xbf16>, vector<32x128xf32> -> vector<32x128xf32>
    %83 = arith.truncf %82 : vector<32x128xf32> to vector<32x128xbf16>
    %c9_72 = arith.constant 9 : index
    %c0_73 = arith.constant 0 : index
    %c0_74 = arith.constant 0 : index
    %84 = vector.load %arg3[%c9_72, %c0_73, %c0_74] : memref<16x128x128xbf16, #tpu.memory_space<vmem>>, vector<1x128x128xbf16>
    %85 = vector.shape_cast %84 : vector<1x128x128xbf16> to vector<128x128xbf16>
    %cst_75 = arith.constant dense<0.000000e+00> : vector<32x128xf32>
    %86 = tpu.matmul %83, %85, %cst_75 {dimension_numbers = #tpu.dot_dimension_numbers<[1], [0], [0], [1], [0, 0, 1, 1], [], []>} : vector<32x128xbf16>, vector<128x128xbf16>, vector<32x128xf32> -> vector<32x128xf32>
    %87 = arith.addf %79, %86 : vector<32x128xf32>
    %c10 = arith.constant 10 : index
    %c0_76 = arith.constant 0 : index
    %c0_77 = arith.constant 0 : index
    %88 = vector.load %arg2[%c10, %c0_76, %c0_77] : memref<16x32x128xbf16, #tpu.memory_space<vmem>>, vector<1x32x128xbf16>
    %89 = vector.shape_cast %88 : vector<1x32x128xbf16> to vector<32x128xbf16>
    %cst_78 = arith.constant dense<0.000000e+00> : vector<32x128xf32>
    %90 = tpu.matmul %89, %8, %cst_78 {dimension_numbers = #tpu.dot_dimension_numbers<[1], [0], [0], [1], [0, 0, 1, 1], [], []>} : vector<32x128xbf16>, vector<128x128xbf16>, vector<32x128xf32> -> vector<32x128xf32>
    %91 = arith.truncf %90 : vector<32x128xf32> to vector<32x128xbf16>
    %c10_79 = arith.constant 10 : index
    %c0_80 = arith.constant 0 : index
    %c0_81 = arith.constant 0 : index
    %92 = vector.load %arg3[%c10_79, %c0_80, %c0_81] : memref<16x128x128xbf16, #tpu.memory_space<vmem>>, vector<1x128x128xbf16>
    %93 = vector.shape_cast %92 : vector<1x128x128xbf16> to vector<128x128xbf16>
    %cst_82 = arith.constant dense<0.000000e+00> : vector<32x128xf32>
    %94 = tpu.matmul %91, %93, %cst_82 {dimension_numbers = #tpu.dot_dimension_numbers<[1], [0], [0], [1], [0, 0, 1, 1], [], []>} : vector<32x128xbf16>, vector<128x128xbf16>, vector<32x128xf32> -> vector<32x128xf32>
    %95 = arith.addf %87, %94 : vector<32x128xf32>
    %c11 = arith.constant 11 : index
    %c0_83 = arith.constant 0 : index
    %c0_84 = arith.constant 0 : index
    %96 = vector.load %arg2[%c11, %c0_83, %c0_84] : memref<16x32x128xbf16, #tpu.memory_space<vmem>>, vector<1x32x128xbf16>
    %97 = vector.shape_cast %96 : vector<1x32x128xbf16> to vector<32x128xbf16>
    %cst_85 = arith.constant dense<0.000000e+00> : vector<32x128xf32>
    %98 = tpu.matmul %97, %8, %cst_85 {dimension_numbers = #tpu.dot_dimension_numbers<[1], [0], [0], [1], [0, 0, 1, 1], [], []>} : vector<32x128xbf16>, vector<128x128xbf16>, vector<32x128xf32> -> vector<32x128xf32>
    %99 = arith.truncf %98 : vector<32x128xf32> to vector<32x128xbf16>
    %c11_86 = arith.constant 11 : index
    %c0_87 = arith.constant 0 : index
    %c0_88 = arith.constant 0 : index
    %100 = vector.load %arg3[%c11_86, %c0_87, %c0_88] : memref<16x128x128xbf16, #tpu.memory_space<vmem>>, vector<1x128x128xbf16>
    %101 = vector.shape_cast %100 : vector<1x128x128xbf16> to vector<128x128xbf16>
    %cst_89 = arith.constant dense<0.000000e+00> : vector<32x128xf32>
    %102 = tpu.matmul %99, %101, %cst_89 {dimension_numbers = #tpu.dot_dimension_numbers<[1], [0], [0], [1], [0, 0, 1, 1], [], []>} : vector<32x128xbf16>, vector<128x128xbf16>, vector<32x128xf32> -> vector<32x128xf32>
    %103 = arith.addf %95, %102 : vector<32x128xf32>
    %c12 = arith.constant 12 : index
    %c0_90 = arith.constant 0 : index
    %c0_91 = arith.constant 0 : index
    %104 = vector.load %arg2[%c12, %c0_90, %c0_91] : memref<16x32x128xbf16, #tpu.memory_space<vmem>>, vector<1x32x128xbf16>
    %105 = vector.shape_cast %104 : vector<1x32x128xbf16> to vector<32x128xbf16>
    %cst_92 = arith.constant dense<0.000000e+00> : vector<32x128xf32>
    %106 = tpu.matmul %105, %8, %cst_92 {dimension_numbers = #tpu.dot_dimension_numbers<[1], [0], [0], [1], [0, 0, 1, 1], [], []>} : vector<32x128xbf16>, vector<128x128xbf16>, vector<32x128xf32> -> vector<32x128xf32>
    %107 = arith.truncf %106 : vector<32x128xf32> to vector<32x128xbf16>
    %c12_93 = arith.constant 12 : index
    %c0_94 = arith.constant 0 : index
    %c0_95 = arith.constant 0 : index
    %108 = vector.load %arg3[%c12_93, %c0_94, %c0_95] : memref<16x128x128xbf16, #tpu.memory_space<vmem>>, vector<1x128x128xbf16>
    %109 = vector.shape_cast %108 : vector<1x128x128xbf16> to vector<128x128xbf16>
    %cst_96 = arith.constant dense<0.000000e+00> : vector<32x128xf32>
    %110 = tpu.matmul %107, %109, %cst_96 {dimension_numbers = #tpu.dot_dimension_numbers<[1], [0], [0], [1], [0, 0, 1, 1], [], []>} : vector<32x128xbf16>, vector<128x128xbf16>, vector<32x128xf32> -> vector<32x128xf32>
    %111 = arith.addf %103, %110 : vector<32x128xf32>
    %c13 = arith.constant 13 : index
    %c0_97 = arith.constant 0 : index
    %c0_98 = arith.constant 0 : index
    %112 = vector.load %arg2[%c13, %c0_97, %c0_98] : memref<16x32x128xbf16, #tpu.memory_space<vmem>>, vector<1x32x128xbf16>
    %113 = vector.shape_cast %112 : vector<1x32x128xbf16> to vector<32x128xbf16>
    %cst_99 = arith.constant dense<0.000000e+00> : vector<32x128xf32>
    %114 = tpu.matmul %113, %8, %cst_99 {dimension_numbers = #tpu.dot_dimension_numbers<[1], [0], [0], [1], [0, 0, 1, 1], [], []>} : vector<32x128xbf16>, vector<128x128xbf16>, vector<32x128xf32> -> vector<32x128xf32>
    %115 = arith.truncf %114 : vector<32x128xf32> to vector<32x128xbf16>
    %c13_100 = arith.constant 13 : index
    %c0_101 = arith.constant 0 : index
    %c0_102 = arith.constant 0 : index
    %116 = vector.load %arg3[%c13_100, %c0_101, %c0_102] : memref<16x128x128xbf16, #tpu.memory_space<vmem>>, vector<1x128x128xbf16>
    %117 = vector.shape_cast %116 : vector<1x128x128xbf16> to vector<128x128xbf16>
    %cst_103 = arith.constant dense<0.000000e+00> : vector<32x128xf32>
    %118 = tpu.matmul %115, %117, %cst_103 {dimension_numbers = #tpu.dot_dimension_numbers<[1], [0], [0], [1], [0, 0, 1, 1], [], []>} : vector<32x128xbf16>, vector<128x128xbf16>, vector<32x128xf32> -> vector<32x128xf32>
    %119 = arith.addf %111, %118 : vector<32x128xf32>
    %c14 = arith.constant 14 : index
    %c0_104 = arith.constant 0 : index
    %c0_105 = arith.constant 0 : index
    %120 = vector.load %arg2[%c14, %c0_104, %c0_105] : memref<16x32x128xbf16, #tpu.memory_space<vmem>>, vector<1x32x128xbf16>
    %121 = vector.shape_cast %120 : vector<1x32x128xbf16> to vector<32x128xbf16>
    %cst_106 = arith.constant dense<0.000000e+00> : vector<32x128xf32>
    %122 = tpu.matmul %121, %8, %cst_106 {dimension_numbers = #tpu.dot_dimension_numbers<[1], [0], [0], [1], [0, 0, 1, 1], [], []>} : vector<32x128xbf16>, vector<128x128xbf16>, vector<32x128xf32> -> vector<32x128xf32>
    %123 = arith.truncf %122 : vector<32x128xf32> to vector<32x128xbf16>
    %c14_107 = arith.constant 14 : index
    %c0_108 = arith.constant 0 : index
    %c0_109 = arith.constant 0 : index
    %124 = vector.load %arg3[%c14_107, %c0_108, %c0_109] : memref<16x128x128xbf16, #tpu.memory_space<vmem>>, vector<1x128x128xbf16>
    %125 = vector.shape_cast %124 : vector<1x128x128xbf16> to vector<128x128xbf16>
    %cst_110 = arith.constant dense<0.000000e+00> : vector<32x128xf32>
    %126 = tpu.matmul %123, %125, %cst_110 {dimension_numbers = #tpu.dot_dimension_numbers<[1], [0], [0], [1], [0, 0, 1, 1], [], []>} : vector<32x128xbf16>, vector<128x128xbf16>, vector<32x128xf32> -> vector<32x128xf32>
    %127 = arith.addf %119, %126 : vector<32x128xf32>
    %c15 = arith.constant 15 : index
    %c0_111 = arith.constant 0 : index
    %c0_112 = arith.constant 0 : index
    %128 = vector.load %arg2[%c15, %c0_111, %c0_112] : memref<16x32x128xbf16, #tpu.memory_space<vmem>>, vector<1x32x128xbf16>
    %129 = vector.shape_cast %128 : vector<1x32x128xbf16> to vector<32x128xbf16>
    %cst_113 = arith.constant dense<0.000000e+00> : vector<32x128xf32>
    %130 = tpu.matmul %129, %8, %cst_113 {dimension_numbers = #tpu.dot_dimension_numbers<[1], [0], [0], [1], [0, 0, 1, 1], [], []>} : vector<32x128xbf16>, vector<128x128xbf16>, vector<32x128xf32> -> vector<32x128xf32>
    %131 = arith.truncf %130 : vector<32x128xf32> to vector<32x128xbf16>
    %c15_114 = arith.constant 15 : index
    %c0_115 = arith.constant 0 : index
    %c0_116 = arith.constant 0 : index
    %132 = vector.load %arg3[%c15_114, %c0_115, %c0_116] : memref<16x128x128xbf16, #tpu.memory_space<vmem>>, vector<1x128x128xbf16>
    %133 = vector.shape_cast %132 : vector<1x128x128xbf16> to vector<128x128xbf16>
    %cst_117 = arith.constant dense<0.000000e+00> : vector<32x128xf32>
    %134 = tpu.matmul %131, %133, %cst_117 {dimension_numbers = #tpu.dot_dimension_numbers<[1], [0], [0], [1], [0, 0, 1, 1], [], []>} : vector<32x128xbf16>, vector<128x128xbf16>, vector<32x128xf32> -> vector<32x128xf32>
    %135 = arith.addf %127, %134 : vector<32x128xf32>
    %c0_118 = arith.constant 0 : index
    %c0_119 = arith.constant 0 : index
    %136 = vector.load %arg4[%c0_118, %c0_119] : memref<1x128xf32, #tpu.memory_space<vmem>>, vector<1x128xf32>
    %c0_120 = arith.constant 0 : index
    %c0_121 = arith.constant 0 : index
    %137 = vector.load %arg5[%c0_120, %c0_121] : memref<1x128xf32, #tpu.memory_space<vmem>>, vector<1x128xf32>
    %cst_122 = arith.constant dense<0.000000e+00> : vector<128xf32>
    %138 = vector.multi_reduction <add>, %135, %cst_122 [0] : vector<32x128xf32> to vector<128xf32>
    %139 = vector.shape_cast %138 : vector<128xf32> to vector<1x128xf32>
    %cst_123 = arith.constant 3.200000e+01 : f32
    %140 = vector.broadcast %cst_123 : f32 to vector<1x128xf32>
    %141 = arith.divf %139, %140 : vector<1x128xf32>
    %142 = vector.broadcast %141 : vector<1x128xf32> to vector<32x128xf32>
    %143 = arith.subf %135, %142 : vector<32x128xf32>
    %144 = arith.mulf %143, %143 : vector<32x128xf32>
    %cst_124 = arith.constant dense<0.000000e+00> : vector<128xf32>
    %145 = vector.multi_reduction <add>, %144, %cst_124 [0] : vector<32x128xf32> to vector<128xf32>
    %146 = vector.shape_cast %145 : vector<128xf32> to vector<1x128xf32>
    %cst_125 = arith.constant 3.200000e+01 : f32
    %147 = vector.broadcast %cst_125 : f32 to vector<1x128xf32>
    %148 = arith.divf %146, %147 : vector<1x128xf32>
    %149 = vector.broadcast %141 : vector<1x128xf32> to vector<32x128xf32>
    %150 = arith.subf %135, %149 : vector<32x128xf32>
    %cst_126 = arith.constant 9.99999974E-6 : f32
    %151 = vector.broadcast %cst_126 : f32 to vector<1x128xf32>
    %152 = arith.addf %148, %151 : vector<1x128xf32>
    %153 = math.rsqrt %152 : vector<1x128xf32>
    %154 = vector.broadcast %153 : vector<1x128xf32> to vector<32x128xf32>
    %155 = arith.mulf %150, %154 : vector<32x128xf32>
    %156 = vector.broadcast %136 : vector<1x128xf32> to vector<32x128xf32>
    %157 = arith.mulf %155, %156 : vector<32x128xf32>
    %158 = vector.broadcast %137 : vector<1x128xf32> to vector<32x128xf32>
    %159 = arith.addf %157, %158 : vector<32x128xf32>
    %cst_127 = arith.constant 0.000000e+00 : f32
    %160 = vector.broadcast %cst_127 : f32 to vector<32x128xf32>
    %161 = arith.cmpf oge, %159, %160 : vector<32x128xf32>
    %cst_128 = arith.constant 2.000000e-01 : f32
    %162 = vector.broadcast %cst_128 : f32 to vector<32x128xf32>
    %163 = arith.mulf %162, %159 : vector<32x128xf32>
    %164 = arith.select %161, %159, %163 : vector<32x128xi1>, vector<32x128xf32>
    %165 = arith.truncf %164 : vector<32x128xf32> to vector<32x128xbf16>
    %c0_129 = arith.constant 0 : index
    %c0_130 = arith.constant 0 : index
    %c0_131 = arith.constant 0 : index
    %166 = vector.load %arg6[%c0_129, %c0_130, %c0_131] : memref<16x8x32xbf16, #tpu.memory_space<vmem>>, vector<1x8x32xbf16>
    %167 = vector.shape_cast %166 : vector<1x8x32xbf16> to vector<8x32xbf16>
    %cst_132 = arith.constant dense<0.000000e+00> : vector<8x128xf32>
    %168 = tpu.matmul %167, %165, %cst_132 {dimension_numbers = #tpu.dot_dimension_numbers<[1], [0], [0], [1], [0, 0, 1, 1], [], []>} : vector<8x32xbf16>, vector<32x128xbf16>, vector<8x128xf32> -> vector<8x128xf32>
    %169 = arith.truncf %168 : vector<8x128xf32> to vector<8x128xbf16>
    %c0_133 = arith.constant 0 : index
    %c0_134 = arith.constant 0 : index
    %c0_135 = arith.constant 0 : index
    %170 = vector.load %arg7[%c0_133, %c0_134, %c0_135] : memref<16x128x128xbf16, #tpu.memory_space<vmem>>, vector<1x128x128xbf16>
    %171 = vector.shape_cast %170 : vector<1x128x128xbf16> to vector<128x128xbf16>
    %cst_136 = arith.constant dense<0.000000e+00> : vector<8x128xf32>
    %172 = tpu.matmul %169, %171, %cst_136 {dimension_numbers = #tpu.dot_dimension_numbers<[1], [0], [0], [1], [0, 0, 1, 1], [], []>} : vector<8x128xbf16>, vector<128x128xbf16>, vector<8x128xf32> -> vector<8x128xf32>
    %c1_137 = arith.constant 1 : index
    %c0_138 = arith.constant 0 : index
    %c0_139 = arith.constant 0 : index
    %173 = vector.load %arg6[%c1_137, %c0_138, %c0_139] : memref<16x8x32xbf16, #tpu.memory_space<vmem>>, vector<1x8x32xbf16>
    %174 = vector.shape_cast %173 : vector<1x8x32xbf16> to vector<8x32xbf16>
    %cst_140 = arith.constant dense<0.000000e+00> : vector<8x128xf32>
    %175 = tpu.matmul %174, %165, %cst_140 {dimension_numbers = #tpu.dot_dimension_numbers<[1], [0], [0], [1], [0, 0, 1, 1], [], []>} : vector<8x32xbf16>, vector<32x128xbf16>, vector<8x128xf32> -> vector<8x128xf32>
    %176 = arith.truncf %175 : vector<8x128xf32> to vector<8x128xbf16>
    %c1_141 = arith.constant 1 : index
    %c0_142 = arith.constant 0 : index
    %c0_143 = arith.constant 0 : index
    %177 = vector.load %arg7[%c1_141, %c0_142, %c0_143] : memref<16x128x128xbf16, #tpu.memory_space<vmem>>, vector<1x128x128xbf16>
    %178 = vector.shape_cast %177 : vector<1x128x128xbf16> to vector<128x128xbf16>
    %cst_144 = arith.constant dense<0.000000e+00> : vector<8x128xf32>
    %179 = tpu.matmul %176, %178, %cst_144 {dimension_numbers = #tpu.dot_dimension_numbers<[1], [0], [0], [1], [0, 0, 1, 1], [], []>} : vector<8x128xbf16>, vector<128x128xbf16>, vector<8x128xf32> -> vector<8x128xf32>
    %180 = arith.addf %172, %179 : vector<8x128xf32>
    %c2_145 = arith.constant 2 : index
    %c0_146 = arith.constant 0 : index
    %c0_147 = arith.constant 0 : index
    %181 = vector.load %arg6[%c2_145, %c0_146, %c0_147] : memref<16x8x32xbf16, #tpu.memory_space<vmem>>, vector<1x8x32xbf16>
    %182 = vector.shape_cast %181 : vector<1x8x32xbf16> to vector<8x32xbf16>
    %cst_148 = arith.constant dense<0.000000e+00> : vector<8x128xf32>
    %183 = tpu.matmul %182, %165, %cst_148 {dimension_numbers = #tpu.dot_dimension_numbers<[1], [0], [0], [1], [0, 0, 1, 1], [], []>} : vector<8x32xbf16>, vector<32x128xbf16>, vector<8x128xf32> -> vector<8x128xf32>
    %184 = arith.truncf %183 : vector<8x128xf32> to vector<8x128xbf16>
    %c2_149 = arith.constant 2 : index
    %c0_150 = arith.constant 0 : index
    %c0_151 = arith.constant 0 : index
    %185 = vector.load %arg7[%c2_149, %c0_150, %c0_151] : memref<16x128x128xbf16, #tpu.memory_space<vmem>>, vector<1x128x128xbf16>
    %186 = vector.shape_cast %185 : vector<1x128x128xbf16> to vector<128x128xbf16>
    %cst_152 = arith.constant dense<0.000000e+00> : vector<8x128xf32>
    %187 = tpu.matmul %184, %186, %cst_152 {dimension_numbers = #tpu.dot_dimension_numbers<[1], [0], [0], [1], [0, 0, 1, 1], [], []>} : vector<8x128xbf16>, vector<128x128xbf16>, vector<8x128xf32> -> vector<8x128xf32>
    %188 = arith.addf %180, %187 : vector<8x128xf32>
    %c3_153 = arith.constant 3 : index
    %c0_154 = arith.constant 0 : index
    %c0_155 = arith.constant 0 : index
    %189 = vector.load %arg6[%c3_153, %c0_154, %c0_155] : memref<16x8x32xbf16, #tpu.memory_space<vmem>>, vector<1x8x32xbf16>
    %190 = vector.shape_cast %189 : vector<1x8x32xbf16> to vector<8x32xbf16>
    %cst_156 = arith.constant dense<0.000000e+00> : vector<8x128xf32>
    %191 = tpu.matmul %190, %165, %cst_156 {dimension_numbers = #tpu.dot_dimension_numbers<[1], [0], [0], [1], [0, 0, 1, 1], [], []>} : vector<8x32xbf16>, vector<32x128xbf16>, vector<8x128xf32> -> vector<8x128xf32>
    %192 = arith.truncf %191 : vector<8x128xf32> to vector<8x128xbf16>
    %c3_157 = arith.constant 3 : index
    %c0_158 = arith.constant 0 : index
    %c0_159 = arith.constant 0 : index
    %193 = vector.load %arg7[%c3_157, %c0_158, %c0_159] : memref<16x128x128xbf16, #tpu.memory_space<vmem>>, vector<1x128x128xbf16>
    %194 = vector.shape_cast %193 : vector<1x128x128xbf16> to vector<128x128xbf16>
    %cst_160 = arith.constant dense<0.000000e+00> : vector<8x128xf32>
    %195 = tpu.matmul %192, %194, %cst_160 {dimension_numbers = #tpu.dot_dimension_numbers<[1], [0], [0], [1], [0, 0, 1, 1], [], []>} : vector<8x128xbf16>, vector<128x128xbf16>, vector<8x128xf32> -> vector<8x128xf32>
    %196 = arith.addf %188, %195 : vector<8x128xf32>
    %c4_161 = arith.constant 4 : index
    %c0_162 = arith.constant 0 : index
    %c0_163 = arith.constant 0 : index
    %197 = vector.load %arg6[%c4_161, %c0_162, %c0_163] : memref<16x8x32xbf16, #tpu.memory_space<vmem>>, vector<1x8x32xbf16>
    %198 = vector.shape_cast %197 : vector<1x8x32xbf16> to vector<8x32xbf16>
    %cst_164 = arith.constant dense<0.000000e+00> : vector<8x128xf32>
    %199 = tpu.matmul %198, %165, %cst_164 {dimension_numbers = #tpu.dot_dimension_numbers<[1], [0], [0], [1], [0, 0, 1, 1], [], []>} : vector<8x32xbf16>, vector<32x128xbf16>, vector<8x128xf32> -> vector<8x128xf32>
    %200 = arith.truncf %199 : vector<8x128xf32> to vector<8x128xbf16>
    %c4_165 = arith.constant 4 : index
    %c0_166 = arith.constant 0 : index
    %c0_167 = arith.constant 0 : index
    %201 = vector.load %arg7[%c4_165, %c0_166, %c0_167] : memref<16x128x128xbf16, #tpu.memory_space<vmem>>, vector<1x128x128xbf16>
    %202 = vector.shape_cast %201 : vector<1x128x128xbf16> to vector<128x128xbf16>
    %cst_168 = arith.constant dense<0.000000e+00> : vector<8x128xf32>
    %203 = tpu.matmul %200, %202, %cst_168 {dimension_numbers = #tpu.dot_dimension_numbers<[1], [0], [0], [1], [0, 0, 1, 1], [], []>} : vector<8x128xbf16>, vector<128x128xbf16>, vector<8x128xf32> -> vector<8x128xf32>
    %204 = arith.addf %196, %203 : vector<8x128xf32>
    %c5_169 = arith.constant 5 : index
    %c0_170 = arith.constant 0 : index
    %c0_171 = arith.constant 0 : index
    %205 = vector.load %arg6[%c5_169, %c0_170, %c0_171] : memref<16x8x32xbf16, #tpu.memory_space<vmem>>, vector<1x8x32xbf16>
    %206 = vector.shape_cast %205 : vector<1x8x32xbf16> to vector<8x32xbf16>
    %cst_172 = arith.constant dense<0.000000e+00> : vector<8x128xf32>
    %207 = tpu.matmul %206, %165, %cst_172 {dimension_numbers = #tpu.dot_dimension_numbers<[1], [0], [0], [1], [0, 0, 1, 1], [], []>} : vector<8x32xbf16>, vector<32x128xbf16>, vector<8x128xf32> -> vector<8x128xf32>
    %208 = arith.truncf %207 : vector<8x128xf32> to vector<8x128xbf16>
    %c5_173 = arith.constant 5 : index
    %c0_174 = arith.constant 0 : index
    %c0_175 = arith.constant 0 : index
    %209 = vector.load %arg7[%c5_173, %c0_174, %c0_175] : memref<16x128x128xbf16, #tpu.memory_space<vmem>>, vector<1x128x128xbf16>
    %210 = vector.shape_cast %209 : vector<1x128x128xbf16> to vector<128x128xbf16>
    %cst_176 = arith.constant dense<0.000000e+00> : vector<8x128xf32>
    %211 = tpu.matmul %208, %210, %cst_176 {dimension_numbers = #tpu.dot_dimension_numbers<[1], [0], [0], [1], [0, 0, 1, 1], [], []>} : vector<8x128xbf16>, vector<128x128xbf16>, vector<8x128xf32> -> vector<8x128xf32>
    %212 = arith.addf %204, %211 : vector<8x128xf32>
    %c6_177 = arith.constant 6 : index
    %c0_178 = arith.constant 0 : index
    %c0_179 = arith.constant 0 : index
    %213 = vector.load %arg6[%c6_177, %c0_178, %c0_179] : memref<16x8x32xbf16, #tpu.memory_space<vmem>>, vector<1x8x32xbf16>
    %214 = vector.shape_cast %213 : vector<1x8x32xbf16> to vector<8x32xbf16>
    %cst_180 = arith.constant dense<0.000000e+00> : vector<8x128xf32>
    %215 = tpu.matmul %214, %165, %cst_180 {dimension_numbers = #tpu.dot_dimension_numbers<[1], [0], [0], [1], [0, 0, 1, 1], [], []>} : vector<8x32xbf16>, vector<32x128xbf16>, vector<8x128xf32> -> vector<8x128xf32>
    %216 = arith.truncf %215 : vector<8x128xf32> to vector<8x128xbf16>
    %c6_181 = arith.constant 6 : index
    %c0_182 = arith.constant 0 : index
    %c0_183 = arith.constant 0 : index
    %217 = vector.load %arg7[%c6_181, %c0_182, %c0_183] : memref<16x128x128xbf16, #tpu.memory_space<vmem>>, vector<1x128x128xbf16>
    %218 = vector.shape_cast %217 : vector<1x128x128xbf16> to vector<128x128xbf16>
    %cst_184 = arith.constant dense<0.000000e+00> : vector<8x128xf32>
    %219 = tpu.matmul %216, %218, %cst_184 {dimension_numbers = #tpu.dot_dimension_numbers<[1], [0], [0], [1], [0, 0, 1, 1], [], []>} : vector<8x128xbf16>, vector<128x128xbf16>, vector<8x128xf32> -> vector<8x128xf32>
    %220 = arith.addf %212, %219 : vector<8x128xf32>
    %c7_185 = arith.constant 7 : index
    %c0_186 = arith.constant 0 : index
    %c0_187 = arith.constant 0 : index
    %221 = vector.load %arg6[%c7_185, %c0_186, %c0_187] : memref<16x8x32xbf16, #tpu.memory_space<vmem>>, vector<1x8x32xbf16>
    %222 = vector.shape_cast %221 : vector<1x8x32xbf16> to vector<8x32xbf16>
    %cst_188 = arith.constant dense<0.000000e+00> : vector<8x128xf32>
    %223 = tpu.matmul %222, %165, %cst_188 {dimension_numbers = #tpu.dot_dimension_numbers<[1], [0], [0], [1], [0, 0, 1, 1], [], []>} : vector<8x32xbf16>, vector<32x128xbf16>, vector<8x128xf32> -> vector<8x128xf32>
    %224 = arith.truncf %223 : vector<8x128xf32> to vector<8x128xbf16>
    %c7_189 = arith.constant 7 : index
    %c0_190 = arith.constant 0 : index
    %c0_191 = arith.constant 0 : index
    %225 = vector.load %arg7[%c7_189, %c0_190, %c0_191] : memref<16x128x128xbf16, #tpu.memory_space<vmem>>, vector<1x128x128xbf16>
    %226 = vector.shape_cast %225 : vector<1x128x128xbf16> to vector<128x128xbf16>
    %cst_192 = arith.constant dense<0.000000e+00> : vector<8x128xf32>
    %227 = tpu.matmul %224, %226, %cst_192 {dimension_numbers = #tpu.dot_dimension_numbers<[1], [0], [0], [1], [0, 0, 1, 1], [], []>} : vector<8x128xbf16>, vector<128x128xbf16>, vector<8x128xf32> -> vector<8x128xf32>
    %228 = arith.addf %220, %227 : vector<8x128xf32>
    %c8_193 = arith.constant 8 : index
    %c0_194 = arith.constant 0 : index
    %c0_195 = arith.constant 0 : index
    %229 = vector.load %arg6[%c8_193, %c0_194, %c0_195] : memref<16x8x32xbf16, #tpu.memory_space<vmem>>, vector<1x8x32xbf16>
    %230 = vector.shape_cast %229 : vector<1x8x32xbf16> to vector<8x32xbf16>
    %cst_196 = arith.constant dense<0.000000e+00> : vector<8x128xf32>
    %231 = tpu.matmul %230, %165, %cst_196 {dimension_numbers = #tpu.dot_dimension_numbers<[1], [0], [0], [1], [0, 0, 1, 1], [], []>} : vector<8x32xbf16>, vector<32x128xbf16>, vector<8x128xf32> -> vector<8x128xf32>
    %232 = arith.truncf %231 : vector<8x128xf32> to vector<8x128xbf16>
    %c8_197 = arith.constant 8 : index
    %c0_198 = arith.constant 0 : index
    %c0_199 = arith.constant 0 : index
    %233 = vector.load %arg7[%c8_197, %c0_198, %c0_199] : memref<16x128x128xbf16, #tpu.memory_space<vmem>>, vector<1x128x128xbf16>
    %234 = vector.shape_cast %233 : vector<1x128x128xbf16> to vector<128x128xbf16>
    %cst_200 = arith.constant dense<0.000000e+00> : vector<8x128xf32>
    %235 = tpu.matmul %232, %234, %cst_200 {dimension_numbers = #tpu.dot_dimension_numbers<[1], [0], [0], [1], [0, 0, 1, 1], [], []>} : vector<8x128xbf16>, vector<128x128xbf16>, vector<8x128xf32> -> vector<8x128xf32>
    %236 = arith.addf %228, %235 : vector<8x128xf32>
    %c9_201 = arith.constant 9 : index
    %c0_202 = arith.constant 0 : index
    %c0_203 = arith.constant 0 : index
    %237 = vector.load %arg6[%c9_201, %c0_202, %c0_203] : memref<16x8x32xbf16, #tpu.memory_space<vmem>>, vector<1x8x32xbf16>
    %238 = vector.shape_cast %237 : vector<1x8x32xbf16> to vector<8x32xbf16>
    %cst_204 = arith.constant dense<0.000000e+00> : vector<8x128xf32>
    %239 = tpu.matmul %238, %165, %cst_204 {dimension_numbers = #tpu.dot_dimension_numbers<[1], [0], [0], [1], [0, 0, 1, 1], [], []>} : vector<8x32xbf16>, vector<32x128xbf16>, vector<8x128xf32> -> vector<8x128xf32>
    %240 = arith.truncf %239 : vector<8x128xf32> to vector<8x128xbf16>
    %c9_205 = arith.constant 9 : index
    %c0_206 = arith.constant 0 : index
    %c0_207 = arith.constant 0 : index
    %241 = vector.load %arg7[%c9_205, %c0_206, %c0_207] : memref<16x128x128xbf16, #tpu.memory_space<vmem>>, vector<1x128x128xbf16>
    %242 = vector.shape_cast %241 : vector<1x128x128xbf16> to vector<128x128xbf16>
    %cst_208 = arith.constant dense<0.000000e+00> : vector<8x128xf32>
    %243 = tpu.matmul %240, %242, %cst_208 {dimension_numbers = #tpu.dot_dimension_numbers<[1], [0], [0], [1], [0, 0, 1, 1], [], []>} : vector<8x128xbf16>, vector<128x128xbf16>, vector<8x128xf32> -> vector<8x128xf32>
    %244 = arith.addf %236, %243 : vector<8x128xf32>
    %c10_209 = arith.constant 10 : index
    %c0_210 = arith.constant 0 : index
    %c0_211 = arith.constant 0 : index
    %245 = vector.load %arg6[%c10_209, %c0_210, %c0_211] : memref<16x8x32xbf16, #tpu.memory_space<vmem>>, vector<1x8x32xbf16>
    %246 = vector.shape_cast %245 : vector<1x8x32xbf16> to vector<8x32xbf16>
    %cst_212 = arith.constant dense<0.000000e+00> : vector<8x128xf32>
    %247 = tpu.matmul %246, %165, %cst_212 {dimension_numbers = #tpu.dot_dimension_numbers<[1], [0], [0], [1], [0, 0, 1, 1], [], []>} : vector<8x32xbf16>, vector<32x128xbf16>, vector<8x128xf32> -> vector<8x128xf32>
    %248 = arith.truncf %247 : vector<8x128xf32> to vector<8x128xbf16>
    %c10_213 = arith.constant 10 : index
    %c0_214 = arith.constant 0 : index
    %c0_215 = arith.constant 0 : index
    %249 = vector.load %arg7[%c10_213, %c0_214, %c0_215] : memref<16x128x128xbf16, #tpu.memory_space<vmem>>, vector<1x128x128xbf16>
    %250 = vector.shape_cast %249 : vector<1x128x128xbf16> to vector<128x128xbf16>
    %cst_216 = arith.constant dense<0.000000e+00> : vector<8x128xf32>
    %251 = tpu.matmul %248, %250, %cst_216 {dimension_numbers = #tpu.dot_dimension_numbers<[1], [0], [0], [1], [0, 0, 1, 1], [], []>} : vector<8x128xbf16>, vector<128x128xbf16>, vector<8x128xf32> -> vector<8x128xf32>
    %252 = arith.addf %244, %251 : vector<8x128xf32>
    %c11_217 = arith.constant 11 : index
    %c0_218 = arith.constant 0 : index
    %c0_219 = arith.constant 0 : index
    %253 = vector.load %arg6[%c11_217, %c0_218, %c0_219] : memref<16x8x32xbf16, #tpu.memory_space<vmem>>, vector<1x8x32xbf16>
    %254 = vector.shape_cast %253 : vector<1x8x32xbf16> to vector<8x32xbf16>
    %cst_220 = arith.constant dense<0.000000e+00> : vector<8x128xf32>
    %255 = tpu.matmul %254, %165, %cst_220 {dimension_numbers = #tpu.dot_dimension_numbers<[1], [0], [0], [1], [0, 0, 1, 1], [], []>} : vector<8x32xbf16>, vector<32x128xbf16>, vector<8x128xf32> -> vector<8x128xf32>
    %256 = arith.truncf %255 : vector<8x128xf32> to vector<8x128xbf16>
    %c11_221 = arith.constant 11 : index
    %c0_222 = arith.constant 0 : index
    %c0_223 = arith.constant 0 : index
    %257 = vector.load %arg7[%c11_221, %c0_222, %c0_223] : memref<16x128x128xbf16, #tpu.memory_space<vmem>>, vector<1x128x128xbf16>
    %258 = vector.shape_cast %257 : vector<1x128x128xbf16> to vector<128x128xbf16>
    %cst_224 = arith.constant dense<0.000000e+00> : vector<8x128xf32>
    %259 = tpu.matmul %256, %258, %cst_224 {dimension_numbers = #tpu.dot_dimension_numbers<[1], [0], [0], [1], [0, 0, 1, 1], [], []>} : vector<8x128xbf16>, vector<128x128xbf16>, vector<8x128xf32> -> vector<8x128xf32>
    %260 = arith.addf %252, %259 : vector<8x128xf32>
    %c12_225 = arith.constant 12 : index
    %c0_226 = arith.constant 0 : index
    %c0_227 = arith.constant 0 : index
    %261 = vector.load %arg6[%c12_225, %c0_226, %c0_227] : memref<16x8x32xbf16, #tpu.memory_space<vmem>>, vector<1x8x32xbf16>
    %262 = vector.shape_cast %261 : vector<1x8x32xbf16> to vector<8x32xbf16>
    %cst_228 = arith.constant dense<0.000000e+00> : vector<8x128xf32>
    %263 = tpu.matmul %262, %165, %cst_228 {dimension_numbers = #tpu.dot_dimension_numbers<[1], [0], [0], [1], [0, 0, 1, 1], [], []>} : vector<8x32xbf16>, vector<32x128xbf16>, vector<8x128xf32> -> vector<8x128xf32>
    %264 = arith.truncf %263 : vector<8x128xf32> to vector<8x128xbf16>
    %c12_229 = arith.constant 12 : index
    %c0_230 = arith.constant 0 : index
    %c0_231 = arith.constant 0 : index
    %265 = vector.load %arg7[%c12_229, %c0_230, %c0_231] : memref<16x128x128xbf16, #tpu.memory_space<vmem>>, vector<1x128x128xbf16>
    %266 = vector.shape_cast %265 : vector<1x128x128xbf16> to vector<128x128xbf16>
    %cst_232 = arith.constant dense<0.000000e+00> : vector<8x128xf32>
    %267 = tpu.matmul %264, %266, %cst_232 {dimension_numbers = #tpu.dot_dimension_numbers<[1], [0], [0], [1], [0, 0, 1, 1], [], []>} : vector<8x128xbf16>, vector<128x128xbf16>, vector<8x128xf32> -> vector<8x128xf32>
    %268 = arith.addf %260, %267 : vector<8x128xf32>
    %c13_233 = arith.constant 13 : index
    %c0_234 = arith.constant 0 : index
    %c0_235 = arith.constant 0 : index
    %269 = vector.load %arg6[%c13_233, %c0_234, %c0_235] : memref<16x8x32xbf16, #tpu.memory_space<vmem>>, vector<1x8x32xbf16>
    %270 = vector.shape_cast %269 : vector<1x8x32xbf16> to vector<8x32xbf16>
    %cst_236 = arith.constant dense<0.000000e+00> : vector<8x128xf32>
    %271 = tpu.matmul %270, %165, %cst_236 {dimension_numbers = #tpu.dot_dimension_numbers<[1], [0], [0], [1], [0, 0, 1, 1], [], []>} : vector<8x32xbf16>, vector<32x128xbf16>, vector<8x128xf32> -> vector<8x128xf32>
    %272 = arith.truncf %271 : vector<8x128xf32> to vector<8x128xbf16>
    %c13_237 = arith.constant 13 : index
    %c0_238 = arith.constant 0 : index
    %c0_239 = arith.constant 0 : index
    %273 = vector.load %arg7[%c13_237, %c0_238, %c0_239] : memref<16x128x128xbf16, #tpu.memory_space<vmem>>, vector<1x128x128xbf16>
    %274 = vector.shape_cast %273 : vector<1x128x128xbf16> to vector<128x128xbf16>
    %cst_240 = arith.constant dense<0.000000e+00> : vector<8x128xf32>
    %275 = tpu.matmul %272, %274, %cst_240 {dimension_numbers = #tpu.dot_dimension_numbers<[1], [0], [0], [1], [0, 0, 1, 1], [], []>} : vector<8x128xbf16>, vector<128x128xbf16>, vector<8x128xf32> -> vector<8x128xf32>
    %276 = arith.addf %268, %275 : vector<8x128xf32>
    %c14_241 = arith.constant 14 : index
    %c0_242 = arith.constant 0 : index
    %c0_243 = arith.constant 0 : index
    %277 = vector.load %arg6[%c14_241, %c0_242, %c0_243] : memref<16x8x32xbf16, #tpu.memory_space<vmem>>, vector<1x8x32xbf16>
    %278 = vector.shape_cast %277 : vector<1x8x32xbf16> to vector<8x32xbf16>
    %cst_244 = arith.constant dense<0.000000e+00> : vector<8x128xf32>
    %279 = tpu.matmul %278, %165, %cst_244 {dimension_numbers = #tpu.dot_dimension_numbers<[1], [0], [0], [1], [0, 0, 1, 1], [], []>} : vector<8x32xbf16>, vector<32x128xbf16>, vector<8x128xf32> -> vector<8x128xf32>
    %280 = arith.truncf %279 : vector<8x128xf32> to vector<8x128xbf16>
    %c14_245 = arith.constant 14 : index
    %c0_246 = arith.constant 0 : index
    %c0_247 = arith.constant 0 : index
    %281 = vector.load %arg7[%c14_245, %c0_246, %c0_247] : memref<16x128x128xbf16, #tpu.memory_space<vmem>>, vector<1x128x128xbf16>
    %282 = vector.shape_cast %281 : vector<1x128x128xbf16> to vector<128x128xbf16>
    %cst_248 = arith.constant dense<0.000000e+00> : vector<8x128xf32>
    %283 = tpu.matmul %280, %282, %cst_248 {dimension_numbers = #tpu.dot_dimension_numbers<[1], [0], [0], [1], [0, 0, 1, 1], [], []>} : vector<8x128xbf16>, vector<128x128xbf16>, vector<8x128xf32> -> vector<8x128xf32>
    %284 = arith.addf %276, %283 : vector<8x128xf32>
    %c15_249 = arith.constant 15 : index
    %c0_250 = arith.constant 0 : index
    %c0_251 = arith.constant 0 : index
    %285 = vector.load %arg6[%c15_249, %c0_250, %c0_251] : memref<16x8x32xbf16, #tpu.memory_space<vmem>>, vector<1x8x32xbf16>
    %286 = vector.shape_cast %285 : vector<1x8x32xbf16> to vector<8x32xbf16>
    %cst_252 = arith.constant dense<0.000000e+00> : vector<8x128xf32>
    %287 = tpu.matmul %286, %165, %cst_252 {dimension_numbers = #tpu.dot_dimension_numbers<[1], [0], [0], [1], [0, 0, 1, 1], [], []>} : vector<8x32xbf16>, vector<32x128xbf16>, vector<8x128xf32> -> vector<8x128xf32>
    %288 = arith.truncf %287 : vector<8x128xf32> to vector<8x128xbf16>
    %c15_253 = arith.constant 15 : index
    %c0_254 = arith.constant 0 : index
    %c0_255 = arith.constant 0 : index
    %289 = vector.load %arg7[%c15_253, %c0_254, %c0_255] : memref<16x128x128xbf16, #tpu.memory_space<vmem>>, vector<1x128x128xbf16>
    %290 = vector.shape_cast %289 : vector<1x128x128xbf16> to vector<128x128xbf16>
    %cst_256 = arith.constant dense<0.000000e+00> : vector<8x128xf32>
    %291 = tpu.matmul %288, %290, %cst_256 {dimension_numbers = #tpu.dot_dimension_numbers<[1], [0], [0], [1], [0, 0, 1, 1], [], []>} : vector<8x128xbf16>, vector<128x128xbf16>, vector<8x128xf32> -> vector<8x128xf32>
    %292 = arith.addf %284, %291 : vector<8x128xf32>
    %c0_257 = arith.constant 0 : index
    %c0_258 = arith.constant 0 : index
    %293 = vector.load %arg8[%c0_257, %c0_258] : memref<1x128xf32, #tpu.memory_space<vmem>>, vector<1x128xf32>
    %294 = vector.broadcast %293 : vector<1x128xf32> to vector<8x128xf32>
    %295 = arith.addf %292, %294 : vector<8x128xf32>
    %c0_259 = arith.constant 0 : index
    %c0_260 = arith.constant 0 : index
    %296 = vector.load %arg9[%c0_259, %c0_260] : memref<8x128xf32, #tpu.memory_space<vmem>>, vector<8x128xf32>
    tpu.vector_store %arg9[%c0_259, %c0_260], %295 {strides = array<i32>} : memref<8x128xf32, #tpu.memory_space<vmem>>, vector<8x128xf32>,
    return
  }
}

</mosaic_0001>

<bundles_post_ra>
// kernel: _lambda_.1
= control target key start
LH: loop header
LB: loop body
LE: loop exit
PB: predicated region body
PF: predicated region fallthrough
CT: control target
= control target key end

     0   :  { %s10302_s1 = inlined_call_operand.vmem [shape: bf16[128,128], index: 1, kind: input, shape index: {}]   ;;  %s10303_s0 = inlined_call_operand.vmem [shape: bf16[128,128], index: 0, kind: input, shape index: {}]   ;;  %s10304_s2 = inlined_call_operand.vmem [shape: bf16[16,32,128], index: 2, kind: input, shape index: {}]   ;;  %s10305_s3 = inlined_call_operand.vmem [shape: bf16[16,128,128], index: 3, kind: input, shape index: {}]   ;;  %s10306_s7 = inlined_call_operand.vmem [shape: bf16[16,128,128], index: 7, kind: input, shape index: {}]   ;;  %s10307_s4 = inlined_call_operand.vmem [shape: f32[1,128], index: 4, kind: input, shape index: {}]   ;;  %s10308_s5 = inlined_call_operand.vmem [shape: f32[1,128], index: 5, kind: input, shape index: {}]   ;;  %s10309_s6 = inlined_call_operand.vmem [shape: bf16[16,8,32], index: 6, kind: input, shape index: {}]   ;;  %s10310_s8 = inlined_call_operand.vmem [shape: f32[1,128], index: 8, kind: input, shape index: {}]   ;;  %s10311_s9 = inlined_call_operand.vmem [shape: f32[8,128], index: 9, kind: output, shape index: {}]  }
   0x1   :  { %v8381_v0 = vld [vmem:[%s10302_s1] sm:$0xff]   ;;  %v8382_v1 = vld [vmem:[%s10302_s1 + $0x8] sm:$0xff]   ;;  %v8383_v2 = vld [vmem:[%s10302_s1 + $0x10] sm:$0xff]  }
   0x2   :  { %7199 = vmatprep.subr.bf16.mxu0 %v8381_v0  ;;  %v8384_v3 = vld [vmem:[%s10302_s1 + $0x18] sm:$0xff]   ;;  %v8389_v4 = vld [vmem:[%s10303_s0] sm:$0xff]   ;;  %v8386_v6 = vld [vmem:[%s10302_s1 + $0x28] sm:$0xff]  }
   0x3   :  { %7200 = vmatpush3.bf16.msra.mxu0 %v8381_v0  ;;  %7215 = vmatprep.mubr.bf16.mxu0 %v8389_v4  ;;  %v8385_v5 = vld [vmem:[%s10302_s1 + $0x20] sm:$0xff]   ;;  %v8387_v7 = vld [vmem:[%s10302_s1 + $0x30] sm:$0xff]   ;;  %v8388_v8 = vld [vmem:[%s10302_s1 + $0x38] sm:$0xff]  }
   0x4   :  { %7201 = vmatprep.subr.bf16.mxu0 %v8382_v1  ;;  %v8390_v9 = vld [vmem:[%s10303_s0 + $0x8] sm:$0xff]   ;;  %v8391_v10 = vld [vmem:[%s10303_s0 + $0x10] sm:$0xff]   ;;  %v8392_v11 = vld [vmem:[%s10303_s0 + $0x18] sm:$0xff]  }
   0x5   :  { %v8393_v12 = vld [vmem:[%s10303_s0 + $0x20] sm:$0xff]   ;;  %v8394_v13 = vld [vmem:[%s10303_s0 + $0x28] sm:$0xff]   ;;  %v8395_v14 = vld [vmem:[%s10303_s0 + $0x30] sm:$0xff]  }
   0x6   :  { %v8396_v15 = vld [vmem:[%s10303_s0 + $0x38] sm:$0xff]   ;;  %v8397_v16 = vld [vmem:[%s10304_s2 + $0x10] sm:$0xff]   ;;  %v8399_v17 = vld [vmem:[%s10304_s2] sm:$0xff]  }
   0x7   :  { %7202 = vmatpush3.bf16.msra.mxu0 %v8382_v1  ;;  %7247 = vmatprep.mubr.bf16.mxu1 %v8399_v17  ;;  %v8412_v17 = vld [vmem:[%s10305_s3 + $0x48] sm:$0xff]  }
   0x8   :  { %7203 = vmatprep.subr.bf16.mxu0 %v8383_v2 }
   0xb   :  { %7204 = vmatpush3.bf16.msra.mxu0 %v8383_v2 }
   0xc   :  { %7205 = vmatprep.subr.bf16.mxu0 %v8384_v3 }
   0xf   :  { %7206 = vmatpush3.bf16.msra.mxu0 %v8384_v3 }
  0x10   :  { %7207 = vmatprep.subr.bf16.mxu0 %v8385_v5 }
  0x13   :  { %7208 = vmatpush3.bf16.msra.mxu0 %v8385_v5 }
  0x14   :  { %7209 = vmatprep.subr.bf16.mxu0 %v8386_v6 }
  0x17   :  { %7210 = vmatpush3.bf16.msra.mxu0 %v8386_v6 }
  0x18   :  { %7211 = vmatprep.subr.bf16.mxu0 %v8387_v7 }
  0x1b   :  { %7212 = vmatpush3.bf16.msra.mxu0 %v8387_v7 }
  0x1c   :  { %7213 = vmatprep.subr.bf16.mxu0 %v8388_v8 }
  0x1f   :  { %7214 = vmatpush3.bf16.msra.mxu0 %v8388_v8 }
  0x22   :  { %7216 = vmatmul.mubr.bf16.vlgmr.msra.gmra.mrb[0].mxu0 %v8390_v9 }
  0x23   :  { %7219 = vmatprep.mubr.bf16.mxu0 %v8391_v10  ;;  %v8398_v10 = vld [vmem:[%s10304_s2 + $0x18] sm:$0xff]  }
  0x2a   :  { %7220 = vmatmul.mubr.bf16.gmra.mrb[4].mxu0 %v8392_v11  ;;  %v8400_v11 = vld [vmem:[%s10304_s2 + $0x8] sm:$0xff]  }
  0x2b   :  { %7223 = vmatprep.mubr.bf16.mxu0 %v8393_v12  ;;  %v8401_v12 = vld [vmem:[%s10304_s2 + $0x20] sm:$0xff]  }
  0x32   :  { %7224 = vmatmul.mubr.bf16.gmra.mrb[8].mxu0 %v8394_v13  ;;  %v8402_v13 = vld [vmem:[%s10304_s2 + $0x28] sm:$0xff]  }
  0x33   :  { %7227 = vmatprep.mubr.bf16.mxu0 %v8395_v14  ;;  %v8403_v14 = vld [vmem:[%s10304_s2 + $0x30] sm:$0xff]  }
  0x3a   :  { %7228 = vmatmul.mubr.bf16.gmra.mrb[12].mxu0 %v8396_v15  ;;  %v8411_v15 = vld [vmem:[%s10305_s3 + $0x40] sm:$0xff]  }
  0x3b   :  { %7267 = vmatprep.mubr.bf16.mxu0 %v8397_v16  ;;  %v8404_v16 = vld [vmem:[%s10304_s2 + $0x38] sm:$0xff]  }
  0xf5   :  { %v7217_v18 = vpop.f32.mrb[0].mxu0 }
  0xf6   :  { %v276_v19 = vmul.f32 0.2, %v7217_v18  ;;  %v195_v20 = vpop.f32.mrb[1].mxu0  ;;  %vm260_vm0 = vcmp.ge.f32.partialorder %v7217_v18, 0.0 }
  0xf7   :  { %v274_v21 = vmul.f32 0.2, %v195_v20  ;;  %v7218_v22 = vpop.f32.mrb[2].mxu0  ;;  %vm258_vm1 = vcmp.ge.f32.partialorder %v195_v20, 0.0 }
  0xf8   :  { %vm261_vm2 = vcmp.ge.f32.partialorder %v7218_v22, 0.0  ;;  %v277_v23 = vmul.f32 0.2, %v7218_v22  ;;  %v198_v24 = vpop.f32.mrb[3].mxu0  ;;  %v292_v26 = vsel %vm260_vm0, %v7217_v18, %v276_v19  ;;  %v8405_v18 = vld [vmem:[%s10304_s2 + $0x40] sm:$0xff]   ;;  %v8414_v19 = vld [vmem:[%s10305_s3 + $0x50] sm:$0xff]  }
  0xf9   :  { %vm259_vm3 = vcmp.ge.f32.partialorder %v198_v24, 0.0  ;;  %v275_v25 = vmul.f32 0.2, %v198_v24  ;;  %v290_v28 = vsel %vm258_vm1, %v195_v20, %v274_v21  ;;  %v8416_v20 = vld [vmem:[%s10305_s3 + $0x58] sm:$0xff]   ;;  %v8417_v21 = vld [vmem:[%s10305_s3 + $0x60] sm:$0xff]   ;;  %vm8688_vm0 = vmmov 0  }
  0xfa   :  { %v293_v27 = vsel %vm261_vm2, %v7218_v22, %v277_v23  ;;  %v8418_v22 = vld [vmem:[%s10305_s3 + $0x68] sm:$0xff]   ;;  %v8419_v23 = vld [vmem:[%s10305_s3 + $0x70] sm:$0xff]  }
  0xfb   :  { %v8793_v29 = vpack.c.bf16 %v293_v27, %v292_v26  ;;  %v291_v30 = vsel %vm259_vm3, %v198_v24, %v275_v25  ;;  %v8420_v24 = vld [vmem:[%s10305_s3 + $0x78] sm:$0xff]   ;;  %v8934_v25 = vld [vmem:[%s10305_s3] sm:$0xff]   ;;  %v8406_v26 = vld [vmem:[%s10304_s2 + $0x48] sm:$0xff]  }
  0xfc   :  { %v8795_v31 = vpack.c.bf16 %v291_v30, %v290_v28  ;;  %v8407_v27 = vld [vmem:[%s10304_s2 + $0x50] sm:$0xff]   ;;  %v8408_v28 = vld [vmem:[%s10304_s2 + $0x58] sm:$0xff]   ;;  %v8409_v30 = vld [vmem:[%s10304_s2 + $0x60] sm:$0xff]  }
  0xfd   :  { %v7221_v32 = vpop.f32.mrb[4].mxu0 }
  0xfe   :  { %v280_v33 = vmul.f32 0.2, %v7221_v32  ;;  %v211_v34 = vpop.f32.mrb[5].mxu0  ;;  %7231 = vmatprep.subr.bf16.mxu1 %v8795_v31  ;;  %7251 = vmatprep.subr.bf16.mxu0 %v8795_v31  ;;  %vm264_vm4 = vcmp.ge.f32.partialorder %v7221_v32, 0.0 }
  0xff   :  { %v278_v35 = vmul.f32 0.2, %v211_v34  ;;  %v7222_v36 = vpop.f32.mrb[6].mxu0  ;;  %7232 = vmatpush3.bf16.msra.mxu1 %v8795_v31  ;;  %7252 = vmatpush3.bf16.msra.mxu0 %v8795_v31  ;;  %vm262_vm5 = vcmp.ge.f32.partialorder %v211_v34, 0.0 }
 0x100   :  { %vm265_vm6 = vcmp.ge.f32.partialorder %v7222_v36, 0.0  ;;  %v281_v37 = vmul.f32 0.2, %v7222_v36  ;;  %v214_v38 = vpop.f32.mrb[7].mxu0  ;;  %7233 = vmatprep.subr.bf16.mxu1 %v8793_v29  ;;  %7253 = vmatprep.subr.bf16.mxu0 %v8793_v29  ;;  %v296_v40 = vsel %vm264_vm4, %v7221_v32, %v280_v33  ;;  %v8410_v32 = vld [vmem:[%s10304_s2 + $0x68] sm:$0xff]   ;;  %v8413_v33 = vld [vmem:[%s10304_s2 + $0x70] sm:$0xff]  }
 0x101   :  { %vm263_vm7 = vcmp.ge.f32.partialorder %v214_v38, 0.0  ;;  %v279_v39 = vmul.f32 0.2, %v214_v38  ;;  %v294_v42 = vsel %vm262_vm5, %v211_v34, %v278_v35  ;;  %v8415_v34 = vld [vmem:[%s10304_s2 + $0x78] sm:$0xff]   ;;  %v8423_v35 = vld [vmem:[%s10304_s2 + $0x80] sm:$0xff]   ;;  %vm3352_vm5 = vcmask 261120  }
 0x102   :  { %v297_v41 = vsel %vm265_vm6, %v7222_v36, %v281_v37 }
 0x103   :  { %v8803_v43 = vpack.c.bf16 %v297_v41, %v296_v40  ;;  %v295_v44 = vsel %vm263_vm7, %v214_v38, %v279_v39  ;;  %7234 = vmatpush3.bf16.msra.mxu1 %v8793_v29  ;;  %7254 = vmatpush3.bf16.msra.mxu0 %v8793_v29 }
 0x104   :  { %v8807_v45 = vpack.c.bf16 %v295_v44, %v294_v42 }
 0x105   :  { %v7225_v46 = vpop.f32.mrb[8].mxu0 }
 0x106   :  { %v284_v47 = vmul.f32 0.2, %v7225_v46  ;;  %v227_v48 = vpop.f32.mrb[9].mxu0  ;;  %7235 = vmatprep.subr.bf16.mxu1 %v8807_v45  ;;  %7255 = vmatprep.subr.bf16.mxu0 %v8807_v45  ;;  %vm268_vm8 = vcmp.ge.f32.partialorder %v7225_v46, 0.0 }
 0x107   :  { %v282_v49 = vmul.f32 0.2, %v227_v48  ;;  %v7226_v50 = vpop.f32.mrb[10].mxu0  ;;  %7236 = vmatpush3.bf16.msra.mxu1 %v8807_v45  ;;  %7256 = vmatpush3.bf16.msra.mxu0 %v8807_v45  ;;  %vm266_vm9 = vcmp.ge.f32.partialorder %v227_v48, 0.0 }
 0x108   :  { %vm269_vm10 = vcmp.ge.f32.partialorder %v7226_v50, 0.0  ;;  %v285_v51 = vmul.f32 0.2, %v7226_v50  ;;  %v230_v52 = vpop.f32.mrb[11].mxu0  ;;  %7237 = vmatprep.subr.bf16.mxu1 %v8803_v43  ;;  %7257 = vmatprep.subr.bf16.mxu0 %v8803_v43  ;;  %v300_v54 = vsel %vm268_vm8, %v7225_v46, %v284_v47 }
 0x109   :  { %vm267_vm11 = vcmp.ge.f32.partialorder %v230_v52, 0.0  ;;  %v283_v53 = vmul.f32 0.2, %v230_v52  ;;  %v298_v56 = vsel %vm266_vm9, %v227_v48, %v282_v49 }
 0x10a   :  { %v301_v55 = vsel %vm269_vm10, %v7226_v50, %v285_v51  ;;  %v8422_v50 = vld [vmem:[%s10305_s3 + $0x8] sm:$0xff]   ;;  %v8424_v51 = vld [vmem:[%s10305_s3 + $0x10] sm:$0xff]  }
 0x10b   :  { %v8815_v57 = vpack.c.bf16 %v301_v55, %v300_v54  ;;  %v299_v58 = vsel %vm267_vm11, %v230_v52, %v283_v53  ;;  %7238 = vmatpush3.bf16.msra.mxu1 %v8803_v43  ;;  %7258 = vmatpush3.bf16.msra.mxu0 %v8803_v43  ;;  %v8425_v52 = vld [vmem:[%s10304_s2 + $0x88] sm:$0xff]   ;;  %v8433_v53 = vld [vmem:[%s10304_s2 + $0x90] sm:$0xff]   ;;  %v8426_v54 = vld [vmem:[%s10305_s3 + $0x18] sm:$0xff]  }
 0x10c   :  { %v8819_v59 = vpack.c.bf16 %v299_v58, %v298_v56  ;;  %v8427_v55 = vld [vmem:[%s10305_s3 + $0x20] sm:$0xff]   ;;  %v8428_v56 = vld [vmem:[%s10305_s3 + $0x28] sm:$0xff]   ;;  %v8429_v58 = vld [vmem:[%s10305_s3 + $0x30] sm:$0xff]  }
 0x10d   :  { %v7229_v60 = vpop.f32.mrb[12].mxu0 }
 0x10e   :  { %v288_v61 = vmul.f32 0.2, %v7229_v60  ;;  %v243_v62 = vpop.f32.mrb[13].mxu0  ;;  %7239 = vmatprep.subr.bf16.mxu1 %v8819_v59  ;;  %7259 = vmatprep.subr.bf16.mxu0 %v8819_v59  ;;  %vm272_vm12 = vcmp.ge.f32.partialorder %v7229_v60, 0.0 }
 0x10f   :  { %v286_v63 = vmul.f32 0.2, %v243_v62  ;;  %v7230_v0 = vpop.f32.mrb[14].mxu0  ;;  %7240 = vmatpush3.bf16.msra.mxu1 %v8819_v59  ;;  %7260 = vmatpush3.bf16.msra.mxu0 %v8819_v59  ;;  %vm270_vm13 = vcmp.ge.f32.partialorder %v243_v62, 0.0 }
 0x110   :  { %vm273_vm14 = vcmp.ge.f32.partialorder %v7230_v0, 0.0  ;;  %v289_v1 = vmul.f32 0.2, %v7230_v0  ;;  %v246_v2 = vpop.f32.mrb[15].mxu0  ;;  %7241 = vmatprep.subr.bf16.mxu1 %v8815_v57  ;;  %7261 = vmatprep.subr.bf16.mxu0 %v8815_v57  ;;  %v304_v4 = vsel %vm272_vm12, %v7229_v60, %v288_v61  ;;  %v8430_v60 = vld [vmem:[%s10305_s3 + $0x38] sm:$0xff]  }
 0x111   :  { %vm271_vm15 = vcmp.ge.f32.partialorder %v246_v2, 0.0  ;;  %v287_v3 = vmul.f32 0.2, %v246_v2  ;;  %v302_v6 = vsel %vm270_vm13, %v243_v62, %v286_v63  ;;  %v8431_v62 = vld [vmem:[%s10305_s3 + $0x80] sm:$0xff]  }
 0x112   :  { %v305_v5 = vsel %vm273_vm14, %v7230_v0, %v289_v1 }
 0x113   :  { %v8827_v7 = vpack.c.bf16 %v305_v5, %v304_v4  ;;  %v303_v8 = vsel %vm271_vm15, %v246_v2, %v287_v3  ;;  %7242 = vmatpush3.bf16.msra.mxu1 %v8815_v57  ;;  %7262 = vmatpush3.bf16.msra.mxu0 %v8815_v57  ;;  %v8432_v4 = vld [vmem:[%s10305_s3 + $0x88] sm:$0xff]   ;;  %v8434_v5 = vld [vmem:[%s10305_s3 + $0x90] sm:$0xff]  }
 0x114   :  { %v8831_v9 = vpack.c.bf16 %v303_v8, %v302_v6  ;;  %v8435_v6 = vld [vmem:[%s10304_s2 + $0x98] sm:$0xff]   ;;  %v8443_v8 = vld [vmem:[%s10304_s2 + $0xa0] sm:$0xff]  }
 0x116   :  { %7243 = vmatprep.subr.bf16.mxu1 %v8831_v9  ;;  %7263 = vmatprep.subr.bf16.mxu0 %v8831_v9 }
 0x117   :  { %7244 = vmatpush3.bf16.msra.mxu1 %v8831_v9  ;;  %7264 = vmatpush3.bf16.msra.mxu0 %v8831_v9 }
 0x118   :  { %7245 = vmatprep.subr.bf16.mxu1 %v8827_v7  ;;  %7265 = vmatprep.subr.bf16.mxu0 %v8827_v7 }
 0x11b   :  { %7246 = vmatpush3.bf16.msra.mxu1 %v8827_v7  ;;  %7266 = vmatpush3.bf16.msra.mxu0 %v8827_v7 }
 0x11c   :  { %7311 = vmatprep.subr.bf16.mxu0 %v8795_v31  ;;  %7271 = vmatprep.subr.bf16.mxu1 %v8411_v15 }
 0x11e   :  { %7268 = vmatmul.mubr.bf16.vlgmr.msra.gmra.mrb[16].mxu0 %v8398_v10  ;;  %7248 = vmatmul.mubr.bf16.vlgmr.msra.gmra.mrb[0].mxu1 %v8400_v11  ;;  %v8436_v10 = vld [vmem:[%s10305_s3 + $0x98] sm:$0xff]   ;;  %v8437_v11 = vld [vmem:[%s10305_s3 + $0xa0] sm:$0xff]  }
 0x11f   :  { %7312 = vmatpush3.bf16.msra.mxu0 %v8795_v31  ;;  %7327 = vmatprep.mubr.bf16.mxu0 %v8401_v12  ;;  %v8438_v12 = vld [vmem:[%s10305_s3 + $0xa8] sm:$0xff]  }
 0x120   :  { %7313 = vmatprep.subr.bf16.mxu0 %v8793_v29  ;;  %7272 = vmatpush3.bf16.msra.mxu1 %v8411_v15 }
 0x121   :  { %7273 = vmatprep.subr.bf16.mxu1 %v8412_v17 }
 0x123   :  { %7314 = vmatpush3.bf16.msra.mxu0 %v8793_v29 }
 0x124   :  { %7315 = vmatprep.subr.bf16.mxu0 %v8807_v45  ;;  %7274 = vmatpush3.bf16.msra.mxu1 %v8412_v17 }
 0x125   :  { %7275 = vmatprep.subr.bf16.mxu1 %v8414_v19 }
 0x127   :  { %7316 = vmatpush3.bf16.msra.mxu0 %v8807_v45 }
 0x128   :  { %7317 = vmatprep.subr.bf16.mxu0 %v8803_v43  ;;  %7276 = vmatpush3.bf16.msra.mxu1 %v8414_v19 }
 0x129   :  { %7277 = vmatprep.subr.bf16.mxu1 %v8416_v20 }
 0x12b   :  { %7318 = vmatpush3.bf16.msra.mxu0 %v8803_v43 }
 0x12c   :  { %7319 = vmatprep.subr.bf16.mxu0 %v8819_v59  ;;  %7278 = vmatpush3.bf16.msra.mxu1 %v8416_v20 }
 0x12d   :  { %7279 = vmatprep.subr.bf16.mxu1 %v8417_v21 }
 0x12f   :  { %7320 = vmatpush3.bf16.msra.mxu0 %v8819_v59 }
 0x130   :  { %7321 = vmatprep.subr.bf16.mxu0 %v8815_v57  ;;  %7280 = vmatpush3.bf16.msra.mxu1 %v8417_v21 }
 0x131   :  { %7281 = vmatprep.subr.bf16.mxu1 %v8418_v22 }
 0x133   :  { %7322 = vmatpush3.bf16.msra.mxu0 %v8815_v57 }
 0x134   :  { %7323 = vmatprep.subr.bf16.mxu0 %v8831_v9  ;;  %7282 = vmatpush3.bf16.msra.mxu1 %v8418_v22  ;;  %v8442_v22 = vld [vmem:[%s10305_s3 + $0xc8] sm:$0xff]  }
 0x135   :  { %7283 = vmatprep.subr.bf16.mxu1 %v8419_v23 }
 0x137   :  { %7324 = vmatpush3.bf16.msra.mxu0 %v8831_v9 }
 0x138   :  { %7325 = vmatprep.subr.bf16.mxu0 %v8827_v7  ;;  %7284 = vmatpush3.bf16.msra.mxu1 %v8419_v23  ;;  %v8444_v23 = vld [vmem:[%s10305_s3 + $0xd0] sm:$0xff]  }
 0x139   :  { %7285 = vmatprep.subr.bf16.mxu1 %v8420_v24 }
 0x13b   :  { %7326 = vmatpush3.bf16.msra.mxu0 %v8827_v7 }
 0x13c   :  { %7351 = vmatprep.subr.bf16.mxu0 %v8795_v31  ;;  %7286 = vmatpush3.bf16.msra.mxu1 %v8420_v24  ;;  %v8445_v24 = vld [vmem:[%s10304_s2 + $0xa8] sm:$0xff]  }
 0x13d   :  { %7291 = vmatprep.subr.bf16.mxu1 %v8934_v25 }
 0x13e   :  { %7328 = vmatmul.mubr.bf16.vlgmr.msra.gmra.mrb[20].mxu0 %v8402_v13  ;;  %v8439_v13 = vld [vmem:[%s10305_s3 + $0xb0] sm:$0xff]  }
 0x13f   :  { %7352 = vmatpush3.bf16.msra.mxu0 %v8795_v31  ;;  %7367 = vmatprep.mubr.bf16.mxu0 %v8403_v14  ;;  %v8440_v14 = vld [vmem:[%s10305_s3 + $0xb8] sm:$0xff]  }
 0x140   :  { %7353 = vmatprep.subr.bf16.mxu0 %v8793_v29 }
 0x143   :  { %7354 = vmatpush3.bf16.msra.mxu0 %v8793_v29 }
 0x144   :  { %7355 = vmatprep.subr.bf16.mxu0 %v8807_v45 }
 0x147   :  { %7356 = vmatpush3.bf16.msra.mxu0 %v8807_v45 }
 0x148   :  { %7357 = vmatprep.subr.bf16.mxu0 %v8803_v43 }
 0x14b   :  { %7358 = vmatpush3.bf16.msra.mxu0 %v8803_v43 }
 0x14c   :  { %7359 = vmatprep.subr.bf16.mxu0 %v8819_v59 }
 0x14f   :  { %7360 = vmatpush3.bf16.msra.mxu0 %v8819_v59 }
 0x150   :  { %7361 = vmatprep.subr.bf16.mxu0 %v8815_v57 }
 0x153   :  { %7362 = vmatpush3.bf16.msra.mxu0 %v8815_v57 }
 0x154   :  { %7363 = vmatprep.subr.bf16.mxu0 %v8831_v9 }
 0x157   :  { %7364 = vmatpush3.bf16.msra.mxu0 %v8831_v9 }
 0x158   :  { %7365 = vmatprep.subr.bf16.mxu0 %v8827_v7 }
 0x15b   :  { %7366 = vmatpush3.bf16.msra.mxu0 %v8827_v7 }
 0x15c   :  { %7391 = vmatprep.subr.bf16.mxu0 %v8795_v31 }
 0x15e   :  { %7368 = vmatmul.mubr.bf16.vlgmr.msra.gmra.mrb[24].mxu0 %v8404_v16  ;;  %v8441_v16 = vld [vmem:[%s10305_s3 + $0xc0] sm:$0xff]  }
 0x15f   :  { %7392 = vmatpush3.bf16.msra.mxu0 %v8795_v31  ;;  %7407 = vmatprep.mubr.bf16.mxu0 %v8405_v18 }
 0x160   :  { %7393 = vmatprep.subr.bf16.mxu0 %v8793_v29 }
 0x163   :  { %7394 = vmatpush3.bf16.msra.mxu0 %v8793_v29 }
 0x164   :  { %7395 = vmatprep.subr.bf16.mxu0 %v8807_v45 }
 0x167   :  { %7396 = vmatpush3.bf16.msra.mxu0 %v8807_v45 }
 0x168   :  { %7397 = vmatprep.subr.bf16.mxu0 %v8803_v43 }
 0x16b   :  { %7398 = vmatpush3.bf16.msra.mxu0 %v8803_v43 }
 0x16c   :  { %7399 = vmatprep.subr.bf16.mxu0 %v8819_v59 }
 0x16f   :  { %7400 = vmatpush3.bf16.msra.mxu0 %v8819_v59 }
 0x170   :  { %7401 = vmatprep.subr.bf16.mxu0 %v8815_v57 }
 0x173   :  { %7402 = vmatpush3.bf16.msra.mxu0 %v8815_v57 }
 0x174   :  { %7403 = vmatprep.subr.bf16.mxu0 %v8831_v9 }
 0x177   :  { %7404 = vmatpush3.bf16.msra.mxu0 %v8831_v9 }
 0x178   :  { %7405 = vmatprep.subr.bf16.mxu0 %v8827_v7 }
 0x17b   :  { %7406 = vmatpush3.bf16.msra.mxu0 %v8827_v7 }
 0x17c   :  { %7431 = vmatprep.subr.bf16.mxu0 %v8795_v31 }
 0x17e   :  { %7408 = vmatmul.mubr.bf16.vlgmr.msra.gmra.mrb[28].mxu0 %v8406_v26  ;;  %v8446_v26 = vld [vmem:[%s10305_s3 + $0xd8] sm:$0xff]  }
 0x17f   :  { %7432 = vmatpush3.bf16.msra.mxu0 %v8795_v31  ;;  %7447 = vmatprep.mubr.bf16.mxu0 %v8407_v27  ;;  %v8447_v27 = vld [vmem:[%s10305_s3 + $0xe0] sm:$0xff]  }
 0x180   :  { %7433 = vmatprep.subr.bf16.mxu0 %v8793_v29 }
 0x183   :  { %7434 = vmatpush3.bf16.msra.mxu0 %v8793_v29 }
 0x184   :  { %7435 = vmatprep.subr.bf16.mxu0 %v8807_v45 }
 0x187   :  { %7436 = vmatpush3.bf16.msra.mxu0 %v8807_v45 }
 0x188   :  { %7437 = vmatprep.subr.bf16.mxu0 %v8803_v43 }
 0x18b   :  { %7438 = vmatpush3.bf16.msra.mxu0 %v8803_v43 }
 0x18c   :  { %7439 = vmatprep.subr.bf16.mxu0 %v8819_v59 }
 0x18f   :  { %7440 = vmatpush3.bf16.msra.mxu0 %v8819_v59 }
 0x190   :  { %7441 = vmatprep.subr.bf16.mxu0 %v8815_v57 }
 0x193   :  { %7442 = vmatpush3.bf16.msra.mxu0 %v8815_v57 }
 0x194   :  { %7443 = vmatprep.subr.bf16.mxu0 %v8831_v9 }
 0x197   :  { %7444 = vmatpush3.bf16.msra.mxu0 %v8831_v9 }
 0x198   :  { %7445 = vmatprep.subr.bf16.mxu0 %v8827_v7 }
 0x19b   :  { %7446 = vmatpush3.bf16.msra.mxu0 %v8827_v7 }
 0x19c   :  { %7471 = vmatprep.subr.bf16.mxu0 %v8795_v31 }
 0x19e   :  { %7448 = vmatmul.mubr.bf16.vlgmr.msra.gmra.mrb[32].mxu0 %v8408_v28  ;;  %v8448_v28 = vld [vmem:[%s10305_s3 + $0xe8] sm:$0xff]  }
 0x19f   :  { %7472 = vmatpush3.bf16.msra.mxu0 %v8795_v31  ;;  %7487 = vmatprep.mubr.bf16.mxu0 %v8409_v30  ;;  %v8449_v30 = vld [vmem:[%s10305_s3 + $0xf0] sm:$0xff]  }
 0x1a0   :  { %7473 = vmatprep.subr.bf16.mxu0 %v8793_v29 }
 0x1a3   :  { %7474 = vmatpush3.bf16.msra.mxu0 %v8793_v29 }
 0x1a4   :  { %7475 = vmatprep.subr.bf16.mxu0 %v8807_v45 }
 0x1a7   :  { %7476 = vmatpush3.bf16.msra.mxu0 %v8807_v45 }
 0x1a8   :  { %7477 = vmatprep.subr.bf16.mxu0 %v8803_v43 }
 0x1ab   :  { %7478 = vmatpush3.bf16.msra.mxu0 %v8803_v43 }
 0x1ac   :  { %7479 = vmatprep.subr.bf16.mxu0 %v8819_v59 }
 0x1af   :  { %7480 = vmatpush3.bf16.msra.mxu0 %v8819_v59 }
 0x1b0   :  { %7481 = vmatprep.subr.bf16.mxu0 %v8815_v57 }
 0x1b3   :  { %7482 = vmatpush3.bf16.msra.mxu0 %v8815_v57 }
 0x1b4   :  { %7483 = vmatprep.subr.bf16.mxu0 %v8831_v9 }
 0x1b7   :  { %7484 = vmatpush3.bf16.msra.mxu0 %v8831_v9 }
 0x1b8   :  { %7485 = vmatprep.subr.bf16.mxu0 %v8827_v7 }
 0x1bb   :  { %7486 = vmatpush3.bf16.msra.mxu0 %v8827_v7 }
 0x1bc   :  { %7511 = vmatprep.subr.bf16.mxu0 %v8795_v31 }
 0x1be   :  { %7488 = vmatmul.mubr.bf16.vlgmr.msra.gmra.mrb[36].mxu0 %v8410_v32  ;;  %v8450_v32 = vld [vmem:[%s10305_s3 + $0xf8] sm:$0xff]  }
 0x1bf   :  { %7512 = vmatpush3.bf16.msra.mxu0 %v8795_v31  ;;  %7527 = vmatprep.mubr.bf16.mxu0 %v8413_v33 }
 0x1c0   :  { %7513 = vmatprep.subr.bf16.mxu0 %v8793_v29 }
 0x1c3   :  { %7514 = vmatpush3.bf16.msra.mxu0 %v8793_v29 }
 0x1c4   :  { %7515 = vmatprep.subr.bf16.mxu0 %v8807_v45 }
 0x1c7   :  { %7516 = vmatpush3.bf16.msra.mxu0 %v8807_v45 }
 0x1c8   :  { %7517 = vmatprep.subr.bf16.mxu0 %v8803_v43 }
 0x1cb   :  { %7518 = vmatpush3.bf16.msra.mxu0 %v8803_v43 }
 0x1cc   :  { %7519 = vmatprep.subr.bf16.mxu0 %v8819_v59 }
 0x1cf   :  { %7520 = vmatpush3.bf16.msra.mxu0 %v8819_v59 }
 0x1d0   :  { %7521 = vmatprep.subr.bf16.mxu0 %v8815_v57 }
 0x1d3   :  { %7522 = vmatpush3.bf16.msra.mxu0 %v8815_v57 }
 0x1d4   :  { %7523 = vmatprep.subr.bf16.mxu0 %v8831_v9 }
 0x1d7   :  { %7524 = vmatpush3.bf16.msra.mxu0 %v8831_v9 }
 0x1d8   :  { %7525 = vmatprep.subr.bf16.mxu0 %v8827_v7 }
 0x1db   :  { %7526 = vmatpush3.bf16.msra.mxu0 %v8827_v7 }
 0x1dc   :  { %7551 = vmatprep.subr.bf16.mxu0 %v8795_v31 }
 0x1de   :  { %7528 = vmatmul.mubr.bf16.vlgmr.msra.gmra.mrb[40].mxu0 %v8415_v34  ;;  %v8451_v34 = vld [vmem:[%s10305_s3 + $0x100] sm:$0xff]  }
 0x1df   :  { %7552 = vmatpush3.bf16.msra.mxu0 %v8795_v31  ;;  %7567 = vmatprep.mubr.bf16.mxu0 %v8423_v35 }
 0x1e0   :  { %7553 = vmatprep.subr.bf16.mxu0 %v8793_v29 }
 0x1e3   :  { %7554 = vmatpush3.bf16.msra.mxu0 %v8793_v29 }
 0x1e4   :  { %7555 = vmatprep.subr.bf16.mxu0 %v8807_v45 }
 0x1e7   :  { %7556 = vmatpush3.bf16.msra.mxu0 %v8807_v45 }
 0x1e8   :  { %7557 = vmatprep.subr.bf16.mxu0 %v8803_v43 }
 0x1eb   :  { %7558 = vmatpush3.bf16.msra.mxu0 %v8803_v43 }
 0x1ec   :  { %7559 = vmatprep.subr.bf16.mxu0 %v8819_v59 }
 0x1ef   :  { %7560 = vmatpush3.bf16.msra.mxu0 %v8819_v59 }
 0x1f0   :  { %7561 = vmatprep.subr.bf16.mxu0 %v8815_v57 }
 0x1f1   :  { %v7269_v36 = vpop.f32.mrb[16].mxu0  ;;  %v9023_v37 = vpop.f32.mrb[0].mxu1 }
 0x1f2   :  { %v448_v38 = vpop.f32.mrb[17].mxu0  ;;  %v364_v39 = vpop.f32.mrb[1].mxu1 }
 0x1f3   :  { %v7270_v40 = vpop.f32.mrb[18].mxu0  ;;  %7562 = vmatpush3.bf16.msra.mxu0 %v8815_v57  ;;  %v9026_v41 = vpop.f32.mrb[2].mxu1 }
 0x1f4   :  { %v464_v42 = vpack.c.bf16 %v7270_v40, %v7269_v36  ;;  %v451_v44 = vpop.f32.mrb[19].mxu0  ;;  %7563 = vmatprep.subr.bf16.mxu0 %v8831_v9  ;;  %v380_v46 = vpack.c.bf16 %v9026_v41, %v9023_v37  ;;  %v367_v47 = vpop.f32.mrb[3].mxu1  ;;  %v8452_v40 = vld [vmem:[%s10305_s3 + $0x108] sm:$0xff]   ;;  %v8454_v41 = vld [vmem:[%s10305_s3 + $0x110] sm:$0xff]  }
 0x1f5   :  { %v463_v48 = vpack.c.bf16 %v451_v44, %v448_v38  ;;  %v379_v49 = vpack.c.bf16 %v367_v47, %v364_v39  ;;  %v8463_v44 = vld [vmem:[%s10304_s2 + $0xc0] sm:$0xff]  }
 0x1f6   :  { %v8457_v47 = vld [vmem:[%s10305_s3 + $0x120] sm:$0xff]  }
 0x1f7   :  { %7287 = vmatprep.mubr.bf16.mxu1 %v463_v48  ;;  %7564 = vmatpush3.bf16.msra.mxu0 %v8831_v9  ;;  %v8458_v48 = vld [vmem:[%s10305_s3 + $0x128] sm:$0xff]  }
 0x1f8   :  { %7288 = vmatmul.mubr.bf16.vlgmr.msra.gmra.mrb[4].mxu1 %v464_v42  ;;  %7565 = vmatprep.subr.bf16.mxu0 %v8827_v7  ;;  %v8455_v42 = vld [vmem:[%s10304_s2 + $0xb8] sm:$0xff]  }
 0x1f9   :  { %7292 = vmatpush3.bf16.msra.mxu1 %v8934_v25  ;;  %7307 = vmatprep.mubr.bf16.mxu1 %v379_v49  ;;  %v8453_v25 = vld [vmem:[%s10304_s2 + $0xb0] sm:$0xff]  }
 0x1fa   :  { %7293 = vmatprep.subr.bf16.mxu1 %v8422_v50  ;;  %v8459_v49 = vld [vmem:[%s10305_s3 + $0x130] sm:$0xff]  }
 0x1fb   :  { %7566 = vmatpush3.bf16.msra.mxu0 %v8827_v7 }
 0x1fc   :  { %7591 = vmatprep.subr.bf16.mxu0 %v8795_v31 }
 0x1fd   :  { %7294 = vmatpush3.bf16.msra.mxu1 %v8422_v50  ;;  %v8460_v50 = vld [vmem:[%s10305_s3 + $0x138] sm:$0xff]  }
 0x1fe   :  { %7295 = vmatprep.subr.bf16.mxu1 %v8424_v51  ;;  %7568 = vmatmul.mubr.bf16.vlgmr.msra.gmra.mrb[44].mxu0 %v8425_v52  ;;  %v8461_v52 = vld [vmem:[%s10305_s3 + $0x140] sm:$0xff]  }
 0x1ff   :  { %7592 = vmatpush3.bf16.msra.mxu0 %v8795_v31  ;;  %7607 = vmatprep.mubr.bf16.mxu0 %v8433_v53 }
 0x200   :  { %7593 = vmatprep.subr.bf16.mxu0 %v8793_v29 }
 0x201   :  { %7296 = vmatpush3.bf16.msra.mxu1 %v8424_v51 }
 0x202   :  { %7297 = vmatprep.subr.bf16.mxu1 %v8426_v54 }
 0x203   :  { %7594 = vmatpush3.bf16.msra.mxu0 %v8793_v29 }
 0x204   :  { %7595 = vmatprep.subr.bf16.mxu0 %v8807_v45 }
 0x205   :  { %7298 = vmatpush3.bf16.msra.mxu1 %v8426_v54 }
 0x206   :  { %7299 = vmatprep.subr.bf16.mxu1 %v8427_v55 }
 0x207   :  { %7596 = vmatpush3.bf16.msra.mxu0 %v8807_v45 }
 0x208   :  { %7597 = vmatprep.subr.bf16.mxu0 %v8803_v43 }
 0x209   :  { %7300 = vmatpush3.bf16.msra.mxu1 %v8427_v55 }
 0x20a   :  { %7301 = vmatprep.subr.bf16.mxu1 %v8428_v56 }
 0x20b   :  { %7598 = vmatpush3.bf16.msra.mxu0 %v8803_v43 }
 0x20c   :  { %7599 = vmatprep.subr.bf16.mxu0 %v8819_v59 }
 0x20d   :  { %7302 = vmatpush3.bf16.msra.mxu1 %v8428_v56 }
 0x20e   :  { %7303 = vmatprep.subr.bf16.mxu1 %v8429_v58 }
 0x20f   :  { %7600 = vmatpush3.bf16.msra.mxu0 %v8819_v59 }
 0x210   :  { %7601 = vmatprep.subr.bf16.mxu0 %v8815_v57 }
 0x211   :  { %7304 = vmatpush3.bf16.msra.mxu1 %v8429_v58  ;;  %v9073_v61 = vpop.f32.mrb[20].mxu0 }
 0x212   :  { %7305 = vmatprep.subr.bf16.mxu1 %v8430_v60  ;;  %v727_v63 = vpop.f32.mrb[21].mxu0 }
 0x213   :  { %7602 = vmatpush3.bf16.msra.mxu0 %v8815_v57  ;;  %v7330_v0 = vpop.f32.mrb[22].mxu0 }
 0x214   :  { %7603 = vmatprep.subr.bf16.mxu0 %v8831_v9  ;;  %v743_v1 = vpack.c.bf16 %v7330_v0, %v9073_v61  ;;  %v730_v2 = vpop.f32.mrb[23].mxu0  ;;  %v8464_v61 = vld [vmem:[%s10305_s3 + $0x150] sm:$0xff]   ;;  %v8466_v0 = vld [vmem:[%s10305_s3 + $0x158] sm:$0xff]  }
 0x215   :  { %7306 = vmatpush3.bf16.msra.mxu1 %v8430_v60  ;;  %v742_v3 = vpack.c.bf16 %v730_v2, %v727_v63  ;;  %v8462_v60 = vld [vmem:[%s10305_s3 + $0x148] sm:$0xff]   ;;  %v8473_v63 = vld [vmem:[%s10304_s2 + $0xd0] sm:$0xff]  }
 0x216   :  { %7331 = vmatprep.subr.bf16.mxu1 %v8431_v62  ;;  %v8468_v2 = vld [vmem:[%s10305_s3 + $0x168] sm:$0xff]  }
 0x217   :  { %7604 = vmatpush3.bf16.msra.mxu0 %v8831_v9 }
 0x218   :  { %7308 = vmatmul.mubr.bf16.vlgmr.msra.gmra.mrb[4].mxu1 %v380_v46  ;;  %7605 = vmatprep.subr.bf16.mxu0 %v8827_v7  ;;  %v8456_v46 = vld [vmem:[%s10305_s3 + $0x118] sm:$0xff]  }
 0x219   :  { %7332 = vmatpush3.bf16.msra.mxu1 %v8431_v62  ;;  %7347 = vmatprep.mubr.bf16.mxu1 %v742_v3  ;;  %v8465_v62 = vld [vmem:[%s10304_s2 + $0xc8] sm:$0xff]   ;;  %v8469_v3 = vld [vmem:[%s10305_s3 + $0x170] sm:$0xff]  }
 0x21a   :  { %7333 = vmatprep.subr.bf16.mxu1 %v8432_v4 }
 0x21b   :  { %7606 = vmatpush3.bf16.msra.mxu0 %v8827_v7 }
 0x21c   :  { %7631 = vmatprep.subr.bf16.mxu0 %v8795_v31 }
 0x21d   :  { %7334 = vmatpush3.bf16.msra.mxu1 %v8432_v4  ;;  %v8470_v4 = vld [vmem:[%s10305_s3 + $0x178] sm:$0xff]  }
 0x21e   :  { %7335 = vmatprep.subr.bf16.mxu1 %v8434_v5  ;;  %7608 = vmatmul.mubr.bf16.vlgmr.msra.gmra.mrb[48].mxu0 %v8435_v6  ;;  %v8471_v6 = vld [vmem:[%s10305_s3 + $0x180] sm:$0xff]  }
 0x21f   :  { %7632 = vmatpush3.bf16.msra.mxu0 %v8795_v31  ;;  %7647 = vmatprep.mubr.bf16.mxu0 %v8443_v8 }
 0x220   :  { %7633 = vmatprep.subr.bf16.mxu0 %v8793_v29 }
 0x221   :  { %7336 = vmatpush3.bf16.msra.mxu1 %v8434_v5 }
 0x222   :  { %7337 = vmatprep.subr.bf16.mxu1 %v8436_v10 }
 0x223   :  { %7634 = vmatpush3.bf16.msra.mxu0 %v8793_v29 }
 0x224   :  { %7635 = vmatprep.subr.bf16.mxu0 %v8807_v45 }
 0x225   :  { %7338 = vmatpush3.bf16.msra.mxu1 %v8436_v10 }
 0x226   :  { %7339 = vmatprep.subr.bf16.mxu1 %v8437_v11 }
 0x227   :  { %7636 = vmatpush3.bf16.msra.mxu0 %v8807_v45 }
 0x228   :  { %7637 = vmatprep.subr.bf16.mxu0 %v8803_v43 }
 0x229   :  { %7340 = vmatpush3.bf16.msra.mxu1 %v8437_v11 }
 0x22a   :  { %7341 = vmatprep.subr.bf16.mxu1 %v8438_v12 }
 0x22b   :  { %7638 = vmatpush3.bf16.msra.mxu0 %v8803_v43 }
 0x22c   :  { %7639 = vmatprep.subr.bf16.mxu0 %v8819_v59 }
 0x22d   :  { %7342 = vmatpush3.bf16.msra.mxu1 %v8438_v12 }
 0x22e   :  { %7343 = vmatprep.subr.bf16.mxu1 %v8439_v13 }
 0x22f   :  { %7640 = vmatpush3.bf16.msra.mxu0 %v8819_v59 }
 0x230   :  { %7641 = vmatprep.subr.bf16.mxu0 %v8815_v57 }
 0x231   :  { %7344 = vmatpush3.bf16.msra.mxu1 %v8439_v13  ;;  %v9122_v15 = vpop.f32.mrb[24].mxu0 }
 0x232   :  { %7345 = vmatprep.subr.bf16.mxu1 %v8440_v14  ;;  %v913_v17 = vpop.f32.mrb[25].mxu0 }
 0x233   :  { %7642 = vmatpush3.bf16.msra.mxu0 %v8815_v57  ;;  %v7370_v18 = vpop.f32.mrb[26].mxu0 }
 0x234   :  { %7643 = vmatprep.subr.bf16.mxu0 %v8831_v9  ;;  %v929_v19 = vpack.c.bf16 %v7370_v18, %v9122_v15  ;;  %v916_v20 = vpop.f32.mrb[27].mxu0  ;;  %v8474_v15 = vld [vmem:[%s10305_s3 + $0x190] sm:$0xff]   ;;  %v8476_v18 = vld [vmem:[%s10305_s3 + $0x198] sm:$0xff]  }
 0x235   :  { %7346 = vmatpush3.bf16.msra.mxu1 %v8440_v14  ;;  %v928_v21 = vpack.c.bf16 %v916_v20, %v913_v17  ;;  %v8472_v14 = vld [vmem:[%s10305_s3 + $0x188] sm:$0xff]   ;;  %v8483_v17 = vld [vmem:[%s10304_s2 + $0xe0] sm:$0xff]  }
 0x236   :  { %7371 = vmatprep.subr.bf16.mxu1 %v8441_v16  ;;  %v8478_v20 = vld [vmem:[%s10305_s3 + $0x1a8] sm:$0xff]  }
 0x237   :  { %7644 = vmatpush3.bf16.msra.mxu0 %v8831_v9 }
 0x238   :  { %7348 = vmatmul.mubr.bf16.vlgmr.msra.gmra.mrb[4].mxu1 %v743_v1  ;;  %7645 = vmatprep.subr.bf16.mxu0 %v8827_v7  ;;  %v8467_v1 = vld [vmem:[%s10305_s3 + $0x160] sm:$0xff]  }
 0x239   :  { %7372 = vmatpush3.bf16.msra.mxu1 %v8441_v16  ;;  %7387 = vmatprep.mubr.bf16.mxu1 %v928_v21  ;;  %v8475_v16 = vld [vmem:[%s10304_s2 + $0xd8] sm:$0xff]   ;;  %v8479_v21 = vld [vmem:[%s10305_s3 + $0x1b0] sm:$0xff]  }
 0x23a   :  { %7373 = vmatprep.subr.bf16.mxu1 %v8442_v22 }
 0x23b   :  { %7646 = vmatpush3.bf16.msra.mxu0 %v8827_v7 }
 0x23c   :  { %7671 = vmatprep.subr.bf16.mxu0 %v8795_v31 }
 0x23d   :  { %7374 = vmatpush3.bf16.msra.mxu1 %v8442_v22  ;;  %v8480_v22 = vld [vmem:[%s10305_s3 + $0x1b8] sm:$0xff]  }
 0x23e   :  { %7375 = vmatprep.subr.bf16.mxu1 %v8444_v23  ;;  %7648 = vmatmul.mubr.bf16.vlgmr.msra.gmra.mrb[52].mxu0 %v8445_v24  ;;  %v8481_v24 = vld [vmem:[%s10305_s3 + $0x1c0] sm:$0xff]  }
 0x23f   :  { %7672 = vmatpush3.bf16.msra.mxu0 %v8795_v31  ;;  %7687 = vmatprep.mubr.bf16.mxu0 %v8453_v25 }
 0x240   :  { %7673 = vmatprep.subr.bf16.mxu0 %v8793_v29 }
 0x241   :  { %7376 = vmatpush3.bf16.msra.mxu1 %v8444_v23 }
 0x242   :  { %7377 = vmatprep.subr.bf16.mxu1 %v8446_v26 }
 0x243   :  { %7674 = vmatpush3.bf16.msra.mxu0 %v8793_v29 }
 0x244   :  { %7675 = vmatprep.subr.bf16.mxu0 %v8807_v45 }
 0x245   :  { %7378 = vmatpush3.bf16.msra.mxu1 %v8446_v26 }
 0x246   :  { %7379 = vmatprep.subr.bf16.mxu1 %v8447_v27 }
 0x247   :  { %7676 = vmatpush3.bf16.msra.mxu0 %v8807_v45 }
 0x248   :  { %7677 = vmatprep.subr.bf16.mxu0 %v8803_v43 }
 0x249   :  { %7380 = vmatpush3.bf16.msra.mxu1 %v8447_v27 }
 0x24a   :  { %7381 = vmatprep.subr.bf16.mxu1 %v8448_v28 }
 0x24b   :  { %7678 = vmatpush3.bf16.msra.mxu0 %v8803_v43 }
 0x24c   :  { %7679 = vmatprep.subr.bf16.mxu0 %v8819_v59 }
 0x24d   :  { %7382 = vmatpush3.bf16.msra.mxu1 %v8448_v28 }
 0x24e   :  { %7383 = vmatprep.subr.bf16.mxu1 %v8449_v30 }
 0x24f   :  { %7680 = vmatpush3.bf16.msra.mxu0 %v8819_v59 }
 0x250   :  { %7681 = vmatprep.subr.bf16.mxu0 %v8815_v57 }
 0x251   :  { %7384 = vmatpush3.bf16.msra.mxu1 %v8449_v30  ;;  %v9171_v33 = vpop.f32.mrb[28].mxu0 }
 0x252   :  { %7385 = vmatprep.subr.bf16.mxu1 %v8450_v32  ;;  %v1099_v35 = vpop.f32.mrb[29].mxu0 }
 0x253   :  { %7682 = vmatpush3.bf16.msra.mxu0 %v8815_v57  ;;  %v7410_v36 = vpop.f32.mrb[30].mxu0 }
 0x254   :  { %7683 = vmatprep.subr.bf16.mxu0 %v8831_v9  ;;  %v1115_v37 = vpack.c.bf16 %v7410_v36, %v9171_v33  ;;  %v1102_v38 = vpop.f32.mrb[31].mxu0  ;;  %v8484_v33 = vld [vmem:[%s10305_s3 + $0x1d0] sm:$0xff]   ;;  %v8486_v36 = vld [vmem:[%s10305_s3 + $0x1d8] sm:$0xff]  }
 0x255   :  { %7386 = vmatpush3.bf16.msra.mxu1 %v8450_v32  ;;  %v1114_v39 = vpack.c.bf16 %v1102_v38, %v1099_v35  ;;  %v8482_v32 = vld [vmem:[%s10305_s3 + $0x1c8] sm:$0xff]   ;;  %v8500_v35 = vld [vmem:[%s10304_s2 + $0xf0] sm:$0xff]  }
 0x256   :  { %7411 = vmatprep.subr.bf16.mxu1 %v8451_v34  ;;  %v8488_v38 = vld [vmem:[%s10305_s3 + $0x1e8] sm:$0xff]  }
 0x257   :  { %7684 = vmatpush3.bf16.msra.mxu0 %v8831_v9 }
 0x258   :  { %7388 = vmatmul.mubr.bf16.vlgmr.msra.gmra.mrb[4].mxu1 %v929_v19  ;;  %7685 = vmatprep.subr.bf16.mxu0 %v8827_v7  ;;  %v8477_v19 = vld [vmem:[%s10305_s3 + $0x1a0] sm:$0xff]  }
 0x259   :  { %7412 = vmatpush3.bf16.msra.mxu1 %v8451_v34  ;;  %7427 = vmatprep.mubr.bf16.mxu1 %v1114_v39  ;;  %v8485_v34 = vld [vmem:[%s10304_s2 + $0xe8] sm:$0xff]   ;;  %v8491_v39 = vld [vmem:[%s10305_s3 + $0x200] sm:$0xff]  }
 0x25a   :  { %7413 = vmatprep.subr.bf16.mxu1 %v8452_v40 }
 0x25b   :  { %7686 = vmatpush3.bf16.msra.mxu0 %v8827_v7 }
 0x25c   :  { %7711 = vmatprep.subr.bf16.mxu0 %v8795_v31 }
 0x25d   :  { %7414 = vmatpush3.bf16.msra.mxu1 %v8452_v40 }
 0x25e   :  { %7415 = vmatprep.subr.bf16.mxu1 %v8454_v41  ;;  %7688 = vmatmul.mubr.bf16.vlgmr.msra.gmra.mrb[56].mxu0 %v8455_v42 }
 0x25f   :  { %7712 = vmatpush3.bf16.msra.mxu0 %v8795_v31  ;;  %7727 = vmatprep.mubr.bf16.mxu0 %v8463_v44 }
 0x260   :  { %7713 = vmatprep.subr.bf16.mxu0 %v8793_v29 }
 0x261   :  { %7416 = vmatpush3.bf16.msra.mxu1 %v8454_v41 }
 0x262   :  { %7417 = vmatprep.subr.bf16.mxu1 %v8456_v46 }
 0x263   :  { %7714 = vmatpush3.bf16.msra.mxu0 %v8793_v29 }
 0x264   :  { %7715 = vmatprep.subr.bf16.mxu0 %v8807_v45 }
 0x265   :  { %7418 = vmatpush3.bf16.msra.mxu1 %v8456_v46  ;;  %v8501_v46 = vld [vmem:[%s10304_s2 + $0xf8] sm:$0xff]  }
 0x266   :  { %7419 = vmatprep.subr.bf16.mxu1 %v8457_v47 }
 0x267   :  { %7716 = vmatpush3.bf16.msra.mxu0 %v8807_v45 }
 0x268   :  { %7717 = vmatprep.subr.bf16.mxu0 %v8803_v43 }
 0x269   :  { %7420 = vmatpush3.bf16.msra.mxu1 %v8457_v47  ;;  %v8495_v47 = vld [vmem:[%s10305_s3 + $0x220] sm:$0xff]  }
 0x26a   :  { %7421 = vmatprep.subr.bf16.mxu1 %v8458_v48 }
 0x26b   :  { %7718 = vmatpush3.bf16.msra.mxu0 %v8803_v43 }
 0x26c   :  { %7719 = vmatprep.subr.bf16.mxu0 %v8819_v59 }
 0x26d   :  { %7422 = vmatpush3.bf16.msra.mxu1 %v8458_v48  ;;  %v8496_v48 = vld [vmem:[%s10305_s3 + $0x228] sm:$0xff]  }
 0x26e   :  { %7423 = vmatprep.subr.bf16.mxu1 %v8459_v49 }
 0x26f   :  { %7720 = vmatpush3.bf16.msra.mxu0 %v8819_v59 }
 0x270   :  { %7721 = vmatprep.subr.bf16.mxu0 %v8815_v57 }
 0x271   :  { %7424 = vmatpush3.bf16.msra.mxu1 %v8459_v49  ;;  %v9220_v51 = vpop.f32.mrb[32].mxu0  ;;  %v8498_v49 = vld [vmem:[%s10305_s3 + $0x238] sm:$0xff]  }
 0x272   :  { %7425 = vmatprep.subr.bf16.mxu1 %v8460_v50  ;;  %v1285_v53 = vpop.f32.mrb[33].mxu0 }
 0x273   :  { %7722 = vmatpush3.bf16.msra.mxu0 %v8815_v57  ;;  %v7450_v54 = vpop.f32.mrb[34].mxu0 }
 0x274   :  { %7723 = vmatprep.subr.bf16.mxu0 %v8831_v9  ;;  %v1301_v55 = vpack.c.bf16 %v7450_v54, %v9220_v51  ;;  %v1288_v56 = vpop.f32.mrb[35].mxu0  ;;  %v8499_v51 = vld [vmem:[%s10305_s3 + $0x240] sm:$0xff]  }
 0x275   :  { %7426 = vmatpush3.bf16.msra.mxu1 %v8460_v50  ;;  %v1300_v58 = vpack.c.bf16 %v1288_v56, %v1285_v53 }
 0x276   :  { %7451 = vmatprep.subr.bf16.mxu1 %v8461_v52 }
 0x277   :  { %7724 = vmatpush3.bf16.msra.mxu0 %v8831_v9 }
 0x278   :  { %7428 = vmatmul.mubr.bf16.vlgmr.msra.gmra.mrb[4].mxu1 %v1115_v37  ;;  %7725 = vmatprep.subr.bf16.mxu0 %v8827_v7  ;;  %v8487_v37 = vld [vmem:[%s10305_s3 + $0x1e0] sm:$0xff]  }
 0x279   :  { %7452 = vmatpush3.bf16.msra.mxu1 %v8461_v52  ;;  %7467 = vmatprep.mubr.bf16.mxu1 %v1300_v58  ;;  %v8502_v58 = vld [vmem:[%s10305_s3 + $0x248] sm:$0xff]  }
 0x27a   :  { %7453 = vmatprep.subr.bf16.mxu1 %v8462_v60 }
 0x27b   :  { %7726 = vmatpush3.bf16.msra.mxu0 %v8827_v7 }
 0x27c   :  { %7751 = vmatprep.subr.bf16.mxu0 %v8795_v31 }
 0x27d   :  { %7454 = vmatpush3.bf16.msra.mxu1 %v8462_v60  ;;  %v8503_v60 = vld [vmem:[%s10305_s3 + $0x250] sm:$0xff]  }
 0x27e   :  { %7455 = vmatprep.subr.bf16.mxu1 %v8464_v61  ;;  %7728 = vmatmul.mubr.bf16.vlgmr.msra.gmra.mrb[60].mxu0 %v8465_v62  ;;  %v8505_v62 = vld [vmem:[%s10305_s3 + $0x260] sm:$0xff]  }
 0x27f   :  { %7752 = vmatpush3.bf16.msra.mxu0 %v8795_v31  ;;  %7767 = vmatprep.mubr.bf16.mxu0 %v8473_v63  ;;  %v8506_v63 = vld [vmem:[%s10305_s3 + $0x268] sm:$0xff]  }
 0x280   :  { %7753 = vmatprep.subr.bf16.mxu0 %v8793_v29 }
 0x281   :  { %7456 = vmatpush3.bf16.msra.mxu1 %v8464_v61  ;;  %v8504_v61 = vld [vmem:[%s10305_s3 + $0x258] sm:$0xff]  }
 0x282   :  { %7457 = vmatprep.subr.bf16.mxu1 %v8466_v0 }
 0x283   :  { %7754 = vmatpush3.bf16.msra.mxu0 %v8793_v29 }
 0x284   :  { %7755 = vmatprep.subr.bf16.mxu0 %v8807_v45 }
 0x285   :  { %7458 = vmatpush3.bf16.msra.mxu1 %v8466_v0  ;;  %v8507_v0 = vld [vmem:[%s10305_s3 + $0x270] sm:$0xff]  }
 0x286   :  { %7459 = vmatprep.subr.bf16.mxu1 %v8467_v1 }
 0x287   :  { %7756 = vmatpush3.bf16.msra.mxu0 %v8807_v45 }
 0x288   :  { %7757 = vmatprep.subr.bf16.mxu0 %v8803_v43 }
 0x289   :  { %7460 = vmatpush3.bf16.msra.mxu1 %v8467_v1  ;;  %v8508_v1 = vld [vmem:[%s10305_s3 + $0x278] sm:$0xff]  }
 0x28a   :  { %7461 = vmatprep.subr.bf16.mxu1 %v8468_v2 }
 0x28b   :  { %7758 = vmatpush3.bf16.msra.mxu0 %v8803_v43 }
 0x28c   :  { %7759 = vmatprep.subr.bf16.mxu0 %v8819_v59 }
 0x28d   :  { %7462 = vmatpush3.bf16.msra.mxu1 %v8468_v2 }
 0x28e   :  { %7463 = vmatprep.subr.bf16.mxu1 %v8469_v3 }
 0x28f   :  { %7760 = vmatpush3.bf16.msra.mxu0 %v8819_v59 }
 0x290   :  { %7761 = vmatprep.subr.bf16.mxu0 %v8815_v57 }
 0x291   :  { %7464 = vmatpush3.bf16.msra.mxu1 %v8469_v3  ;;  %v9269_v5 = vpop.f32.mrb[36].mxu0  ;;  %v8509_v3 = vld [vmem:[%s10305_s3 + $0x280] sm:$0xff]  }
 0x292   :  { %7465 = vmatprep.subr.bf16.mxu1 %v8470_v4  ;;  %v1471_v8 = vpop.f32.mrb[37].mxu0 }
 0x293   :  { %7762 = vmatpush3.bf16.msra.mxu0 %v8815_v57  ;;  %v7490_v10 = vpop.f32.mrb[38].mxu0 }
 0x294   :  { %7763 = vmatprep.subr.bf16.mxu0 %v8831_v9  ;;  %v1487_v11 = vpack.c.bf16 %v7490_v10, %v9269_v5  ;;  %v1474_v12 = vpop.f32.mrb[39].mxu0 }
 0x295   :  { %7466 = vmatpush3.bf16.msra.mxu1 %v8470_v4  ;;  %v1486_v13 = vpack.c.bf16 %v1474_v12, %v1471_v8  ;;  %v8511_v12 = vld [vmem:[%s10305_s3 + $0x290] sm:$0xff]  }
 0x296   :  { %7491 = vmatprep.subr.bf16.mxu1 %v8471_v6 }
 0x297   :  { %7764 = vmatpush3.bf16.msra.mxu0 %v8831_v9 }
 0x298   :  { %7468 = vmatmul.mubr.bf16.vlgmr.msra.gmra.mrb[4].mxu1 %v1301_v55  ;;  %7765 = vmatprep.subr.bf16.mxu0 %v8827_v7 }
 0x299   :  { %7492 = vmatpush3.bf16.msra.mxu1 %v8471_v6  ;;  %7507 = vmatprep.mubr.bf16.mxu1 %v1486_v13  ;;  %v8512_v13 = vld [vmem:[%s10305_s3 + $0x298] sm:$0xff]  }
 0x29a   :  { %7493 = vmatprep.subr.bf16.mxu1 %v8472_v14 }
 0x29b   :  { %7766 = vmatpush3.bf16.msra.mxu0 %v8827_v7 }
 0x29c   :  { %7791 = vmatprep.subr.bf16.mxu0 %v8795_v31 }
 0x29d   :  { %7494 = vmatpush3.bf16.msra.mxu1 %v8472_v14  ;;  %v8513_v14 = vld [vmem:[%s10305_s3 + $0x2a0] sm:$0xff]  }
 0x29e   :  { %7495 = vmatprep.subr.bf16.mxu1 %v8474_v15  ;;  %7768 = vmatmul.mubr.bf16.vlgmr.msra.gmra.mrb[64].mxu0 %v8475_v16  ;;  %v8515_v16 = vld [vmem:[%s10305_s3 + $0x2b0] sm:$0xff]  }
 0x29f   :  { %7792 = vmatpush3.bf16.msra.mxu0 %v8795_v31  ;;  %7807 = vmatprep.mubr.bf16.mxu0 %v8483_v17  ;;  %v8516_v17 = vld [vmem:[%s10305_s3 + $0x2b8] sm:$0xff]  }
 0x2a0   :  { %7793 = vmatprep.subr.bf16.mxu0 %v8793_v29 }
 0x2a1   :  { %7496 = vmatpush3.bf16.msra.mxu1 %v8474_v15  ;;  %v8514_v15 = vld [vmem:[%s10305_s3 + $0x2a8] sm:$0xff]  }
 0x2a2   :  { %7497 = vmatprep.subr.bf16.mxu1 %v8476_v18 }
 0x2a3   :  { %7794 = vmatpush3.bf16.msra.mxu0 %v8793_v29 }
 0x2a4   :  { %7795 = vmatprep.subr.bf16.mxu0 %v8807_v45 }
 0x2a5   :  { %7498 = vmatpush3.bf16.msra.mxu1 %v8476_v18 }
 0x2a6   :  { %7499 = vmatprep.subr.bf16.mxu1 %v8477_v19 }
 0x2a7   :  { %7796 = vmatpush3.bf16.msra.mxu0 %v8807_v45 }
 0x2a8   :  { %7797 = vmatprep.subr.bf16.mxu0 %v8803_v43 }
 0x2a9   :  { %7500 = vmatpush3.bf16.msra.mxu1 %v8477_v19  ;;  %v8517_v19 = vld [vmem:[%s10305_s3 + $0x2c0] sm:$0xff]  }
 0x2aa   :  { %7501 = vmatprep.subr.bf16.mxu1 %v8478_v20 }
 0x2ab   :  { %7798 = vmatpush3.bf16.msra.mxu0 %v8803_v43 }
 0x2ac   :  { %7799 = vmatprep.subr.bf16.mxu0 %v8819_v59 }
 0x2ad   :  { %7502 = vmatpush3.bf16.msra.mxu1 %v8478_v20 }
 0x2ae   :  { %7503 = vmatprep.subr.bf16.mxu1 %v8479_v21 }
 0x2af   :  { %7800 = vmatpush3.bf16.msra.mxu0 %v8819_v59 }
 0x2b0   :  { %7801 = vmatprep.subr.bf16.mxu0 %v8815_v57 }
 0x2b1   :  { %7504 = vmatpush3.bf16.msra.mxu1 %v8479_v21  ;;  %v9318_v23 = vpop.f32.mrb[40].mxu0 }
 0x2b2   :  { %7505 = vmatprep.subr.bf16.mxu1 %v8480_v22  ;;  %v1657_v25 = vpop.f32.mrb[41].mxu0 }
 0x2b3   :  { %7802 = vmatpush3.bf16.msra.mxu0 %v8815_v57  ;;  %v7530_v26 = vpop.f32.mrb[42].mxu0 }
 0x2b4   :  { %7803 = vmatprep.subr.bf16.mxu0 %v8831_v9  ;;  %v1673_v27 = vpack.c.bf16 %v7530_v26, %v9318_v23  ;;  %v1660_v28 = vpop.f32.mrb[43].mxu0  ;;  %v8519_v26 = vld [vmem:[%s10305_s3 + $0x2d0] sm:$0xff]  }
 0x2b5   :  { %7506 = vmatpush3.bf16.msra.mxu1 %v8480_v22  ;;  %v1672_v30 = vpack.c.bf16 %v1660_v28, %v1657_v25  ;;  %v8518_v25 = vld [vmem:[%s10305_s3 + $0x2c8] sm:$0xff]   ;;  %v8521_v28 = vld [vmem:[%s10305_s3 + $0x2e0] sm:$0xff]  }
 0x2b6   :  { %7531 = vmatprep.subr.bf16.mxu1 %v8481_v24 }
 0x2b7   :  { %7804 = vmatpush3.bf16.msra.mxu0 %v8831_v9 }
 0x2b8   :  { %7508 = vmatmul.mubr.bf16.vlgmr.msra.gmra.mrb[4].mxu1 %v1487_v11  ;;  %7805 = vmatprep.subr.bf16.mxu0 %v8827_v7  ;;  %v8510_v11 = vld [vmem:[%s10305_s3 + $0x288] sm:$0xff]  }
 0x2b9   :  { %7532 = vmatpush3.bf16.msra.mxu1 %v8481_v24  ;;  %7547 = vmatprep.mubr.bf16.mxu1 %v1672_v30  ;;  %v8522_v30 = vld [vmem:[%s10305_s3 + $0x2e8] sm:$0xff]  }
 0x2ba   :  { %7533 = vmatprep.subr.bf16.mxu1 %v8482_v32 }
 0x2bb   :  { %7806 = vmatpush3.bf16.msra.mxu0 %v8827_v7 }
 0x2bc   :  { %7831 = vmatprep.subr.bf16.mxu0 %v8795_v31 }
 0x2bd   :  { %7534 = vmatpush3.bf16.msra.mxu1 %v8482_v32  ;;  %v8523_v32 = vld [vmem:[%s10305_s3 + $0x2f0] sm:$0xff]  }
 0x2be   :  { %7535 = vmatprep.subr.bf16.mxu1 %v8484_v33  ;;  %7808 = vmatmul.mubr.bf16.vlgmr.msra.gmra.mrb[68].mxu0 %v8485_v34 }
 0x2bf   :  { %7832 = vmatpush3.bf16.msra.mxu0 %v8795_v31  ;;  %7847 = vmatprep.mubr.bf16.mxu0 %v8500_v35  ;;  %v8489_v31 = vld [vmem:[%s10305_s3 + $0x1f0] sm:$0xff]   ;;  %v8525_v35 = vld [vmem:[%s10305_s3 + $0x300] sm:$0xff]  }
 0x2c0   :  { %7833 = vmatprep.subr.bf16.mxu0 %v8793_v29 }
 0x2c1   :  { %7536 = vmatpush3.bf16.msra.mxu1 %v8484_v33  ;;  %v8524_v33 = vld [vmem:[%s10305_s3 + $0x2f8] sm:$0xff]  }
 0x2c2   :  { %7537 = vmatprep.subr.bf16.mxu1 %v8486_v36 }
 0x2c3   :  { %7834 = vmatpush3.bf16.msra.mxu0 %v8793_v29  ;;  %v8490_v29 = vld [vmem:[%s10305_s3 + $0x1f8] sm:$0xff]  }
 0x2c4   :  { %7835 = vmatprep.subr.bf16.mxu0 %v8807_v45 }
 0x2c5   :  { %7538 = vmatpush3.bf16.msra.mxu1 %v8486_v36 }
 0x2c6   :  { %7539 = vmatprep.subr.bf16.mxu1 %v8487_v37 }
 0x2c7   :  { %7836 = vmatpush3.bf16.msra.mxu0 %v8807_v45 }
 0x2c8   :  { %7837 = vmatprep.subr.bf16.mxu0 %v8803_v43 }
 0x2c9   :  { %7540 = vmatpush3.bf16.msra.mxu1 %v8487_v37 }
 0x2ca   :  { %7541 = vmatprep.subr.bf16.mxu1 %v8488_v38 }
 0x2cb   :  { %7838 = vmatpush3.bf16.msra.mxu0 %v8803_v43 }
 0x2cc   :  { %7839 = vmatprep.subr.bf16.mxu0 %v8819_v59 }
 0x2cd   :  { %7542 = vmatpush3.bf16.msra.mxu1 %v8488_v38 }
 0x2ce   :  { %7543 = vmatprep.subr.bf16.mxu1 %v8489_v31 }
 0x2cf   :  { %7840 = vmatpush3.bf16.msra.mxu0 %v8819_v59  ;;  %v8492_v59 = vld [vmem:[%s10305_s3 + $0x208] sm:$0xff]  }
 0x2d0   :  { %7841 = vmatprep.subr.bf16.mxu0 %v8815_v57 }
 0x2d1   :  { %7544 = vmatpush3.bf16.msra.mxu1 %v8489_v31  ;;  %v7569_v45 = vpop.f32.mrb[44].mxu0 }
 0x2d2   :  { %7545 = vmatprep.subr.bf16.mxu1 %v8490_v29  ;;  %v1843_v43 = vpop.f32.mrb[45].mxu0 }
 0x2d3   :  { %7842 = vmatpush3.bf16.msra.mxu0 %v8815_v57  ;;  %v7570_v40 = vpop.f32.mrb[46].mxu0  ;;  %v8493_v57 = vld [vmem:[%s10305_s3 + $0x210] sm:$0xff]  }
 0x2d4   :  { %7843 = vmatprep.subr.bf16.mxu0 %v8831_v9  ;;  %v1859_v41 = vpack.c.bf16 %v7570_v40, %v7569_v45  ;;  %v1846_v42 = vpop.f32.mrb[47].mxu0  ;;  %v8526_v45 = vld [vmem:[%s10305_s3 + $0x308] sm:$0xff]   ;;  %v8529_v40 = vld [vmem:[%s10305_s3 + $0x320] sm:$0xff]  }
 0x2d5   :  { %7546 = vmatpush3.bf16.msra.mxu1 %v8490_v29  ;;  %v1858_v44 = vpack.c.bf16 %v1846_v42, %v1843_v43  ;;  %v8528_v43 = vld [vmem:[%s10305_s3 + $0x318] sm:$0xff]   ;;  %v8531_v42 = vld [vmem:[%s10305_s3 + $0x330] sm:$0xff]  }
 0x2d6   :  { %7571 = vmatprep.subr.bf16.mxu1 %v8491_v39 }
 0x2d7   :  { %7844 = vmatpush3.bf16.msra.mxu0 %v8831_v9  ;;  %v8494_v9 = vld [vmem:[%s10305_s3 + $0x218] sm:$0xff]  }
 0x2d8   :  { %7548 = vmatmul.mubr.bf16.vlgmr.msra.gmra.mrb[4].mxu1 %v1673_v27  ;;  %7845 = vmatprep.subr.bf16.mxu0 %v8827_v7  ;;  %v8520_v27 = vld [vmem:[%s10305_s3 + $0x2d8] sm:$0xff]  }
 0x2d9   :  { %7572 = vmatpush3.bf16.msra.mxu1 %v8491_v39  ;;  %7587 = vmatprep.mubr.bf16.mxu1 %v1858_v44  ;;  %v8527_v39 = vld [vmem:[%s10305_s3 + $0x310] sm:$0xff]   ;;  %v8532_v44 = vld [vmem:[%s10305_s3 + $0x338] sm:$0xff]  }
 0x2da   :  { %7573 = vmatprep.subr.bf16.mxu1 %v8492_v59 }
 0x2db   :  { %7846 = vmatpush3.bf16.msra.mxu0 %v8827_v7  ;;  %v8497_v7 = vld [vmem:[%s10305_s3 + $0x230] sm:$0xff]  }
 0x2dd   :  { %7574 = vmatpush3.bf16.msra.mxu1 %v8492_v59 }
 0x2de   :  { %7575 = vmatprep.subr.bf16.mxu1 %v8493_v57  ;;  %7848 = vmatmul.mubr.bf16.vlgmr.msra.gmra.mrb[72].mxu0 %v8501_v46 }
 0x2e1   :  { %7576 = vmatpush3.bf16.msra.mxu1 %v8493_v57  ;;  %v8533_v57 = vld [vmem:[%s10305_s3 + $0x340] sm:$0xff]  }
 0x2e2   :  { %7577 = vmatprep.subr.bf16.mxu1 %v8494_v9 }
 0x2e5   :  { %7578 = vmatpush3.bf16.msra.mxu1 %v8494_v9 }
 0x2e6   :  { %7579 = vmatprep.subr.bf16.mxu1 %v8495_v47 }
 0x2e9   :  { %7580 = vmatpush3.bf16.msra.mxu1 %v8495_v47 }
 0x2ea   :  { %7581 = vmatprep.subr.bf16.mxu1 %v8496_v48 }
 0x2ed   :  { %7582 = vmatpush3.bf16.msra.mxu1 %v8496_v48 }
 0x2ee   :  { %7583 = vmatprep.subr.bf16.mxu1 %v8497_v7 }
 0x2f1   :  { %7584 = vmatpush3.bf16.msra.mxu1 %v8497_v7  ;;  %v7609_v50 = vpop.f32.mrb[48].mxu0 }
 0x2f2   :  { %7585 = vmatprep.subr.bf16.mxu1 %v8498_v49  ;;  %v2029_v52 = vpop.f32.mrb[49].mxu0 }
 0x2f3   :  { %v7610_v53 = vpop.f32.mrb[50].mxu0 }
 0x2f4   :  { %v2045_v54 = vpack.c.bf16 %v7610_v53, %v7609_v50  ;;  %v2032_v55 = vpop.f32.mrb[51].mxu0  ;;  %v8535_v50 = vld [vmem:[%s10305_s3 + $0x350] sm:$0xff]   ;;  %v8538_v53 = vld [vmem:[%s10305_s3 + $0x368] sm:$0xff]  }
 0x2f5   :  { %7586 = vmatpush3.bf16.msra.mxu1 %v8498_v49  ;;  %v2044_v56 = vpack.c.bf16 %v2032_v55, %v2029_v52  ;;  %v8534_v49 = vld [vmem:[%s10305_s3 + $0x348] sm:$0xff]   ;;  %v8537_v52 = vld [vmem:[%s10305_s3 + $0x360] sm:$0xff]   ;;  %v8540_v55 = vld [vmem:[%s10305_s3 + $0x378] sm:$0xff]  }
 0x2f6   :  { %7611 = vmatprep.subr.bf16.mxu1 %v8499_v51 }
 0x2f8   :  { %7588 = vmatmul.mubr.bf16.vlgmr.msra.gmra.mrb[4].mxu1 %v1859_v41  ;;  %v8530_v41 = vld [vmem:[%s10305_s3 + $0x328] sm:$0xff]  }
 0x2f9   :  { %7612 = vmatpush3.bf16.msra.mxu1 %v8499_v51  ;;  %7627 = vmatprep.mubr.bf16.mxu1 %v2044_v56  ;;  %v8536_v51 = vld [vmem:[%s10305_s3 + $0x358] sm:$0xff]  }
 0x2fa   :  { %7613 = vmatprep.subr.bf16.mxu1 %v8502_v58 }
 0x2fd   :  { %7614 = vmatpush3.bf16.msra.mxu1 %v8502_v58  ;;  %v8541_v58 = vld [vmem:[%s10305_s3 + $0x380] sm:$0xff]  }
 0x2fe   :  { %7615 = vmatprep.subr.bf16.mxu1 %v8503_v60 }
 0x301   :  { %7616 = vmatpush3.bf16.msra.mxu1 %v8503_v60 }
 0x302   :  { %7617 = vmatprep.subr.bf16.mxu1 %v8504_v61 }
 0x305   :  { %7618 = vmatpush3.bf16.msra.mxu1 %v8504_v61 }
 0x306   :  { %7619 = vmatprep.subr.bf16.mxu1 %v8505_v62 }
 0x309   :  { %7620 = vmatpush3.bf16.msra.mxu1 %v8505_v62 }
 0x30a   :  { %7621 = vmatprep.subr.bf16.mxu1 %v8506_v63 }
 0x30d   :  { %7622 = vmatpush3.bf16.msra.mxu1 %v8506_v63 }
 0x30e   :  { %7623 = vmatprep.subr.bf16.mxu1 %v8507_v0 }
 0x311   :  { %7624 = vmatpush3.bf16.msra.mxu1 %v8507_v0  ;;  %v7649_v2 = vpop.f32.mrb[52].mxu0 }
 0x312   :  { %7625 = vmatprep.subr.bf16.mxu1 %v8508_v1  ;;  %v2215_v4 = vpop.f32.mrb[53].mxu0 }
 0x313   :  { %v7650_v5 = vpop.f32.mrb[54].mxu0 }
 0x314   :  { %v2231_v6 = vpack.c.bf16 %v7650_v5, %v7649_v2  ;;  %v2218_v8 = vpop.f32.mrb[55].mxu0  ;;  %v8543_v2 = vld [vmem:[%s10305_s3 + $0x390] sm:$0xff]   ;;  %v8546_v5 = vld [vmem:[%s10305_s3 + $0x3a8] sm:$0xff]  }
 0x315   :  { %7626 = vmatpush3.bf16.msra.mxu1 %v8508_v1  ;;  %v2230_v10 = vpack.c.bf16 %v2218_v8, %v2215_v4  ;;  %v8542_v1 = vld [vmem:[%s10305_s3 + $0x388] sm:$0xff]   ;;  %v8545_v4 = vld [vmem:[%s10305_s3 + $0x3a0] sm:$0xff]   ;;  %v8548_v8 = vld [vmem:[%s10305_s3 + $0x3b8] sm:$0xff]  }
 0x316   :  { %7651 = vmatprep.subr.bf16.mxu1 %v8509_v3 }
 0x318   :  { %7628 = vmatmul.mubr.bf16.vlgmr.msra.gmra.mrb[4].mxu1 %v2045_v54  ;;  %v8539_v54 = vld [vmem:[%s10305_s3 + $0x370] sm:$0xff]  }
 0x319   :  { %7652 = vmatpush3.bf16.msra.mxu1 %v8509_v3  ;;  %7667 = vmatprep.mubr.bf16.mxu1 %v2230_v10  ;;  %v8544_v3 = vld [vmem:[%s10305_s3 + $0x398] sm:$0xff]  }
 0x31a   :  { %7653 = vmatprep.subr.bf16.mxu1 %v8510_v11 }
 0x31d   :  { %7654 = vmatpush3.bf16.msra.mxu1 %v8510_v11  ;;  %v8549_v11 = vld [vmem:[%s10305_s3 + $0x3c0] sm:$0xff]  }
 0x31e   :  { %7655 = vmatprep.subr.bf16.mxu1 %v8511_v12 }
 0x321   :  { %7656 = vmatpush3.bf16.msra.mxu1 %v8511_v12 }
 0x322   :  { %7657 = vmatprep.subr.bf16.mxu1 %v8512_v13 }
 0x325   :  { %7658 = vmatpush3.bf16.msra.mxu1 %v8512_v13 }
 0x326   :  { %7659 = vmatprep.subr.bf16.mxu1 %v8513_v14 }
 0x329   :  { %7660 = vmatpush3.bf16.msra.mxu1 %v8513_v14 }
 0x32a   :  { %7661 = vmatprep.subr.bf16.mxu1 %v8514_v15 }
 0x32d   :  { %7662 = vmatpush3.bf16.msra.mxu1 %v8514_v15 }
 0x32e   :  { %7663 = vmatprep.subr.bf16.mxu1 %v8515_v16 }
 0x331   :  { %7664 = vmatpush3.bf16.msra.mxu1 %v8515_v16  ;;  %v7689_v18 = vpop.f32.mrb[56].mxu0 }
 0x332   :  { %7665 = vmatprep.subr.bf16.mxu1 %v8516_v17  ;;  %v2401_v20 = vpop.f32.mrb[57].mxu0 }
 0x333   :  { %v7690_v21 = vpop.f32.mrb[58].mxu0 }
 0x334   :  { %v2417_v22 = vpack.c.bf16 %v7690_v21, %v7689_v18  ;;  %v2404_v23 = vpop.f32.mrb[59].mxu0  ;;  %v8551_v18 = vld [vmem:[%s10305_s3 + $0x3d0] sm:$0xff]   ;;  %v8554_v21 = vld [vmem:[%s10305_s3 + $0x3e8] sm:$0xff]  }
 0x335   :  { %7666 = vmatpush3.bf16.msra.mxu1 %v8516_v17  ;;  %v2416_v24 = vpack.c.bf16 %v2404_v23, %v2401_v20  ;;  %v8550_v17 = vld [vmem:[%s10305_s3 + $0x3c8] sm:$0xff]   ;;  %v8553_v20 = vld [vmem:[%s10305_s3 + $0x3e0] sm:$0xff]   ;;  %v8556_v23 = vld [vmem:[%s10305_s3 + $0x3f8] sm:$0xff]  }
 0x336   :  { %7691 = vmatprep.subr.bf16.mxu1 %v8517_v19 }
 0x338   :  { %7668 = vmatmul.mubr.bf16.vlgmr.msra.gmra.mrb[4].mxu1 %v2231_v6  ;;  %v8547_v6 = vld [vmem:[%s10305_s3 + $0x3b0] sm:$0xff]  }
 0x339   :  { %7692 = vmatpush3.bf16.msra.mxu1 %v8517_v19  ;;  %7707 = vmatprep.mubr.bf16.mxu1 %v2416_v24  ;;  %v8552_v19 = vld [vmem:[%s10305_s3 + $0x3d8] sm:$0xff]   ;;  %v8687_v24 = vmov 0.0  }
 0x33a   :  { %7693 = vmatprep.subr.bf16.mxu1 %v8518_v25  ;;  %7871 = vmatprep.subr.bf16.mxu0 %v8687_v24 }
 0x33b   :  { %7875 = vmatprep.mubr.msk.bf16.mxu0 %vm8688_vm0, %v8687_v24 }
 0x33d   :  { %7694 = vmatpush3.bf16.msra.mxu1 %v8518_v25  ;;  %v8557_v25 = vld [vmem:[%s10306_s7] sm:$0xff]  }
 0x33e   :  { %7695 = vmatprep.subr.bf16.mxu1 %v8519_v26 }
 0x341   :  { %7696 = vmatpush3.bf16.msra.mxu1 %v8519_v26  ;;  %v8558_v26 = vld [vmem:[%s10306_s7 + $0x8] sm:$0xff]  }
 0x342   :  { %7697 = vmatprep.subr.bf16.mxu1 %v8520_v27 }
 0x345   :  { %7698 = vmatpush3.bf16.msra.mxu1 %v8520_v27  ;;  %v8560_v27 = vld [vmem:[%s10306_s7 + $0x10] sm:$0xff]  }
 0x346   :  { %7699 = vmatprep.subr.bf16.mxu1 %v8521_v28 }
 0x349   :  { %7700 = vmatpush3.bf16.msra.mxu1 %v8521_v28  ;;  %v8562_v28 = vld [vmem:[%s10306_s7 + $0x18] sm:$0xff]  }
 0x34a   :  { %7701 = vmatprep.subr.bf16.mxu1 %v8522_v30 }
 0x34d   :  { %7702 = vmatpush3.bf16.msra.mxu1 %v8522_v30  ;;  %v8564_v30 = vld [vmem:[%s10306_s7 + $0x20] sm:$0xff]  }
 0x34e   :  { %7703 = vmatprep.subr.bf16.mxu1 %v8523_v32 }
 0x351   :  { %7704 = vmatpush3.bf16.msra.mxu1 %v8523_v32  ;;  %v7729_v34 = vpop.f32.mrb[60].mxu0  ;;  %v8566_v32 = vld [vmem:[%s10306_s7 + $0x28] sm:$0xff]  }
 0x352   :  { %7705 = vmatprep.subr.bf16.mxu1 %v8524_v33  ;;  %v2587_v36 = vpop.f32.mrb[61].mxu0 }
 0x353   :  { %v7730_v37 = vpop.f32.mrb[62].mxu0 }
 0x354   :  { %v2603_v38 = vpack.c.bf16 %v7730_v37, %v7729_v34  ;;  %v2590_v31 = vpop.f32.mrb[63].mxu0 }
 0x355   :  { %7706 = vmatpush3.bf16.msra.mxu1 %v8524_v33  ;;  %v2602_v29 = vpack.c.bf16 %v2590_v31, %v2587_v36  ;;  %v8568_v33 = vld [vmem:[%s10306_s7 + $0x30] sm:$0xff]  }
 0x356   :  { %7731 = vmatprep.subr.bf16.mxu1 %v8525_v35 }
 0x358   :  { %7708 = vmatmul.mubr.bf16.vlgmr.msra.gmra.mrb[4].mxu1 %v2417_v22  ;;  %v8555_v22 = vld [vmem:[%s10305_s3 + $0x3f0] sm:$0xff]  }
 0x359   :  { %7732 = vmatpush3.bf16.msra.mxu1 %v8525_v35  ;;  %7747 = vmatprep.mubr.bf16.mxu1 %v2602_v29 }
 0x35a   :  { %7733 = vmatprep.subr.bf16.mxu1 %v8526_v45 }
 0x35d   :  { %7734 = vmatpush3.bf16.msra.mxu1 %v8526_v45 }
 0x35e   :  { %7735 = vmatprep.subr.bf16.mxu1 %v8527_v39 }
 0x361   :  { %7736 = vmatpush3.bf16.msra.mxu1 %v8527_v39 }
 0x362   :  { %7737 = vmatprep.subr.bf16.mxu1 %v8528_v43 }
 0x365   :  { %7738 = vmatpush3.bf16.msra.mxu1 %v8528_v43 }
 0x366   :  { %7739 = vmatprep.subr.bf16.mxu1 %v8529_v40 }
 0x369   :  { %7740 = vmatpush3.bf16.msra.mxu1 %v8529_v40 }
 0x36a   :  { %7741 = vmatprep.subr.bf16.mxu1 %v8530_v41 }
 0x36d   :  { %7742 = vmatpush3.bf16.msra.mxu1 %v8530_v41 }
 0x36e   :  { %7743 = vmatprep.subr.bf16.mxu1 %v8531_v42 }
 0x371   :  { %7744 = vmatpush3.bf16.msra.mxu1 %v8531_v42  ;;  %v7769_v59 = vpop.f32.mrb[64].mxu0 }
 0x372   :  { %7745 = vmatprep.subr.bf16.mxu1 %v8532_v44  ;;  %v2773_v46 = vpop.f32.mrb[65].mxu0 }
 0x373   :  { %v7770_v9 = vpop.f32.mrb[66].mxu0 }
 0x374   :  { %v2789_v47 = vpack.c.bf16 %v7770_v9, %v7769_v59  ;;  %v2776_v48 = vpop.f32.mrb[67].mxu0 }
 0x375   :  { %7746 = vmatpush3.bf16.msra.mxu1 %v8532_v44  ;;  %v2788_v7 = vpack.c.bf16 %v2776_v48, %v2773_v46 }
 0x376   :  { %7771 = vmatprep.subr.bf16.mxu1 %v8533_v57 }
 0x378   :  { %7748 = vmatmul.mubr.bf16.vlgmr.msra.gmra.mrb[4].mxu1 %v2603_v38 }
 0x379   :  { %7772 = vmatpush3.bf16.msra.mxu1 %v8533_v57  ;;  %7787 = vmatprep.mubr.bf16.mxu1 %v2788_v7 }
 0x37a   :  { %7773 = vmatprep.subr.bf16.mxu1 %v8534_v49 }
 0x37d   :  { %7774 = vmatpush3.bf16.msra.mxu1 %v8534_v49 }
 0x37e   :  { %7775 = vmatprep.subr.bf16.mxu1 %v8535_v50 }
 0x381   :  { %7776 = vmatpush3.bf16.msra.mxu1 %v8535_v50 }
 0x382   :  { %7777 = vmatprep.subr.bf16.mxu1 %v8536_v51 }
 0x385   :  { %7778 = vmatpush3.bf16.msra.mxu1 %v8536_v51 }
 0x386   :  { %7779 = vmatprep.subr.bf16.mxu1 %v8537_v52 }
 0x389   :  { %7780 = vmatpush3.bf16.msra.mxu1 %v8537_v52 }
 0x38a   :  { %7781 = vmatprep.subr.bf16.mxu1 %v8538_v53 }
 0x38d   :  { %7782 = vmatpush3.bf16.msra.mxu1 %v8538_v53 }
 0x38e   :  { %7783 = vmatprep.subr.bf16.mxu1 %v8539_v54 }
 0x391   :  { %7784 = vmatpush3.bf16.msra.mxu1 %v8539_v54  ;;  %v7809_v56 = vpop.f32.mrb[68].mxu0 }
 0x392   :  { %7785 = vmatprep.subr.bf16.mxu1 %v8540_v55  ;;  %v2959_v60 = vpop.f32.mrb[69].mxu0 }
 0x393   :  { %v7810_v61 = vpop.f32.mrb[70].mxu0 }
 0x394   :  { %v2975_v62 = vpack.c.bf16 %v7810_v61, %v7809_v56  ;;  %v2962_v63 = vpop.f32.mrb[71].mxu0 }
 0x395   :  { %7786 = vmatpush3.bf16.msra.mxu1 %v8540_v55  ;;  %v2974_v0 = vpack.c.bf16 %v2962_v63, %v2959_v60 }
 0x396   :  { %7811 = vmatprep.subr.bf16.mxu1 %v8541_v58 }
 0x398   :  { %7788 = vmatmul.mubr.bf16.vlgmr.msra.gmra.mrb[4].mxu1 %v2789_v47 }
 0x399   :  { %7812 = vmatpush3.bf16.msra.mxu1 %v8541_v58  ;;  %7827 = vmatprep.mubr.bf16.mxu1 %v2974_v0  ;;  %v6269_v0 = vld [vmem:[%s10307_s4] ss:$0 sm:$0xff] }
 0x39a   :  { %7813 = vmatprep.subr.bf16.mxu1 %v8542_v1 }
 0x39d   :  { %7814 = vmatpush3.bf16.msra.mxu1 %v8542_v1 }
 0x39e   :  { %7815 = vmatprep.subr.bf16.mxu1 %v8543_v2 }
 0x3a1   :  { %7816 = vmatpush3.bf16.msra.mxu1 %v8543_v2 }
 0x3a2   :  { %7817 = vmatprep.subr.bf16.mxu1 %v8544_v3 }
 0x3a5   :  { %7818 = vmatpush3.bf16.msra.mxu1 %v8544_v3 }
 0x3a6   :  { %7819 = vmatprep.subr.bf16.mxu1 %v8545_v4 }
 0x3a9   :  { %7820 = vmatpush3.bf16.msra.mxu1 %v8545_v4 }
 0x3aa   :  { %7821 = vmatprep.subr.bf16.mxu1 %v8546_v5 }
 0x3ad   :  { %7822 = vmatpush3.bf16.msra.mxu1 %v8546_v5  ;;  %v6270_v5 = vld [vmem:[%s10308_s5] ss:$0 sm:$0xff] }
 0x3ae   :  { %7823 = vmatprep.subr.bf16.mxu1 %v8547_v6 }
 0x3b1   :  { %7824 = vmatpush3.bf16.msra.mxu1 %v8547_v6  ;;  %v7849_v10 = vpop.f32.mrb[72].mxu0 }
 0x3b2   :  { %7825 = vmatprep.subr.bf16.mxu1 %v8548_v8  ;;  %v3145_v12 = vpop.f32.mrb[73].mxu0 }
 0x3b3   :  { %v7850_v13 = vpop.f32.mrb[74].mxu0 }
 0x3b4   :  { %v3161_v14 = vpack.c.bf16 %v7850_v13, %v7849_v10  ;;  %v3148_v15 = vpop.f32.mrb[75].mxu0 }
 0x3b5   :  { %7826 = vmatpush3.bf16.msra.mxu1 %v8548_v8  ;;  %v3160_v16 = vpack.c.bf16 %v3148_v15, %v3145_v12 }
 0x3b6   :  { %7851 = vmatprep.subr.bf16.mxu1 %v8549_v11 }
 0x3b8   :  { %7828 = vmatmul.mubr.bf16.vlgmr.msra.gmra.mrb[4].mxu1 %v2975_v62 }
 0x3b9   :  { %7852 = vmatpush3.bf16.msra.mxu1 %v8549_v11  ;;  %7867 = vmatprep.mubr.bf16.mxu1 %v3160_v16 }
 0x3ba   :  { %7853 = vmatprep.subr.bf16.mxu1 %v8550_v17 }
 0x3bd   :  { %7854 = vmatpush3.bf16.msra.mxu1 %v8550_v17 }
 0x3be   :  { %7855 = vmatprep.subr.bf16.mxu1 %v8551_v18 }
 0x3c1   :  { %7856 = vmatpush3.bf16.msra.mxu1 %v8551_v18 }
 0x3c2   :  { %7857 = vmatprep.subr.bf16.mxu1 %v8552_v19 }
 0x3c5   :  { %7858 = vmatpush3.bf16.msra.mxu1 %v8552_v19 }
 0x3c6   :  { %7859 = vmatprep.subr.bf16.mxu1 %v8553_v20 }
 0x3c9   :  { %7860 = vmatpush3.bf16.msra.mxu1 %v8553_v20 }
 0x3ca   :  { %7861 = vmatprep.subr.bf16.mxu1 %v8554_v21 }
 0x3cd   :  { %7862 = vmatpush3.bf16.msra.mxu1 %v8554_v21 }
 0x3ce   :  { %7863 = vmatprep.subr.bf16.mxu1 %v8555_v22 }
 0x3d1   :  { %7864 = vmatpush3.bf16.msra.mxu1 %v8555_v22 }
 0x3d2   :  { %7865 = vmatprep.subr.bf16.mxu1 %v8556_v23 }
 0x3d5   :  { %7866 = vmatpush3.bf16.msra.mxu1 %v8556_v23 }
 0x3d6   :  { %7907 = vmatprep.subr.bf16.mxu1 %v8687_v24 }
 0x3d8   :  { %7868 = vmatmul.mubr.bf16.vlgmr.msra.gmra.mrb[4].mxu1 %v3161_v14 }
 0x3d9   :  { %7923 = vmatprep.mubr.msk.bf16.mxu1 %vm8688_vm0, %v8687_v24  ;;  %7908 = vmatpush3.bf16.msra.mxu1 %v8557_v25 }
 0x3da   :  { %7909 = vmatprep.subr.bf16.mxu1 %v8687_v24 }
 0x3dd   :  { %7910 = vmatpush3.bf16.msra.mxu1 %v8558_v26 }
 0x3de   :  { %7911 = vmatprep.subr.bf16.mxu1 %v8687_v24 }
 0x3e1   :  { %7912 = vmatpush3.bf16.msra.mxu1 %v8560_v27  ;;  %v3351_v27 = vld [vmem:[%s10309_s6] sm:$0xf] }
 0x3e2   :  { %7913 = vmatprep.subr.bf16.mxu1 %v8687_v24 }
 0x3e5   :  { %7914 = vmatpush3.bf16.msra.mxu1 %v8562_v28  ;;  %v6272_v28 = vld [vmem:[%s10309_s6 + $0x4] sm:$0xf] }
 0x3e6   :  { %7915 = vmatprep.subr.bf16.mxu1 %v8687_v24 }
 0x3e9   :  { %7916 = vmatpush3.bf16.msra.mxu1 %v8564_v30  ;;  %v8559_v30 = vld [vmem:[%s10306_s7 + $0x40] sm:$0xff]  }
 0x3ea   :  { %7917 = vmatprep.subr.bf16.mxu1 %v8687_v24 }
 0x3ed   :  { %7918 = vmatpush3.bf16.msra.mxu1 %v8566_v32  ;;  %v8561_v32 = vld [vmem:[%s10306_s7 + $0x48] sm:$0xff]  }
 0x3ee   :  { %7919 = vmatprep.subr.bf16.mxu1 %v8687_v24 }
 0x3f1   :  { %7920 = vmatpush3.bf16.msra.mxu1 %v8568_v33  ;;  %v8563_v33 = vld [vmem:[%s10306_s7 + $0x50] sm:$0xff]  }
 0x3f2   :  { %7921 = vmatprep.subr.bf16.mxu1 %v8687_v24 }
 0x4ab   :  { %v7869_v34 = vpop.f32.mrb[4].mxu1 }
 0x4ac   :  { %v3261_v35 = vpop.f32.mrb[5].mxu1 }
 0x4ad   :  { %v7870_v36 = vpop.f32.mrb[6].mxu1 }
 0x4ae   :  { %v3264_v37 = vpop.f32.mrb[7].mxu1 }
 0x4af   :  { %v3282_v38 = vadd.f32 %v3264_v37, %v3261_v35 }
 0x4b1   :  { %v3283_v31 = vadd.f32 %v7869_v34, %v3282_v38  ;;  %v8571_v38 = vld [vmem:[%s10306_s7 + $0x70] sm:$0xff]  }
 0x4b3   :  { %v3284_v29 = vadd.f32 %v7870_v36, %v3283_v31  ;;  %v8572_v31 = vld [vmem:[%s10306_s7 + $0x78] sm:$0xff]  }
 0x4b5   :  { %v3285_v45 = vrot.slane %v3284_v29, 4 }
 0x4b7   :  { %v3286_v39 = vadd.f32 %v3285_v45, %v3284_v29 }
 0x4b9   :  { %v3287_v43 = vrot.slane %v3286_v39, 2 }
 0x4bb   :  { %v3288_v40 = vadd.f32 %v3287_v43, %v3286_v39 }
 0x4bd   :  { %v3289_v41 = vrot.slane %v3288_v40, 1 }
 0x4bf   :  { %v3290_v42 = vadd.f32 %v3289_v41, %v3288_v40 }
 0x4c1   :  { %v3292_v44 = vmul.f32 0.03125, %v3290_v42 }
 0x4c3   :  { %v3293_v59 = vsub.f32 %v3261_v35, %v3292_v44  ;;  %v3294_v57 = vsub.f32 %v3264_v37, %v3292_v44  ;;  %v3295_v46 = vsub.f32 %v7869_v34, %v3292_v44  ;;  %v3296_v9 = vsub.f32 %v7870_v36, %v3292_v44  ;;  %v8565_v34 = vld [vmem:[%s10306_s7 + $0x58] sm:$0xff]   ;;  %v8567_v35 = vld [vmem:[%s10306_s7 + $0x60] sm:$0xff]   ;;  %v8569_v36 = vld [vmem:[%s10306_s7 + $0x68] sm:$0xff]  }
 0x4c4   :  { %v8570_v37 = vld [vmem:[%s10306_s7 + $0x38] sm:$0xff]  }
 0x4c5   :  { %v3297_v47 = vmul.f32 %v3293_v59, %v3293_v59  ;;  %v3298_v48 = vmul.f32 %v3294_v57, %v3294_v57  ;;  %v3299_v7 = vmul.f32 %v3295_v46, %v3295_v46  ;;  %v3300_v50 = vmul.f32 %v3296_v9, %v3296_v9  ;;  %7922 = vmatpush3.bf16.msra.mxu1 %v8570_v37 }
 0x4c6   :  { %7963 = vmatprep.subr.bf16.mxu1 %v8687_v24 }
 0x4c7   :  { %v3301_v49 = vadd.f32 %v3298_v48, %v3297_v47  ;;  %v8574_v47 = vld [vmem:[%s10306_s7 + $0x88] sm:$0xff]   ;;  %v8575_v48 = vld [vmem:[%s10306_s7 + $0x90] sm:$0xff]  }
 0x4c9   :  { %v3302_v51 = vadd.f32 %v3301_v49, %v3299_v7  ;;  %v8576_v7 = vld [vmem:[%s10306_s7 + $0x98] sm:$0xff]   ;;  %v8577_v49 = vld [vmem:[%s10306_s7 + $0xa0] sm:$0xff]  }
 0x4cb   :  { %v3303_v52 = vadd.f32 %v3302_v51, %v3300_v50  ;;  %v8578_v50 = vld [vmem:[%s10306_s7 + $0xa8] sm:$0xff]   ;;  %v8579_v51 = vld [vmem:[%s10306_s7 + $0xb0] sm:$0xff]  }
 0x4cd   :  { %v3304_v53 = vrot.slane %v3303_v52, 4 }
 0x4cf   :  { %v3305_v54 = vadd.f32 %v3304_v53, %v3303_v52  ;;  %v8580_v52 = vld [vmem:[%s10306_s7 + $0xb8] sm:$0xff]   ;;  %v8581_v53 = vld [vmem:[%s10306_s7 + $0xc0] sm:$0xff]  }
 0x4d1   :  { %v3306_v55 = vrot.slane %v3305_v54, 2 }
 0x4d3   :  { %v3307_v56 = vadd.f32 %v3306_v55, %v3305_v54  ;;  %v8582_v54 = vld [vmem:[%s10306_s7 + $0xc8] sm:$0xff]   ;;  %v8583_v55 = vld [vmem:[%s10306_s7 + $0xd0] sm:$0xff]  }
 0x4d5   :  { %v3308_v58 = vrot.slane %v3307_v56, 1 }
 0x4d7   :  { %v3309_v60 = vadd.f32 %v3308_v58, %v3307_v56  ;;  %v8585_v56 = vld [vmem:[%s10306_s7 + $0xd8] sm:$0xff]   ;;  %v8587_v58 = vld [vmem:[%s10306_s7 + $0xe0] sm:$0xff]  }
 0x4d9   :  { %v3310_v61 = vmul.f32 0.03125, %v3309_v60  ;;  %v8589_v60 = vld [vmem:[%s10306_s7 + $0xe8] sm:$0xff]  }
 0x4db   :  { %v3311_v62 = vadd.f32 1e-05, %v3310_v61 }
 0x4dd   :  { %8685 = vrsqrt.f32 %v3311_v62 }
 0x4e7   :  { %v8686_v63 = vpop.eup %8685 }
 0x4e8   :  { %v3313_v1 = vmul.f32 %v8686_v63, %v3293_v59  ;;  %v3314_v2 = vmul.f32 %v8686_v63, %v3294_v57  ;;  %v3315_v3 = vmul.f32 %v8686_v63, %v3295_v46  ;;  %v3316_v4 = vmul.f32 %v8686_v63, %v3296_v9  ;;  %v6306_v46 = vld [vmem:[%s10309_s6 + $0x8] sm:$0xf]  ;;  %v8573_v9 = vld [vmem:[%s10306_s7 + $0x80] sm:$0xff]  }
 0x4ea   :  { %v3323_v6 = vmul.f32 %v6269_v0, %v3313_v1  ;;  %v3324_v8 = vmul.f32 %v6269_v0, %v3314_v2  ;;  %v3325_v10 = vmul.f32 %v6269_v0, %v3315_v3  ;;  %v3326_v11 = vmul.f32 %v6269_v0, %v3316_v4 }
 0x4ec   :  { %v3333_v12 = vadd.f32 %v6270_v5, %v3323_v6  ;;  %v3334_v13 = vadd.f32 %v6270_v5, %v3324_v8  ;;  %v3335_v14 = vadd.f32 %v6270_v5, %v3325_v10  ;;  %v3336_v15 = vadd.f32 %v6270_v5, %v3326_v11 }
 0x4ee   :  { %vm3337_vm1 = vcmp.ge.f32.partialorder %v3333_v12, 0.0  ;;  %vm3338_vm2 = vcmp.ge.f32.partialorder %v3334_v13, 0.0  ;;  %vm3339_vm3 = vcmp.ge.f32.partialorder %v3335_v14, 0.0  ;;  %vm3340_vm4 = vcmp.ge.f32.partialorder %v3336_v15, 0.0 }
 0x4ef   :  { %v3341_v16 = vmul.f32 0.2, %v3333_v12  ;;  %v3342_v17 = vmul.f32 0.2, %v3334_v13  ;;  %v3343_v18 = vmul.f32 0.2, %v3335_v14 }
 0x4f0   :  { %v3344_v19 = vmul.f32 0.2, %v3336_v15 }
 0x4f1   :  { %v3345_v20 = vsel %vm3337_vm1, %v3333_v12, %v3341_v16  ;;  %v3346_v21 = vsel %vm3338_vm2, %v3334_v13, %v3342_v17  ;;  %v3347_v22 = vsel %vm3339_vm3, %v3335_v14, %v3343_v18  ;;  %v6332_v13 = vld [vmem:[%s10309_s6 + $0xc] sm:$0xf]  ;;  %v6358_v14 = vld [vmem:[%s10309_s6 + $0x10] sm:$0xf]  ;;  %v8590_v18 = vld [vmem:[%s10306_s7 + $0x118] sm:$0xff]  }
 0x4f2   :  { %v3348_v23 = vsel %vm3340_vm4, %v3336_v15, %v3344_v19  ;;  %v9607_v25 = vpack.c.bf16 %v3346_v21, %v3345_v20  ;;  %v8584_v15 = vld [vmem:[%s10306_s7 + $0x100] sm:$0xff]   ;;  %v8586_v16 = vld [vmem:[%s10306_s7 + $0x108] sm:$0xff]   ;;  %v8588_v17 = vld [vmem:[%s10306_s7 + $0x110] sm:$0xff]  }
 0x4f3   :  { %v9609_v26 = vpack.c.bf16 %v3348_v23, %v3347_v22  ;;  %v8591_v19 = vld [vmem:[%s10306_s7 + $0xf0] sm:$0xff]   ;;  %v8592_v20 = vld [vmem:[%s10306_s7 + $0x120] sm:$0xff]   ;;  %v8593_v21 = vld [vmem:[%s10306_s7 + $0xf8] sm:$0xff]  }
 0x4f4   :  { %7872 = vmatpush3.bf16.msra.mxu0 %v9607_v25  ;;  %v8594_v22 = vld [vmem:[%s10306_s7 + $0x128] sm:$0xff]   ;;  %v8595_v23 = vld [vmem:[%s10306_s7 + $0x130] sm:$0xff]  }
 0x4f5   :  { %7873 = vmatprep.subr.bf16.mxu0 %v8687_v24 }
 0x4f8   :  { %7874 = vmatpush3.bf16.msra.mxu0 %v9609_v26 }
 0x4f9   :  { %7879 = vmatprep.subr.bf16.mxu0 %v8687_v24 }
 0x4fb   :  { %7876 = vmatmul.mubr.msk.bf16.vlgmr.msra.gmra.mrb[76].mxu0 %vm3352_vm5, %v3351_v27  ;;  %v8596_v27 = vld [vmem:[%s10306_s7 + $0x138] sm:$0xff]  }
 0x4fc   :  { %7880 = vmatpush3.bf16.msra.mxu0 %v9607_v25  ;;  %7883 = vmatprep.mubr.msk.bf16.mxu0 %vm8688_vm0, %v8687_v24 }
 0x4fd   :  { %7881 = vmatprep.subr.bf16.mxu0 %v8687_v24 }
 0x500   :  { %7882 = vmatpush3.bf16.msra.mxu0 %v9609_v26 }
 0x501   :  { %7887 = vmatprep.subr.bf16.mxu0 %v8687_v24 }
 0x503   :  { %7884 = vmatmul.mubr.msk.bf16.vlgmr.msra.gmra.mrb[80].mxu0 %vm3352_vm5, %v6272_v28 }
 0x504   :  { %7888 = vmatpush3.bf16.msra.mxu0 %v8559_v30  ;;  %7903 = vmatprep.mubr.msk.bf16.mxu0 %vm8688_vm0, %v8687_v24 }
 0x505   :  { %7889 = vmatprep.subr.bf16.mxu0 %v8687_v24 }
 0x508   :  { %7890 = vmatpush3.bf16.msra.mxu0 %v8561_v32 }
 0x509   :  { %7891 = vmatprep.subr.bf16.mxu0 %v8687_v24 }
 0x50c   :  { %7892 = vmatpush3.bf16.msra.mxu0 %v8563_v33 }
 0x50d   :  { %7893 = vmatprep.subr.bf16.mxu0 %v8687_v24 }
 0x510   :  { %7894 = vmatpush3.bf16.msra.mxu0 %v8565_v34 }
 0x511   :  { %7895 = vmatprep.subr.bf16.mxu0 %v8687_v24 }
 0x514   :  { %7896 = vmatpush3.bf16.msra.mxu0 %v8567_v35 }
 0x515   :  { %7897 = vmatprep.subr.bf16.mxu0 %v8687_v24 }
 0x518   :  { %7898 = vmatpush3.bf16.msra.mxu0 %v8569_v36 }
 0x519   :  { %7899 = vmatprep.subr.bf16.mxu0 %v8687_v24 }
 0x51c   :  { %7900 = vmatpush3.bf16.msra.mxu0 %v8571_v38 }
 0x51d   :  { %7901 = vmatprep.subr.bf16.mxu0 %v8687_v24 }
 0x520   :  { %7902 = vmatpush3.bf16.msra.mxu0 %v8572_v31 }
 0x521   :  { %7927 = vmatprep.subr.bf16.mxu0 %v8687_v24 }
 0x5ce   :  { %v3390_v29 = vpop.f32.mrb[76].mxu0 }
 0x5cf   :  { %v3396_v45 = vpack.c.bf16 %v3390_v29, %v3390_v29  ;;  %v7877_v39 = vpop.f32.mrb[77].mxu0 }
 0x5d0   :  { %v3393_v43 = vpop.f32.mrb[78].mxu0 }
 0x5d1   :  { %v7878_v40 = vpop.f32.mrb[79].mxu0  ;;  %7924 = vmatmul.mubr.bf16.vlgmr.msra.gmra.mrb[8].mxu1 %v3396_v45  ;;  %v6384_v45 = vld [vmem:[%s10309_s6 + $0x14] sm:$0xf]  ;;  %v8597_v43 = vld [vmem:[%s10306_s7 + $0x140] sm:$0xff]  }
 0x5d2   :  { %7979 = vmatprep.mubr.msk.bf16.mxu1 %vm8688_vm0, %v8687_v24  ;;  %7964 = vmatpush3.bf16.msra.mxu1 %v8581_v53  ;;  %v8609_v53 = vld [vmem:[%s10306_s7 + $0x178] sm:$0xff]  }
 0x5d3   :  { %7965 = vmatprep.subr.bf16.mxu1 %v8687_v24 }
 0x5d6   :  { %v3452_v41 = vpop.f32.mrb[80].mxu0  ;;  %7966 = vmatpush3.bf16.msra.mxu1 %v8582_v54  ;;  %v8610_v54 = vld [vmem:[%s10306_s7 + $0x1a8] sm:$0xff]  }
 0x5d7   :  { %v3458_v42 = vpack.c.bf16 %v3452_v41, %v3452_v41  ;;  %v7885_v44 = vpop.f32.mrb[81].mxu0  ;;  %7967 = vmatprep.subr.bf16.mxu1 %v8687_v24 }
 0x5d8   :  { %v3455_v59 = vpop.f32.mrb[82].mxu0  ;;  %v8598_v44 = vld [vmem:[%s10306_s7 + $0x148] sm:$0xff]  }
 0x5d9   :  { %v7886_v57 = vpop.f32.mrb[83].mxu0  ;;  %7904 = vmatmul.mubr.bf16.vlgmr.msra.gmra.mrb[84].mxu0 %v3458_v42  ;;  %v6410_v59 = vld [vmem:[%s10309_s6 + $0x18] sm:$0xf] }
 0x5da   :  { %7928 = vmatpush3.bf16.msra.mxu0 %v9607_v25  ;;  %7931 = vmatprep.mubr.msk.bf16.mxu0 %vm8688_vm0, %v8687_v24  ;;  %v8600_v57 = vld [vmem:[%s10306_s7 + $0x180] sm:$0xff]  }
 0x5db   :  { %7929 = vmatprep.subr.bf16.mxu0 %v8687_v24  ;;  %7968 = vmatpush3.bf16.msra.mxu1 %v8583_v55  ;;  %v8611_v55 = vld [vmem:[%s10306_s7 + $0x1b0] sm:$0xff]  }
 0x5dc   :  { %7969 = vmatprep.subr.bf16.mxu1 %v8687_v24 }
 0x5de   :  { %7930 = vmatpush3.bf16.msra.mxu0 %v9609_v26 }
 0x5df   :  { %7935 = vmatprep.subr.bf16.mxu0 %v8687_v24  ;;  %7970 = vmatpush3.bf16.msra.mxu1 %v8585_v56  ;;  %v8612_v56 = vld [vmem:[%s10306_s7 + $0x1b8] sm:$0xff]  }
 0x5e0   :  { %7971 = vmatprep.subr.bf16.mxu1 %v8687_v24 }
 0x5e1   :  { %7932 = vmatmul.mubr.msk.bf16.vlgmr.msra.gmra.mrb[88].mxu0 %vm3352_vm5, %v6306_v46  ;;  %v8599_v46 = vld [vmem:[%s10306_s7 + $0x150] sm:$0xff]  }
 0x5e2   :  { %7936 = vmatpush3.bf16.msra.mxu0 %v8573_v9  ;;  %7951 = vmatprep.mubr.msk.bf16.mxu0 %vm8688_vm0, %v8687_v24  ;;  %v8602_v9 = vld [vmem:[%s10306_s7 + $0x188] sm:$0xff]  }
 0x5e3   :  { %7937 = vmatprep.subr.bf16.mxu0 %v8687_v24  ;;  %7972 = vmatpush3.bf16.msra.mxu1 %v8587_v58 }
 0x5e4   :  { %7973 = vmatprep.subr.bf16.mxu1 %v8687_v24 }
 0x5e6   :  { %7938 = vmatpush3.bf16.msra.mxu0 %v8574_v47  ;;  %v8601_v47 = vld [vmem:[%s10306_s7 + $0x158] sm:$0xff]  }
 0x5e7   :  { %7939 = vmatprep.subr.bf16.mxu0 %v8687_v24  ;;  %7974 = vmatpush3.bf16.msra.mxu1 %v8589_v60 }
 0x5e8   :  { %7975 = vmatprep.subr.bf16.mxu1 %v8687_v24 }
 0x5ea   :  { %7940 = vmatpush3.bf16.msra.mxu0 %v8575_v48  ;;  %v8604_v48 = vld [vmem:[%s10306_s7 + $0x190] sm:$0xff]  }
 0x5eb   :  { %7941 = vmatprep.subr.bf16.mxu0 %v8687_v24  ;;  %7976 = vmatpush3.bf16.msra.mxu1 %v8591_v19  ;;  %v8614_v19 = vld [vmem:[%s10306_s7 + $0x1c8] sm:$0xff]  }
 0x5ec   :  { %7977 = vmatprep.subr.bf16.mxu1 %v8687_v24 }
 0x5ee   :  { %7942 = vmatpush3.bf16.msra.mxu0 %v8576_v7  ;;  %v8603_v7 = vld [vmem:[%s10306_s7 + $0x160] sm:$0xff]  }
 0x5ef   :  { %7943 = vmatprep.subr.bf16.mxu0 %v8687_v24  ;;  %7978 = vmatpush3.bf16.msra.mxu1 %v8593_v21  ;;  %v8616_v21 = vld [vmem:[%s10306_s7 + $0x200] sm:$0xff]  }
 0x5f0   :  { %8011 = vmatprep.subr.bf16.mxu1 %v8687_v24 }
 0x5f2   :  { %7944 = vmatpush3.bf16.msra.mxu0 %v8577_v49  ;;  %v8606_v49 = vld [vmem:[%s10306_s7 + $0x198] sm:$0xff]  }
 0x5f3   :  { %7945 = vmatprep.subr.bf16.mxu0 %v8687_v24 }
 0x5f6   :  { %7946 = vmatpush3.bf16.msra.mxu0 %v8578_v50  ;;  %v8605_v50 = vld [vmem:[%s10306_s7 + $0x168] sm:$0xff]  }
 0x5f7   :  { %7947 = vmatprep.subr.bf16.mxu0 %v8687_v24 }
 0x5fa   :  { %7948 = vmatpush3.bf16.msra.mxu0 %v8579_v51  ;;  %v8607_v51 = vld [vmem:[%s10306_s7 + $0x170] sm:$0xff]  }
 0x5fb   :  { %7949 = vmatprep.subr.bf16.mxu0 %v8687_v24 }
 0x5fe   :  { %7950 = vmatpush3.bf16.msra.mxu0 %v8580_v52  ;;  %v8608_v52 = vld [vmem:[%s10306_s7 + $0x1a0] sm:$0xff]  }
 0x5ff   :  { %7955 = vmatprep.subr.bf16.mxu0 %v8687_v24 }
 0x6a4   :  { %v3646_v61 = vpop.f32.mrb[8].mxu1 }
 0x6a5   :  { %v7925_v62 = vpop.f32.mrb[9].mxu1 }
 0x6a6   :  { %v3649_v63 = vpop.f32.mrb[10].mxu1 }
 0x6a7   :  { %v7926_v0 = vpop.f32.mrb[11].mxu1 }
 0x6ac   :  { %v3558_v1 = vpop.f32.mrb[84].mxu0 }
 0x6ad   :  { %v3647_v2 = vadd.f32 %v3646_v61, %v3558_v1  ;;  %v7905_v3 = vpop.f32.mrb[85].mxu0 }
 0x6ae   :  { %v3561_v4 = vpop.f32.mrb[86].mxu0 }
 0x6af   :  { %v7906_v5 = vpop.f32.mrb[87].mxu0 }
 0x6b4   :  { %v3691_v6 = vpop.f32.mrb[88].mxu0 }
 0x6b5   :  { %v3697_v8 = vpack.c.bf16 %v3691_v6, %v3691_v6  ;;  %v7933_v10 = vpop.f32.mrb[89].mxu0 }
 0x6b6   :  { %v3694_v11 = vpop.f32.mrb[90].mxu0 }
 0x6b7   :  { %v7934_v12 = vpop.f32.mrb[91].mxu0  ;;  %7952 = vmatmul.mubr.bf16.vlgmr.msra.gmra.mrb[92].mxu0 %v3697_v8 }
 0x6b8   :  { %7956 = vmatpush3.bf16.msra.mxu0 %v9607_v25  ;;  %7959 = vmatprep.mubr.msk.bf16.mxu0 %vm8688_vm0, %v8687_v24 }
 0x6b9   :  { %7957 = vmatprep.subr.bf16.mxu0 %v8687_v24 }
 0x6bc   :  { %7958 = vmatpush3.bf16.msra.mxu0 %v9609_v26 }
 0x6bd   :  { %7983 = vmatprep.subr.bf16.mxu0 %v8687_v24 }
 0x6bf   :  { %7960 = vmatmul.mubr.msk.bf16.vlgmr.msra.gmra.mrb[96].mxu0 %vm3352_vm5, %v6332_v13  ;;  %v6436_v13 = vld [vmem:[%s10309_s6 + $0x1c] sm:$0xf] }
 0x6c0   :  { %7984 = vmatpush3.bf16.msra.mxu0 %v9607_v25  ;;  %7987 = vmatprep.mubr.msk.bf16.mxu0 %vm8688_vm0, %v8687_v24 }
 0x6c1   :  { %7985 = vmatprep.subr.bf16.mxu0 %v8687_v24 }
 0x6c4   :  { %7986 = vmatpush3.bf16.msra.mxu0 %v9609_v26 }
 0x6c5   :  { %7991 = vmatprep.subr.bf16.mxu0 %v8687_v24 }
 0x6c7   :  { %7988 = vmatmul.mubr.msk.bf16.vlgmr.msra.gmra.mrb[100].mxu0 %vm3352_vm5, %v6358_v14 }
 0x6c8   :  { %7992 = vmatpush3.bf16.msra.mxu0 %v8584_v15  ;;  %8007 = vmatprep.mubr.msk.bf16.mxu0 %vm8688_vm0, %v8687_v24  ;;  %v8613_v15 = vld [vmem:[%s10306_s7 + $0x1c0] sm:$0xff]  }
 0x6c9   :  { %7993 = vmatprep.subr.bf16.mxu0 %v8687_v24 }
 0x6cc   :  { %7994 = vmatpush3.bf16.msra.mxu0 %v8586_v16 }
 0x6cd   :  { %7995 = vmatprep.subr.bf16.mxu0 %v8687_v24 }
 0x6d0   :  { %7996 = vmatpush3.bf16.msra.mxu0 %v8588_v17 }
 0x6d1   :  { %7997 = vmatprep.subr.bf16.mxu0 %v8687_v24 }
 0x6d4   :  { %7998 = vmatpush3.bf16.msra.mxu0 %v8590_v18 }
 0x6d5   :  { %7999 = vmatprep.subr.bf16.mxu0 %v8687_v24 }
 0x6d8   :  { %8000 = vmatpush3.bf16.msra.mxu0 %v8592_v20  ;;  %v6462_v20 = vld [vmem:[%s10309_s6 + $0x20] sm:$0xf] }
 0x6d9   :  { %8001 = vmatprep.subr.bf16.mxu0 %v8687_v24 }
 0x6dc   :  { %8002 = vmatpush3.bf16.msra.mxu0 %v8594_v22  ;;  %v8615_v22 = vld [vmem:[%s10306_s7 + $0x1d0] sm:$0xff]  }
 0x6dd   :  { %8003 = vmatprep.subr.bf16.mxu0 %v8687_v24 }
 0x6e0   :  { %8004 = vmatpush3.bf16.msra.mxu0 %v8595_v23  ;;  %v8618_v23 = vld [vmem:[%s10306_s7 + $0x208] sm:$0xff]  }
 0x6e1   :  { %8005 = vmatprep.subr.bf16.mxu0 %v8687_v24 }
 0x6e4   :  { %8006 = vmatpush3.bf16.msra.mxu0 %v8596_v27  ;;  %v8617_v27 = vld [vmem:[%s10306_s7 + $0x1d8] sm:$0xff]  }
 0x6e5   :  { %8039 = vmatprep.subr.bf16.mxu0 %v8687_v24 }
 0x78a   :  { %v3797_v28 = vpop.f32.mrb[92].mxu0 }
 0x78b   :  { %v9799_v30 = vadd.f32 %v3797_v28, %v3647_v2  ;;  %v7953_v32 = vpop.f32.mrb[93].mxu0  ;;  %v8620_v28 = vld [vmem:[%s10306_s7 + $0x210] sm:$0xff]  }
 0x78c   :  { %v3800_v33 = vpop.f32.mrb[94].mxu0  ;;  %v8622_v32 = vld [vmem:[%s10306_s7 + $0x218] sm:$0xff]  }
 0x78d   :  { %v7954_v34 = vpop.f32.mrb[95].mxu0  ;;  %v8621_v33 = vld [vmem:[%s10306_s7 + $0x1e8] sm:$0xff]  }
 0x78e   :  { %v8623_v34 = vld [vmem:[%s10306_s7 + $0x1f0] sm:$0xff]  }
 0x792   :  { %v3843_v35 = vpop.f32.mrb[96].mxu0 }
 0x793   :  { %v3849_v36 = vpack.c.bf16 %v3843_v35, %v3843_v35  ;;  %v7961_v37 = vpop.f32.mrb[97].mxu0  ;;  %v8624_v35 = vld [vmem:[%s10306_s7 + $0x220] sm:$0xff]  }
 0x794   :  { %v3846_v38 = vpop.f32.mrb[98].mxu0  ;;  %v8626_v37 = vld [vmem:[%s10306_s7 + $0x228] sm:$0xff]  }
 0x795   :  { %v7962_v31 = vpop.f32.mrb[99].mxu0  ;;  %7980 = vmatmul.mubr.bf16.vlgmr.msra.gmra.mrb[12].mxu1 %v3849_v36  ;;  %v8625_v36 = vld [vmem:[%s10306_s7 + $0x1f8] sm:$0xff]   ;;  %v8627_v38 = vld [vmem:[%s10306_s7 + $0x230] sm:$0xff]  }
 0x796   :  { %8012 = vmatpush3.bf16.msra.mxu1 %v9607_v25  ;;  %8015 = vmatprep.mubr.msk.bf16.mxu1 %vm8688_vm0, %v8687_v24  ;;  %v8628_v31 = vld [vmem:[%s10306_s7 + $0x238] sm:$0xff]  }
 0x797   :  { %8013 = vmatprep.subr.bf16.mxu1 %v8687_v24 }
 0x79a   :  { %8014 = vmatpush3.bf16.msra.mxu1 %v9609_v26  ;;  %v3995_v29 = vpop.f32.mrb[100].mxu0 }
 0x79b   :  { %v4001_v39 = vpack.c.bf16 %v3995_v29, %v3995_v29  ;;  %8019 = vmatprep.subr.bf16.mxu1 %v8687_v24  ;;  %v7989_v40 = vpop.f32.mrb[101].mxu0 }
 0x79c   :  { %v3998_v41 = vpop.f32.mrb[102].mxu0 }
 0x79d   :  { %8008 = vmatmul.mubr.bf16.vlgmr.msra.gmra.mrb[104].mxu0 %v4001_v39  ;;  %8016 = vmatmul.mubr.msk.bf16.vlgmr.msra.gmra.mrb[16].mxu1 %vm3352_vm5, %v6384_v45  ;;  %v7990_v42 = vpop.f32.mrb[103].mxu0 }
 0x79e   :  { %8040 = vmatpush3.bf16.msra.mxu0 %v9607_v25  ;;  %8043 = vmatprep.mubr.msk.bf16.mxu0 %vm8688_vm0, %v8687_v24 }
 0x79f   :  { %8041 = vmatprep.subr.bf16.mxu0 %v8687_v24  ;;  %8020 = vmatpush3.bf16.msra.mxu1 %v8597_v43 }
 0x7a0   :  { %8021 = vmatprep.subr.bf16.mxu1 %v8687_v24  ;;  %8035 = vmatprep.mubr.msk.bf16.mxu1 %vm8688_vm0, %v8687_v24 }
 0x7a2   :  { %8042 = vmatpush3.bf16.msra.mxu0 %v9609_v26 }
 0x7a3   :  { %8022 = vmatpush3.bf16.msra.mxu1 %v8598_v44  ;;  %8047 = vmatprep.subr.bf16.mxu0 %v8687_v24 }
 0x7a4   :  { %8023 = vmatprep.subr.bf16.mxu1 %v8687_v24 }
 0x7a5   :  { %8044 = vmatmul.mubr.msk.bf16.vlgmr.msra.gmra.mrb[108].mxu0 %vm3352_vm5, %v6410_v59 }
 0x7a6   :  { %8048 = vmatpush3.bf16.msra.mxu0 %v8600_v57  ;;  %8063 = vmatprep.mubr.msk.bf16.mxu0 %vm8688_vm0, %v8687_v24 }
 0x7a7   :  { %8024 = vmatpush3.bf16.msra.mxu1 %v8599_v46  ;;  %8049 = vmatprep.subr.bf16.mxu0 %v8687_v24 }
 0x7a8   :  { %8025 = vmatprep.subr.bf16.mxu1 %v8687_v24 }
 0x7aa   :  { %8050 = vmatpush3.bf16.msra.mxu0 %v8602_v9 }
 0x7ab   :  { %8026 = vmatpush3.bf16.msra.mxu1 %v8601_v47  ;;  %8051 = vmatprep.subr.bf16.mxu0 %v8687_v24 }
 0x7ac   :  { %8027 = vmatprep.subr.bf16.mxu1 %v8687_v24 }
 0x7ae   :  { %8052 = vmatpush3.bf16.msra.mxu0 %v8604_v48 }
 0x7af   :  { %8028 = vmatpush3.bf16.msra.mxu1 %v8603_v7  ;;  %8053 = vmatprep.subr.bf16.mxu0 %v8687_v24 }
 0x7b0   :  { %8029 = vmatprep.subr.bf16.mxu1 %v8687_v24 }
 0x7b2   :  { %8054 = vmatpush3.bf16.msra.mxu0 %v8606_v49 }
 0x7b3   :  { %8030 = vmatpush3.bf16.msra.mxu1 %v8605_v50  ;;  %8055 = vmatprep.subr.bf16.mxu0 %v8687_v24  ;;  %v6488_v50 = vld [vmem:[%s10309_s6 + $0x24] sm:$0xf] }
 0x7b4   :  { %8031 = vmatprep.subr.bf16.mxu1 %v8687_v24 }
 0x7b6   :  { %8056 = vmatpush3.bf16.msra.mxu0 %v8608_v52  ;;  %v8629_v52 = vld [vmem:[%s10306_s7 + $0x240] sm:$0xff]  }
 0x7b7   :  { %8032 = vmatpush3.bf16.msra.mxu1 %v8607_v51  ;;  %8057 = vmatprep.subr.bf16.mxu0 %v8687_v24 }
 0x7b8   :  { %8033 = vmatprep.subr.bf16.mxu1 %v8687_v24 }
 0x7ba   :  { %8058 = vmatpush3.bf16.msra.mxu0 %v8610_v54 }
 0x7bb   :  { %8034 = vmatpush3.bf16.msra.mxu1 %v8609_v53  ;;  %8059 = vmatprep.subr.bf16.mxu0 %v8687_v24 }
 0x7bc   :  { %8067 = vmatprep.subr.bf16.mxu1 %v8687_v24 }
 0x7be   :  { %8060 = vmatpush3.bf16.msra.mxu0 %v8611_v55 }
 0x7bf   :  { %8061 = vmatprep.subr.bf16.mxu0 %v8687_v24 }
 0x7c2   :  { %8062 = vmatpush3.bf16.msra.mxu0 %v8612_v56  ;;  %v8630_v56 = vld [vmem:[%s10306_s7 + $0x248] sm:$0xff]  }
 0x7c3   :  { %8095 = vmatprep.subr.bf16.mxu0 %v8687_v24 }
 0x868   :  { %v3949_v58 = vpop.f32.mrb[12].mxu1 }
 0x869   :  { %v3955_v60 = vadd.f32 %v3949_v58, %v9799_v30  ;;  %v7981_v61 = vpop.f32.mrb[13].mxu1  ;;  %v8619_v30 = vld [vmem:[%s10306_s7 + $0x1e0] sm:$0xff]   ;;  %v6514_v58 = vld [vmem:[%s10309_s6 + $0x28] sm:$0xf] }
 0x86a   :  { %v3952_v62 = vpop.f32.mrb[14].mxu1  ;;  %v8631_v61 = vld [vmem:[%s10306_s7 + $0x250] sm:$0xff]  }
 0x86b   :  { %v7982_v63 = vpop.f32.mrb[15].mxu1  ;;  %v8634_v62 = vld [vmem:[%s10306_s7 + $0x288] sm:$0xff]  }
 0x86c   :  { %v8633_v63 = vld [vmem:[%s10306_s7 + $0x258] sm:$0xff]  }
 0x870   :  { %v4101_v0 = vpop.f32.mrb[104].mxu0  ;;  %v4147_v1 = vpop.f32.mrb[16].mxu1 }
 0x871   :  { %v9890_v2 = vadd.f32 %v4101_v0, %v3955_v60  ;;  %v4153_v3 = vpack.c.bf16 %v4147_v1, %v4147_v1  ;;  %v8017_v4 = vpop.f32.mrb[17].mxu1  ;;  %v8009_v5 = vpop.f32.mrb[105].mxu0  ;;  %v8632_v60 = vld [vmem:[%s10306_s7 + $0x280] sm:$0xff]   ;;  %v8636_v0 = vld [vmem:[%s10306_s7 + $0x290] sm:$0xff]  }
 0x872   :  { %v4150_v6 = vpop.f32.mrb[18].mxu1  ;;  %v4104_v8 = vpop.f32.mrb[106].mxu0  ;;  %v8635_v1 = vld [vmem:[%s10306_s7 + $0x260] sm:$0xff]   ;;  %v8639_v4 = vld [vmem:[%s10306_s7 + $0x270] sm:$0xff]  }
 0x873   :  { %v8018_v10 = vpop.f32.mrb[19].mxu1  ;;  %8036 = vmatmul.mubr.bf16.vlgmr.msra.gmra.mrb[20].mxu1 %v4153_v3  ;;  %v8010_v11 = vpop.f32.mrb[107].mxu0  ;;  %v8637_v3 = vld [vmem:[%s10306_s7 + $0x268] sm:$0xff]   ;;  %v8640_v5 = vld [vmem:[%s10306_s7 + $0x2a0] sm:$0xff]   ;;  %v8641_v6 = vld [vmem:[%s10306_s7 + $0x278] sm:$0xff]  }
 0x874   :  { %8068 = vmatpush3.bf16.msra.mxu1 %v9607_v25  ;;  %8071 = vmatprep.mubr.msk.bf16.mxu1 %vm8688_vm0, %v8687_v24  ;;  %v8642_v8 = vld [vmem:[%s10306_s7 + $0x2a8] sm:$0xff]   ;;  %v8643_v10 = vld [vmem:[%s10306_s7 + $0x2b0] sm:$0xff]   ;;  %v8644_v11 = vld [vmem:[%s10306_s7 + $0x2b8] sm:$0xff]  }
 0x875   :  { %8069 = vmatprep.subr.bf16.mxu1 %v8687_v24 }
 0x878   :  { %8070 = vmatpush3.bf16.msra.mxu1 %v9609_v26  ;;  %v4299_v12 = vpop.f32.mrb[108].mxu0 }
 0x879   :  { %v4305_v14 = vpack.c.bf16 %v4299_v12, %v4299_v12  ;;  %8075 = vmatprep.subr.bf16.mxu1 %v8687_v24  ;;  %v8045_v16 = vpop.f32.mrb[109].mxu0 }
 0x87a   :  { %v4302_v17 = vpop.f32.mrb[110].mxu0 }
 0x87b   :  { %8064 = vmatmul.mubr.bf16.vlgmr.msra.gmra.mrb[112].mxu0 %v4305_v14  ;;  %8072 = vmatmul.mubr.msk.bf16.vlgmr.msra.gmra.mrb[24].mxu1 %vm3352_vm5, %v6436_v13  ;;  %v8046_v18 = vpop.f32.mrb[111].mxu0 }
 0x87c   :  { %8096 = vmatpush3.bf16.msra.mxu0 %v9607_v25  ;;  %8099 = vmatprep.mubr.msk.bf16.mxu0 %vm8688_vm0, %v8687_v24 }
 0x87d   :  { %8097 = vmatprep.subr.bf16.mxu0 %v8687_v24  ;;  %8076 = vmatpush3.bf16.msra.mxu1 %v8613_v15 }
 0x87e   :  { %8077 = vmatprep.subr.bf16.mxu1 %v8687_v24  ;;  %8091 = vmatprep.mubr.msk.bf16.mxu1 %vm8688_vm0, %v8687_v24 }
 0x880   :  { %8098 = vmatpush3.bf16.msra.mxu0 %v9609_v26 }
 0x881   :  { %8078 = vmatpush3.bf16.msra.mxu1 %v8614_v19  ;;  %8103 = vmatprep.subr.bf16.mxu0 %v8687_v24 }
 0x882   :  { %8079 = vmatprep.subr.bf16.mxu1 %v8687_v24 }
 0x883   :  { %8100 = vmatmul.mubr.msk.bf16.vlgmr.msra.gmra.mrb[116].mxu0 %vm3352_vm5, %v6462_v20 }
 0x884   :  { %8104 = vmatpush3.bf16.msra.mxu0 %v8616_v21  ;;  %8119 = vmatprep.mubr.msk.bf16.mxu0 %vm8688_vm0, %v8687_v24 }
 0x885   :  { %8080 = vmatpush3.bf16.msra.mxu1 %v8615_v22  ;;  %8105 = vmatprep.subr.bf16.mxu0 %v8687_v24 }
 0x886   :  { %8081 = vmatprep.subr.bf16.mxu1 %v8687_v24 }
 0x888   :  { %8106 = vmatpush3.bf16.msra.mxu0 %v8618_v23 }
 0x889   :  { %8082 = vmatpush3.bf16.msra.mxu1 %v8617_v27  ;;  %8107 = vmatprep.subr.bf16.mxu0 %v8687_v24 }
 0x88a   :  { %8083 = vmatprep.subr.bf16.mxu1 %v8687_v24 }
 0x88c   :  { %8108 = vmatpush3.bf16.msra.mxu0 %v8620_v28 }
 0x88d   :  { %8084 = vmatpush3.bf16.msra.mxu1 %v8619_v30  ;;  %8109 = vmatprep.subr.bf16.mxu0 %v8687_v24 }
 0x88e   :  { %8085 = vmatprep.subr.bf16.mxu1 %v8687_v24 }
 0x890   :  { %8110 = vmatpush3.bf16.msra.mxu0 %v8622_v32 }
 0x891   :  { %8086 = vmatpush3.bf16.msra.mxu1 %v8621_v33  ;;  %8111 = vmatprep.subr.bf16.mxu0 %v8687_v24  ;;  %v6540_v33 = vld [vmem:[%s10309_s6 + $0x2c] sm:$0xf] }
 0x892   :  { %8087 = vmatprep.subr.bf16.mxu1 %v8687_v24 }
 0x894   :  { %8112 = vmatpush3.bf16.msra.mxu0 %v8624_v35  ;;  %v8645_v35 = vld [vmem:[%s10306_s7 + $0x2c0] sm:$0xff]  }
 0x895   :  { %8088 = vmatpush3.bf16.msra.mxu1 %v8623_v34  ;;  %8113 = vmatprep.subr.bf16.mxu0 %v8687_v24 }
 0x896   :  { %8089 = vmatprep.subr.bf16.mxu1 %v8687_v24 }
 0x898   :  { %8114 = vmatpush3.bf16.msra.mxu0 %v8626_v37 }
 0x899   :  { %8090 = vmatpush3.bf16.msra.mxu1 %v8625_v36  ;;  %8115 = vmatprep.subr.bf16.mxu0 %v8687_v24 }
 0x89a   :  { %8123 = vmatprep.subr.bf16.mxu1 %v8687_v24 }
 0x89c   :  { %8116 = vmatpush3.bf16.msra.mxu0 %v8627_v38 }
 0x89d   :  { %8117 = vmatprep.subr.bf16.mxu0 %v8687_v24 }
 0x8a0   :  { %8118 = vmatpush3.bf16.msra.mxu0 %v8628_v31  ;;  %v8646_v31 = vld [vmem:[%s10306_s7 + $0x2c8] sm:$0xff]  }
 0x8a1   :  { %8151 = vmatprep.subr.bf16.mxu0 %v8687_v24 }
 0x946   :  { %v4253_v29 = vpop.f32.mrb[20].mxu1 }
 0x947   :  { %v4259_v45 = vadd.f32 %v4253_v29, %v9890_v2  ;;  %v8037_v39 = vpop.f32.mrb[21].mxu1  ;;  %v8638_v2 = vld [vmem:[%s10306_s7 + $0x298] sm:$0xff]   ;;  %v6566_v29 = vld [vmem:[%s10309_s6 + $0x30] sm:$0xf] }
 0x948   :  { %v4256_v43 = vpop.f32.mrb[22].mxu1  ;;  %v8647_v39 = vld [vmem:[%s10306_s7 + $0x2d0] sm:$0xff]  }
 0x949   :  { %v8038_v40 = vpop.f32.mrb[23].mxu1  ;;  %v8650_v43 = vld [vmem:[%s10306_s7 + $0x308] sm:$0xff]  }
 0x94a   :  { %v8649_v40 = vld [vmem:[%s10306_s7 + $0x2d8] sm:$0xff]  }
 0x94e   :  { %v4405_v41 = vpop.f32.mrb[112].mxu0  ;;  %v4451_v42 = vpop.f32.mrb[24].mxu1 }
 0x94f   :  { %v9981_v44 = vadd.f32 %v4405_v41, %v4259_v45  ;;  %v4457_v59 = vpack.c.bf16 %v4451_v42, %v4451_v42  ;;  %v8073_v57 = vpop.f32.mrb[25].mxu1  ;;  %v8065_v46 = vpop.f32.mrb[113].mxu0  ;;  %v8648_v45 = vld [vmem:[%s10306_s7 + $0x300] sm:$0xff]   ;;  %v8652_v41 = vld [vmem:[%s10306_s7 + $0x310] sm:$0xff]  }
 0x950   :  { %v4454_v9 = vpop.f32.mrb[26].mxu1  ;;  %v4408_v47 = vpop.f32.mrb[114].mxu0  ;;  %v8651_v42 = vld [vmem:[%s10306_s7 + $0x2e0] sm:$0xff]   ;;  %v8655_v57 = vld [vmem:[%s10306_s7 + $0x2f0] sm:$0xff]  }
 0x951   :  { %v8074_v48 = vpop.f32.mrb[27].mxu1  ;;  %8092 = vmatmul.mubr.bf16.vlgmr.msra.gmra.mrb[28].mxu1 %v4457_v59  ;;  %v8066_v7 = vpop.f32.mrb[115].mxu0  ;;  %v8653_v59 = vld [vmem:[%s10306_s7 + $0x2e8] sm:$0xff]   ;;  %v8656_v46 = vld [vmem:[%s10306_s7 + $0x320] sm:$0xff]   ;;  %v8657_v9 = vld [vmem:[%s10306_s7 + $0x2f8] sm:$0xff]  }
 0x952   :  { %8124 = vmatpush3.bf16.msra.mxu1 %v9607_v25  ;;  %8127 = vmatprep.mubr.msk.bf16.mxu1 %vm8688_vm0, %v8687_v24  ;;  %v8658_v47 = vld [vmem:[%s10306_s7 + $0x328] sm:$0xff]   ;;  %v8659_v48 = vld [vmem:[%s10306_s7 + $0x330] sm:$0xff]   ;;  %v8660_v7 = vld [vmem:[%s10306_s7 + $0x338] sm:$0xff]  }
 0x953   :  { %8125 = vmatprep.subr.bf16.mxu1 %v8687_v24 }
 0x956   :  { %8126 = vmatpush3.bf16.msra.mxu1 %v9609_v26  ;;  %v4603_v49 = vpop.f32.mrb[116].mxu0 }
 0x957   :  { %v4609_v51 = vpack.c.bf16 %v4603_v49, %v4603_v49  ;;  %8131 = vmatprep.subr.bf16.mxu1 %v8687_v24  ;;  %v8101_v53 = vpop.f32.mrb[117].mxu0 }
 0x958   :  { %v4606_v54 = vpop.f32.mrb[118].mxu0 }
 0x959   :  { %8120 = vmatmul.mubr.bf16.vlgmr.msra.gmra.mrb[120].mxu0 %v4609_v51  ;;  %8128 = vmatmul.mubr.msk.bf16.vlgmr.msra.gmra.mrb[32].mxu1 %vm3352_vm5, %v6488_v50  ;;  %v8102_v55 = vpop.f32.mrb[119].mxu0 }
 0x95a   :  { %8152 = vmatpush3.bf16.msra.mxu0 %v9607_v25  ;;  %8155 = vmatprep.mubr.msk.bf16.mxu0 %vm8688_vm0, %v8687_v24 }
 0x95b   :  { %8153 = vmatprep.subr.bf16.mxu0 %v8687_v24  ;;  %8132 = vmatpush3.bf16.msra.mxu1 %v8629_v52 }
 0x95c   :  { %8133 = vmatprep.subr.bf16.mxu1 %v8687_v24  ;;  %8147 = vmatprep.mubr.msk.bf16.mxu1 %vm8688_vm0, %v8687_v24 }
 0x95e   :  { %8154 = vmatpush3.bf16.msra.mxu0 %v9609_v26 }
 0x95f   :  { %8134 = vmatpush3.bf16.msra.mxu1 %v8630_v56  ;;  %8159 = vmatprep.subr.bf16.mxu0 %v8687_v24 }
 0x960   :  { %8135 = vmatprep.subr.bf16.mxu1 %v8687_v24 }
 0x961   :  { %8156 = vmatmul.mubr.msk.bf16.vlgmr.msra.gmra.mrb[124].mxu0 %vm3352_vm5, %v6514_v58 }
 0x962   :  { %8160 = vmatpush3.bf16.msra.mxu0 %v8632_v60  ;;  %8175 = vmatprep.mubr.msk.bf16.mxu0 %vm8688_vm0, %v8687_v24 }
 0x963   :  { %8136 = vmatpush3.bf16.msra.mxu1 %v8631_v61  ;;  %8161 = vmatprep.subr.bf16.mxu0 %v8687_v24 }
 0x964   :  { %8137 = vmatprep.subr.bf16.mxu1 %v8687_v24 }
 0x966   :  { %8162 = vmatpush3.bf16.msra.mxu0 %v8634_v62 }
 0x967   :  { %8138 = vmatpush3.bf16.msra.mxu1 %v8633_v63  ;;  %8163 = vmatprep.subr.bf16.mxu0 %v8687_v24 }
 0x968   :  { %8139 = vmatprep.subr.bf16.mxu1 %v8687_v24 }
 0x96a   :  { %8164 = vmatpush3.bf16.msra.mxu0 %v8636_v0 }
 0x96b   :  { %8140 = vmatpush3.bf16.msra.mxu1 %v8635_v1  ;;  %8165 = vmatprep.subr.bf16.mxu0 %v8687_v24 }
 0x96c   :  { %8141 = vmatprep.subr.bf16.mxu1 %v8687_v24 }
 0x96e   :  { %8166 = vmatpush3.bf16.msra.mxu0 %v8638_v2 }
 0x96f   :  { %8142 = vmatpush3.bf16.msra.mxu1 %v8637_v3  ;;  %8167 = vmatprep.subr.bf16.mxu0 %v8687_v24  ;;  %v6592_v3 = vld [vmem:[%s10309_s6 + $0x34] sm:$0xf] }
 0x970   :  { %8143 = vmatprep.subr.bf16.mxu1 %v8687_v24 }
 0x972   :  { %8168 = vmatpush3.bf16.msra.mxu0 %v8640_v5  ;;  %v8661_v5 = vld [vmem:[%s10306_s7 + $0x340] sm:$0xff]  }
 0x973   :  { %8144 = vmatpush3.bf16.msra.mxu1 %v8639_v4  ;;  %8169 = vmatprep.subr.bf16.mxu0 %v8687_v24 }
 0x974   :  { %8145 = vmatprep.subr.bf16.mxu1 %v8687_v24 }
 0x976   :  { %8170 = vmatpush3.bf16.msra.mxu0 %v8642_v8 }
 0x977   :  { %8146 = vmatpush3.bf16.msra.mxu1 %v8641_v6  ;;  %8171 = vmatprep.subr.bf16.mxu0 %v8687_v24 }
 0x978   :  { %8179 = vmatprep.subr.bf16.mxu1 %v8687_v24 }
 0x97a   :  { %8172 = vmatpush3.bf16.msra.mxu0 %v8643_v10 }
 0x97b   :  { %8173 = vmatprep.subr.bf16.mxu0 %v8687_v24 }
 0x97e   :  { %8174 = vmatpush3.bf16.msra.mxu0 %v8644_v11  ;;  %v8662_v11 = vld [vmem:[%s10306_s7 + $0x348] sm:$0xff]  }
 0x97f   :  { %8207 = vmatprep.subr.bf16.mxu0 %v8687_v24 }
 0xa24   :  { %v4557_v12 = vpop.f32.mrb[28].mxu1 }
 0xa25   :  { %v4563_v13 = vadd.f32 %v4557_v12, %v9981_v44  ;;  %v8093_v14 = vpop.f32.mrb[29].mxu1  ;;  %v8654_v44 = vld [vmem:[%s10306_s7 + $0x318] sm:$0xff]  }
 0xa26   :  { %v4560_v15 = vpop.f32.mrb[30].mxu1  ;;  %v6618_v12 = vld [vmem:[%s10309_s6 + $0x38] sm:$0xf]  ;;  %v8663_v14 = vld [vmem:[%s10306_s7 + $0x350] sm:$0xff]  }
 0xa27   :  { %v8094_v16 = vpop.f32.mrb[31].mxu1  ;;  %v8666_v15 = vld [vmem:[%s10306_s7 + $0x388] sm:$0xff]  }
 0xa28   :  { %v8665_v16 = vld [vmem:[%s10306_s7 + $0x358] sm:$0xff]  }
 0xa2c   :  { %v4709_v17 = vpop.f32.mrb[120].mxu0  ;;  %v4755_v18 = vpop.f32.mrb[32].mxu1 }
 0xa2d   :  { %v10072_v19 = vadd.f32 %v4709_v17, %v4563_v13  ;;  %v4761_v20 = vpack.c.bf16 %v4755_v18, %v4755_v18  ;;  %v8129_v21 = vpop.f32.mrb[33].mxu1  ;;  %v8121_v22 = vpop.f32.mrb[121].mxu0  ;;  %v8664_v13 = vld [vmem:[%s10306_s7 + $0x380] sm:$0xff]   ;;  %v8668_v17 = vld [vmem:[%s10306_s7 + $0x390] sm:$0xff]  }
 0xa2e   :  { %v4758_v23 = vpop.f32.mrb[34].mxu1  ;;  %v4712_v27 = vpop.f32.mrb[122].mxu0  ;;  %v8667_v18 = vld [vmem:[%s10306_s7 + $0x360] sm:$0xff]   ;;  %v8671_v21 = vld [vmem:[%s10306_s7 + $0x370] sm:$0xff]  }
 0xa2f   :  { %v8130_v28 = vpop.f32.mrb[35].mxu1  ;;  %8148 = vmatmul.mubr.bf16.vlgmr.msra.gmra.mrb[36].mxu1 %v4761_v20  ;;  %v8122_v30 = vpop.f32.mrb[123].mxu0  ;;  %v8670_v20 = vld [vmem:[%s10306_s7 + $0x398] sm:$0xff]   ;;  %v8672_v22 = vld [vmem:[%s10306_s7 + $0x3a0] sm:$0xff]   ;;  %v8674_v27 = vld [vmem:[%s10306_s7 + $0x3a8] sm:$0xff]  }
 0xa30   :  { %8180 = vmatpush3.bf16.msra.mxu1 %v9607_v25  ;;  %8183 = vmatprep.mubr.msk.bf16.mxu1 %vm8688_vm0, %v8687_v24  ;;  %v8673_v23 = vld [vmem:[%s10306_s7 + $0x378] sm:$0xff]   ;;  %v8675_v28 = vld [vmem:[%s10306_s7 + $0x3b0] sm:$0xff]  }
 0xa31   :  { %8181 = vmatprep.subr.bf16.mxu1 %v8687_v24  ;;  %v8676_v30 = vld [vmem:[%s10306_s7 + $0x3b8] sm:$0xff]  }
 0xa34   :  { %8182 = vmatpush3.bf16.msra.mxu1 %v9609_v26  ;;  %v4907_v32 = vpop.f32.mrb[124].mxu0 }
 0xa35   :  { %v4913_v34 = vpack.c.bf16 %v4907_v32, %v4907_v32  ;;  %8187 = vmatprep.subr.bf16.mxu1 %v8687_v24  ;;  %v8157_v36 = vpop.f32.mrb[125].mxu0 }
 0xa36   :  { %v4910_v37 = vpop.f32.mrb[126].mxu0 }
 0xa37   :  { %8176 = vmatmul.mubr.bf16.vlgmr.msra.gmra.mrb[128].mxu0 %v4913_v34  ;;  %8184 = vmatmul.mubr.msk.bf16.vlgmr.msra.gmra.mrb[40].mxu1 %vm3352_vm5, %v6540_v33  ;;  %v8158_v38 = vpop.f32.mrb[127].mxu0 }
 0xa38   :  { %8208 = vmatpush3.bf16.msra.mxu0 %v9607_v25  ;;  %8211 = vmatprep.mubr.msk.bf16.mxu0 %vm8688_vm0, %v8687_v24 }
 0xa39   :  { %8209 = vmatprep.subr.bf16.mxu0 %v8687_v24  ;;  %8188 = vmatpush3.bf16.msra.mxu1 %v8645_v35 }
 0xa3a   :  { %8189 = vmatprep.subr.bf16.mxu1 %v8687_v24  ;;  %8203 = vmatprep.mubr.msk.bf16.mxu1 %vm8688_vm0, %v8687_v24 }
 0xa3c   :  { %8210 = vmatpush3.bf16.msra.mxu0 %v9609_v26 }
 0xa3d   :  { %8190 = vmatpush3.bf16.msra.mxu1 %v8646_v31  ;;  %8215 = vmatprep.subr.bf16.mxu0 %v8687_v24 }
 0xa3e   :  { %8191 = vmatprep.subr.bf16.mxu1 %v8687_v24 }
 0xa3f   :  { %8212 = vmatmul.mubr.msk.bf16.vlgmr.msra.gmra.mrb[132].mxu0 %vm3352_vm5, %v6566_v29 }
 0xa40   :  { %8216 = vmatpush3.bf16.msra.mxu0 %v8648_v45  ;;  %8231 = vmatprep.mubr.msk.bf16.mxu0 %vm8688_vm0, %v8687_v24 }
 0xa41   :  { %8192 = vmatpush3.bf16.msra.mxu1 %v8647_v39  ;;  %8217 = vmatprep.subr.bf16.mxu0 %v8687_v24 }
 0xa42   :  { %8193 = vmatprep.subr.bf16.mxu1 %v8687_v24 }
 0xa44   :  { %8218 = vmatpush3.bf16.msra.mxu0 %v8650_v43 }
 0xa45   :  { %8194 = vmatpush3.bf16.msra.mxu1 %v8649_v40  ;;  %8219 = vmatprep.subr.bf16.mxu0 %v8687_v24 }
 0xa46   :  { %8195 = vmatprep.subr.bf16.mxu1 %v8687_v24 }
 0xa48   :  { %8220 = vmatpush3.bf16.msra.mxu0 %v8652_v41 }
 0xa49   :  { %8196 = vmatpush3.bf16.msra.mxu1 %v8651_v42  ;;  %8221 = vmatprep.subr.bf16.mxu0 %v8687_v24 }
 0xa4a   :  { %8197 = vmatprep.subr.bf16.mxu1 %v8687_v24 }
 0xa4c   :  { %8222 = vmatpush3.bf16.msra.mxu0 %v8654_v44 }
 0xa4d   :  { %8198 = vmatpush3.bf16.msra.mxu1 %v8653_v59  ;;  %8223 = vmatprep.subr.bf16.mxu0 %v8687_v24  ;;  %v6644_v59 = vld [vmem:[%s10309_s6 + $0x3c] sm:$0xf] }
 0xa4e   :  { %8199 = vmatprep.subr.bf16.mxu1 %v8687_v24 }
 0xa50   :  { %8224 = vmatpush3.bf16.msra.mxu0 %v8656_v46 }
 0xa51   :  { %8200 = vmatpush3.bf16.msra.mxu1 %v8655_v57  ;;  %8225 = vmatprep.subr.bf16.mxu0 %v8687_v24  ;;  %v8677_v57 = vld [vmem:[%s10306_s7 + $0x3c0] sm:$0xff]  }
 0xa52   :  { %8201 = vmatprep.subr.bf16.mxu1 %v8687_v24 }
 0xa54   :  { %8226 = vmatpush3.bf16.msra.mxu0 %v8658_v47 }
 0xa55   :  { %8202 = vmatpush3.bf16.msra.mxu1 %v8657_v9  ;;  %8227 = vmatprep.subr.bf16.mxu0 %v8687_v24 }
 0xa56   :  { %8235 = vmatprep.subr.bf16.mxu1 %v8687_v24 }
 0xa58   :  { %8228 = vmatpush3.bf16.msra.mxu0 %v8659_v48  ;;  %v8679_v48 = vld [vmem:[%s10306_s7 + $0x3d0] sm:$0xff]  }
 0xa59   :  { %8229 = vmatprep.subr.bf16.mxu0 %v8687_v24 }
 0xa5c   :  { %8230 = vmatpush3.bf16.msra.mxu0 %v8660_v7  ;;  %v8680_v7 = vld [vmem:[%s10306_s7 + $0x3d8] sm:$0xff]  }
 0xa5d   :  { %8263 = vmatprep.subr.bf16.mxu0 %v8687_v24 }
 0xb02   :  { %v4861_v49 = vpop.f32.mrb[36].mxu1 }
 0xb03   :  { %v4867_v50 = vadd.f32 %v4861_v49, %v10072_v19  ;;  %v8149_v51 = vpop.f32.mrb[37].mxu1  ;;  %v8669_v19 = vld [vmem:[%s10306_s7 + $0x368] sm:$0xff]   ;;  %v8681_v49 = vld [vmem:[%s10306_s7 + $0x3e0] sm:$0xff]  }
 0xb04   :  { %v4864_v52 = vpop.f32.mrb[38].mxu1  ;;  %v8683_v51 = vld [vmem:[%s10306_s7 + $0x3f0] sm:$0xff]  }
 0xb05   :  { %v8150_v53 = vpop.f32.mrb[39].mxu1  ;;  %v8684_v52 = vld [vmem:[%s10306_s7 + $0x3f8] sm:$0xff]  }
 0xb0a   :  { %v5013_v54 = vpop.f32.mrb[128].mxu0  ;;  %v5059_v55 = vpop.f32.mrb[40].mxu1 }
 0xb0b   :  { %v10163_v56 = vadd.f32 %v5013_v54, %v4867_v50  ;;  %v5065_v58 = vpack.c.bf16 %v5059_v55, %v5059_v55  ;;  %v8185_v60 = vpop.f32.mrb[41].mxu1  ;;  %v8177_v61 = vpop.f32.mrb[129].mxu0  ;;  %v8682_v50 = vld [vmem:[%s10306_s7 + $0x3e8] sm:$0xff]  }
 0xb0c   :  { %v5062_v62 = vpop.f32.mrb[42].mxu1  ;;  %v5016_v63 = vpop.f32.mrb[130].mxu0 }
 0xb0d   :  { %v8186_v0 = vpop.f32.mrb[43].mxu1  ;;  %8204 = vmatmul.mubr.bf16.vlgmr.msra.gmra.mrb[44].mxu1 %v5065_v58  ;;  %v8178_v1 = vpop.f32.mrb[131].mxu0 }
 0xb0e   :  { %8236 = vmatpush3.bf16.msra.mxu1 %v9607_v25  ;;  %8239 = vmatprep.mubr.msk.bf16.mxu1 %vm8688_vm0, %v8687_v24 }
 0xb0f   :  { %8237 = vmatprep.subr.bf16.mxu1 %v8687_v24 }
 0xb12   :  { %8238 = vmatpush3.bf16.msra.mxu1 %v9609_v26  ;;  %v5211_v2 = vpop.f32.mrb[132].mxu0 }
 0xb13   :  { %v5217_v4 = vpack.c.bf16 %v5211_v2, %v5211_v2  ;;  %8243 = vmatprep.subr.bf16.mxu1 %v8687_v24  ;;  %v8213_v6 = vpop.f32.mrb[133].mxu0 }
 0xb14   :  { %v5214_v8 = vpop.f32.mrb[134].mxu0  ;;  %v6670_v6 = vld [vmem:[%s10310_s8] ss:$0 sm:$0xff] }
 0xb15   :  { %8232 = vmatmul.mubr.bf16.vlgmr.msra.gmra.mrb[136].mxu0 %v5217_v4  ;;  %8240 = vmatmul.mubr.msk.bf16.vlgmr.msra.gmra.mrb[48].mxu1 %vm3352_vm5, %v6592_v3  ;;  %v8214_v10 = vpop.f32.mrb[135].mxu0 }
 0xb16   :  { %8264 = vmatpush3.bf16.msra.mxu0 %v9607_v25  ;;  %8267 = vmatprep.mubr.msk.bf16.mxu0 %vm8688_vm0, %v8687_v24 }
 0xb17   :  { %8265 = vmatprep.subr.bf16.mxu0 %v8687_v24  ;;  %8244 = vmatpush3.bf16.msra.mxu1 %v8661_v5 }
 0xb18   :  { %8245 = vmatprep.subr.bf16.mxu1 %v8687_v24  ;;  %8259 = vmatprep.mubr.msk.bf16.mxu1 %vm8688_vm0, %v8687_v24 }
 0xb1a   :  { %8266 = vmatpush3.bf16.msra.mxu0 %v9609_v26 }
 0xb1b   :  { %8246 = vmatpush3.bf16.msra.mxu1 %v8662_v11  ;;  %8271 = vmatprep.subr.bf16.mxu0 %v8687_v24 }
 0xb1c   :  { %8247 = vmatprep.subr.bf16.mxu1 %v8687_v24 }
 0xb1d   :  { %8268 = vmatmul.mubr.msk.bf16.vlgmr.msra.gmra.mrb[140].mxu0 %vm3352_vm5, %v6618_v12 }
 0xb1e   :  { %8272 = vmatpush3.bf16.msra.mxu0 %v8664_v13  ;;  %8287 = vmatprep.mubr.msk.bf16.mxu0 %vm8688_vm0, %v8687_v24 }
 0xb1f   :  { %8248 = vmatpush3.bf16.msra.mxu1 %v8663_v14  ;;  %8273 = vmatprep.subr.bf16.mxu0 %v8687_v24 }
 0xb20   :  { %8249 = vmatprep.subr.bf16.mxu1 %v8687_v24 }
 0xb22   :  { %8274 = vmatpush3.bf16.msra.mxu0 %v8666_v15 }
 0xb23   :  { %8250 = vmatpush3.bf16.msra.mxu1 %v8665_v16  ;;  %8275 = vmatprep.subr.bf16.mxu0 %v8687_v24 }
 0xb24   :  { %8251 = vmatprep.subr.bf16.mxu1 %v8687_v24 }
 0xb26   :  { %8276 = vmatpush3.bf16.msra.mxu0 %v8668_v17 }
 0xb27   :  { %8252 = vmatpush3.bf16.msra.mxu1 %v8667_v18  ;;  %8277 = vmatprep.subr.bf16.mxu0 %v8687_v24 }
 0xb28   :  { %8253 = vmatprep.subr.bf16.mxu1 %v8687_v24 }
 0xb2a   :  { %8278 = vmatpush3.bf16.msra.mxu0 %v8670_v20 }
 0xb2b   :  { %8254 = vmatpush3.bf16.msra.mxu1 %v8669_v19  ;;  %8279 = vmatprep.subr.bf16.mxu0 %v8687_v24 }
 0xb2c   :  { %8255 = vmatprep.subr.bf16.mxu1 %v8687_v24 }
 0xb2e   :  { %8280 = vmatpush3.bf16.msra.mxu0 %v8672_v22 }
 0xb2f   :  { %8256 = vmatpush3.bf16.msra.mxu1 %v8671_v21  ;;  %8281 = vmatprep.subr.bf16.mxu0 %v8687_v24 }
 0xb30   :  { %8257 = vmatprep.subr.bf16.mxu1 %v8687_v24 }
 0xb32   :  { %8282 = vmatpush3.bf16.msra.mxu0 %v8674_v27 }
 0xb33   :  { %8258 = vmatpush3.bf16.msra.mxu1 %v8673_v23  ;;  %8283 = vmatprep.subr.bf16.mxu0 %v8687_v24 }
 0xb34   :  { %8291 = vmatprep.subr.bf16.mxu1 %v8687_v24 }
 0xb36   :  { %8284 = vmatpush3.bf16.msra.mxu0 %v8675_v28 }
 0xb37   :  { %8285 = vmatprep.subr.bf16.mxu0 %v8687_v24 }
 0xb3a   :  { %8286 = vmatpush3.bf16.msra.mxu0 %v8676_v30 }
 0xbe0   :  { %v5165_v32 = vpop.f32.mrb[44].mxu1 }
 0xbe1   :  { %v5171_v33 = vadd.f32 %v5165_v32, %v10163_v56  ;;  %v8205_v34 = vpop.f32.mrb[45].mxu1 }
 0xbe2   :  { %v5168_v35 = vpop.f32.mrb[46].mxu1 }
 0xbe3   :  { %v8206_v36 = vpop.f32.mrb[47].mxu1 }
 0xbe8   :  { %v5317_v37 = vpop.f32.mrb[136].mxu0  ;;  %v5363_v38 = vpop.f32.mrb[48].mxu1 }
 0xbe9   :  { %v5323_v31 = vadd.f32 %v5317_v37, %v5171_v33  ;;  %v5369_v29 = vpack.c.bf16 %v5363_v38, %v5363_v38  ;;  %v8241_v45 = vpop.f32.mrb[49].mxu1  ;;  %v8233_v39 = vpop.f32.mrb[137].mxu0 }
 0xbea   :  { %v5366_v43 = vpop.f32.mrb[50].mxu1  ;;  %v5320_v40 = vpop.f32.mrb[138].mxu0 }
 0xbeb   :  { %v8242_v41 = vpop.f32.mrb[51].mxu1  ;;  %8260 = vmatmul.mubr.bf16.vlgmr.msra.gmra.mrb[52].mxu1 %v5369_v29  ;;  %v8234_v42 = vpop.f32.mrb[139].mxu0 }
 0xbec   :  { %8292 = vmatpush3.bf16.msra.mxu1 %v9607_v25  ;;  %8295 = vmatprep.mubr.msk.bf16.mxu1 %vm8688_vm0, %v8687_v24 }
 0xbed   :  { %8293 = vmatprep.subr.bf16.mxu1 %v8687_v24 }
 0xbf0   :  { %8294 = vmatpush3.bf16.msra.mxu1 %v9609_v26  ;;  %v5515_v44 = vpop.f32.mrb[140].mxu0  ;;  %v8678_v26 = vld [vmem:[%s10306_s7 + $0x3c8] sm:$0xff]  }
 0xbf1   :  { %v5521_v46 = vpack.c.bf16 %v5515_v44, %v5515_v44  ;;  %8299 = vmatprep.subr.bf16.mxu1 %v8687_v24  ;;  %v8269_v25 = vpop.f32.mrb[141].mxu0 }
 0xbf2   :  { %v5518_v9 = vpop.f32.mrb[142].mxu0 }
 0xbf3   :  { %8288 = vmatmul.mubr.bf16.vlgmr.msra.gmra.mrb[144].mxu0 %v5521_v46  ;;  %8296 = vmatmul.mubr.msk.bf16.vlgmr.msra.gmra.mrb[56].mxu1 %vm3352_vm5, %v6644_v59  ;;  %v8270_v47 = vpop.f32.mrb[143].mxu0 }
 0xbf4   :  { %8300 = vmatpush3.bf16.msra.mxu1 %v8677_v57  ;;  %8315 = vmatprep.mubr.msk.bf16.mxu1 %vm8688_vm0, %v8687_v24 }
 0xbf5   :  { %8301 = vmatprep.subr.bf16.mxu1 %v8687_v24 }
 0xbf8   :  { %8302 = vmatpush3.bf16.msra.mxu1 %v8678_v26 }
 0xbf9   :  { %8303 = vmatprep.subr.bf16.mxu1 %v8687_v24 }
 0xbfc   :  { %8304 = vmatpush3.bf16.msra.mxu1 %v8679_v48 }
 0xbfd   :  { %8305 = vmatprep.subr.bf16.mxu1 %v8687_v24 }
 0xc00   :  { %8306 = vmatpush3.bf16.msra.mxu1 %v8680_v7 }
 0xc01   :  { %8307 = vmatprep.subr.bf16.mxu1 %v8687_v24 }
 0xc04   :  { %8308 = vmatpush3.bf16.msra.mxu1 %v8681_v49 }
 0xc05   :  { %8309 = vmatprep.subr.bf16.mxu1 %v8687_v24 }
 0xc08   :  { %8310 = vmatpush3.bf16.msra.mxu1 %v8682_v50 }
 0xc09   :  { %8311 = vmatprep.subr.bf16.mxu1 %v8687_v24 }
 0xc0c   :  { %8312 = vmatpush3.bf16.msra.mxu1 %v8683_v51 }
 0xc0d   :  { %8313 = vmatprep.subr.bf16.mxu1 %v8687_v24 }
 0xc10   :  { %8314 = vmatpush3.bf16.msra.mxu1 %v8684_v52 }
 0xcbe   :  { %v5469_v53 = vpop.f32.mrb[52].mxu1 }
 0xcbf   :  { %v5475_v54 = vadd.f32 %v5469_v53, %v5323_v31  ;;  %v8261_v55 = vpop.f32.mrb[53].mxu1 }
 0xcc0   :  { %v5472_v56 = vpop.f32.mrb[54].mxu1 }
 0xcc1   :  { %v8262_v58 = vpop.f32.mrb[55].mxu1 }
 0xcc6   :  { %v5621_v60 = vpop.f32.mrb[144].mxu0  ;;  %v5667_v61 = vpop.f32.mrb[56].mxu1 }
 0xcc7   :  { %v5627_v62 = vadd.f32 %v5621_v60, %v5475_v54  ;;  %v5673_v63 = vpack.c.bf16 %v5667_v61, %v5667_v61  ;;  %v8297_v0 = vpop.f32.mrb[57].mxu1  ;;  %v8289_v1 = vpop.f32.mrb[145].mxu0 }
 0xcc8   :  { %v5670_v2 = vpop.f32.mrb[58].mxu1  ;;  %v5624_v3 = vpop.f32.mrb[146].mxu0 }
 0xcc9   :  { %v8298_v4 = vpop.f32.mrb[59].mxu1  ;;  %8316 = vmatmul.mubr.bf16.vlgmr.msra.gmra.mrb[60].mxu1 %v5673_v63  ;;  %v8290_v24 = vpop.f32.mrb[147].mxu0 }
 0xd9c   :  { %v5773_v5 = vpop.f32.mrb[60].mxu1 }
 0xd9d   :  { %v5779_v8 = vadd.f32 %v5773_v5, %v5627_v62  ;;  %v8317_v10 = vpop.f32.mrb[61].mxu1 }
 0xd9e   :  { %v5776_v11 = vpop.f32.mrb[62].mxu1 }
 0xd9f   :  { %v5787_v12 = vadd.f32 %v6670_v6, %v5779_v8  ;;  %v8318_v13 = vpop.f32.mrb[63].mxu1 }
 0xda1   :  { %5788 = vst [vmem:[%s10311_s9] sm:$0xff] %v5787_v12 }

</bundles_post_ra>
